<compile_context>
chip_gen: v7x
topology: tpu7x:2x2x1
jax: 0.10.0
libtpu: 0.0.40
codegen_flags: <defaults>
</compile_context>

<pallas_src>
import functools

import jax
import jax.numpy as jnp
from jax.experimental import pallas as pl
from jax.experimental.pallas import tpu as pltpu

_BN_EPS = 1e-5
_LANES = 128
_SUBLANES = 8
_BLOCK_BUDGET_BYTES = 2 * 1024 * 1024     # per input-slab / output-block budget
_VMEM_LIMIT_BYTES = 48 * 1024 * 1024      # explicit; < v7x 64 MiB physical VMEM


def _silu(x):
    return x * jax.nn.sigmoid(x)


def _round_up(x, m):
    return (x + m - 1) // m * m


# --------------------------- fused Pallas kernel -----------------------------


def _fused_dwconv_kernel(x_hbm, dww_ref, dwb_ref, pww_ref, pwb_ref, o_ref,
                         xbuf, copy_sem,
                         *, k, stride, dilation, tHo, Wo, rows_in, acc_w,
                         roll_dir):
    """One fused step: DMA a halo'd input row-slab, depthwise conv (+BN bias,
    SiLU), then the 1x1 pointwise conv on the MXU (+BN bias, SiLU), and write
    one lane-dense output tile."""
    h = pl.program_id(0)                     # output row-tile index ("parallel")
    n = pl.program_id(1)                     # batch index ("arbitrary")
    num_n = pl.num_programs(1)
    row0 = h * (tHo * stride)                # first padded input row of the slab

    def slab_copy(n_idx, slot):
        return pltpu.make_async_copy(
            x_hbm.at[n_idx, pl.ds(row0, rows_in)],   # (rows_in, Wp, Cp) in HBM
            xbuf.at[slot],
            copy_sem.at[slot])

    slot = n % 2

    @pl.when(n == 0)                         # prime the pipeline for this tile
    def _():
        slab_copy(0, 0).start()

    @pl.when(n + 1 < num_n)                  # prefetch the next image's slab
    def _():
        slab_copy(n + 1, 1 - slot).start()

    slab_copy(n, slot).wait()                # current slab is now in VMEM

    Wp = xbuf.shape[2]
    Cp = xbuf.shape[3]
    Coutp = pww_ref.shape[1]
    rows_dense = (tHo - 1) * stride + 1

    x = xbuf[slot].astype(jnp.float32)       # (rows_in, Wp, Cp)
    w_dw = dww_ref[...]                      # (k, k, Cp), BN scale pre-folded

    # Realize the kw tap offsets along W once (hoisted out of the kh loop).
    if roll_dir == 0:
        # Fallback: sublane-offset slices (one relayout copy per tap).
        x_taps = [x[:, kw * dilation:kw * dilation + acc_w, :]
                  for kw in range(k)]
    else:
        # Preferred: XLU sublane rotation; wrapped-around columns only land
        # past the last used output column and are sliced away below.
        x_taps = [x if kw == 0 else
                  pltpu.roll(x, shift=(roll_dir * kw * dilation) % Wp, axis=1)
                  for kw in range(k)]

    # Depthwise taps: k*k broadcast multiply-adds on the VPU.
    acc = jnp.zeros((rows_dense, acc_w, Cp), jnp.float32)
    for kh in range(k):
        r0 = kh * dilation
        for kw in range(k):
            acc = acc + (x_taps[kw][r0:r0 + rows_dense]
                         * w_dw[kh, kw].reshape(1, 1, Cp))

    # Down-sample to the output grid (no-op slices when stride == 1).
    if stride == 1:
        y = acc[:, :Wo, :]
    else:
        y = acc[::stride, 0:(Wo - 1) * stride + 1:stride, :]

    # Depthwise BN bias + SiLU (scale already folded into w_dw).
    a = y.reshape(tHo * Wo, Cp) + dwb_ref[...]
    a = a * jax.nn.sigmoid(a)

    # Pointwise 1x1 conv == channel matmul on the MXU (bf16 in, f32 accum).
    z = jnp.dot(a.astype(pww_ref.dtype), pww_ref[...],
                preferred_element_type=jnp.float32)
    z = z + pwb_ref[...]
    z = z * jax.nn.sigmoid(z)

    o_ref[0] = z.reshape(tHo, Wo, Coutp).astype(o_ref.dtype)


# ------------------------------ helpers ---------------------------------------


@functools.lru_cache(maxsize=None)
def _roll_direction():
    """Probe pltpu.roll's rotation convention once.
    Returns -1 (jnp.roll convention), +1 (reversed) or 0 (unavailable ->
    fall back to sublane slices)."""
    def _kern(x_ref, o_ref):
        o_ref[...] = pltpu.roll(x_ref[...], shift=1, axis=1)
    try:
        x = jnp.arange(2 * 8 * 128, dtype=jnp.float32).reshape(2, 8, 128)
        got = jax.device_get(pl.pallas_call(
            _kern, out_shape=jax.ShapeDtypeStruct(x.shape, x.dtype))(x))
        if (got == jax.device_get(jnp.roll(x, 1, axis=1))).all():
            return -1
        if (got == jax.device_get(jnp.roll(x, -1, axis=1))).all():
            return 1
    except Exception:
        pass
    return 0


def _pick_tile_rows(Ho, stride, k, dilation, Wp, Cp, Wo, Coutp, itemsize):
    """Largest divisor of Ho whose input slab and output block both fit the
    per-block VMEM budget (keeps the per-step working set ~20 MiB)."""
    best = 1
    for t in range(1, Ho + 1):
        if Ho % t:
            continue
        rows_in = (t - 1) * stride + (k - 1) * dilation + 1
        if (rows_in * Wp * Cp * itemsize <= _BLOCK_BUDGET_BYTES and
                t * Wo * Coutp * itemsize <= _BLOCK_BUDGET_BYTES):
            best = t
    return best


# ------------------------------ wrapper ----------------------------------------


def dwconv_forward(x_nchw, params, *, kernel_size, stride=1, dilation=1):
    """DWConv forward: depthwise conv+BN+SiLU then 1x1 conv+BN+SiLU, fused in a
    single Pallas kernel.  Input/output are NCHW (PyTorch convention)."""
    k, d, s = kernel_size, dilation, stride
    dw_w, dw_b = params["dw_w"], params["dw_b"]
    pw_w, pw_b = params["pw_w"], params["pw_b"]
    Cp, Coutp = pw_w.shape
    cout = params["cout"]

    x = jnp.transpose(x_nchw, (0, 2, 3, 1))                # NCHW -> NHWC
    N, H, W, C = x.shape
    assert C == params["cin"]

    pad = (k - 1) * d // 2                                 # matches BaseConv
    Ho = (H + 2 * pad - d * (k - 1) - 1) // s + 1
    Wo = (W + 2 * pad - d * (k - 1) - 1) // s + 1
    Hp = H + 2 * pad
    Wp = _round_up(W + 2 * pad, _SUBLANES)                 # sublane-aligned width

    # TODO(synk): fold the spatial halo handling into the kernel (masked loads)
    # to avoid this extra HBM pass over the input; channel padding to the
    # 128-lane width is what makes all stores / the matmul lane-dense.
    xp = jnp.pad(x, ((0, 0), (pad, pad), (pad, Wp - W - pad), (0, Cp - C)))

    roll_dir = _roll_direction()
    tHo = _pick_tile_rows(Ho, s, k, d, Wp, Cp, Wo, Coutp, xp.dtype.itemsize)
    nH = Ho // tHo
    rows_in = (tHo - 1) * s + (k - 1) * d + 1
    assert (nH - 1) * tHo * s + rows_in <= Hp
    acc_w = Wp if roll_dir != 0 else (Wo - 1) * s + 1

    kernel = functools.partial(
        _fused_dwconv_kernel, k=k, stride=s, dilation=d, tHo=tHo, Wo=Wo,
        rows_in=rows_in, acc_w=acc_w, roll_dir=roll_dir)

    out = pl.pallas_call(
        kernel,
        out_shape=jax.ShapeDtypeStruct((N, Ho, Wo, Coutp), x.dtype),
        grid=(nH, N),
        in_specs=[
            pl.BlockSpec(memory_space=pl.ANY),                 # input stays in HBM
            pl.BlockSpec((k, k, Cp), lambda h, n: (0, 0, 0)),  # dw weight (folded)
            pl.BlockSpec((1, Cp), lambda h, n: (0, 0)),        # dw BN bias
            pl.BlockSpec((Cp, Coutp), lambda h, n: (0, 0)),    # pw weight (bf16)
            pl.BlockSpec((1, Coutp), lambda h, n: (0, 0)),     # pw BN bias
        ],
        out_specs=pl.BlockSpec((1, tHo, Wo, Coutp), lambda h, n: (n, h, 0, 0)),
        scratch_shapes=[
            pltpu.VMEM((2, rows_in, Wp, Cp), xp.dtype),        # input double buffer
            pltpu.SemaphoreType.DMA((2,)),
        ],
        compiler_params=pltpu.CompilerParams(
            dimension_semantics=("parallel", "arbitrary"),
            vmem_limit_bytes=_VMEM_LIMIT_BYTES),
    )(xp, dw_w, dw_b, pw_w, pw_b)

    out = out[..., :cout]                                  # drop lane padding
    return jnp.transpose(out, (0, 3, 1, 2))                # NHWC -> NCHW


# --------------------------- parameter preparation ----------------------------


def make_params(key, cin, cout, k):
    """Raw module parameters (conv weights + BatchNorm statistics)."""
    ks = jax.random.split(key, 10)
    return dict(
        dw_w=0.2 * jax.random.normal(ks[0], (k, k, cin), jnp.float32),
        pw_w=0.2 * jax.random.normal(ks[1], (cin, cout), jnp.float32),
        dw_gamma=1.0 + 0.1 * jax.random.normal(ks[2], (cin,), jnp.float32),
        dw_beta=0.1 * jax.random.normal(ks[3], (cin,), jnp.float32),
        dw_mean=0.1 * jax.random.normal(ks[4], (cin,), jnp.float32),
        dw_var=jnp.abs(jax.random.normal(ks[5], (cin,), jnp.float32)) + 0.5,
        pw_gamma=1.0 + 0.1 * jax.random.normal(ks[6], (cout,), jnp.float32),
        pw_beta=0.1 * jax.random.normal(ks[7], (cout,), jnp.float32),
        pw_mean=0.1 * jax.random.normal(ks[8], (cout,), jnp.float32),
        pw_var=jnp.abs(jax.random.normal(ks[9], (cout,), jnp.float32)) + 0.5,
    )


def prepare_params(raw, *, mxu_dtype=jnp.bfloat16):
    """Fold BN scales into the conv weights, pad channel dims to the 128-lane
    width, and cast the pointwise weight for the MXU.  Done once, offline."""
    k = raw["dw_w"].shape[0]
    cin = raw["dw_w"].shape[-1]
    cout = raw["pw_w"].shape[-1]
    dsc = raw["dw_gamma"] / jnp.sqrt(raw["dw_var"] + _BN_EPS)
    dbi = raw["dw_beta"] - raw["dw_mean"] * dsc
    psc = raw["pw_gamma"] / jnp.sqrt(raw["pw_var"] + _BN_EPS)
    pbi = raw["pw_beta"] - raw["pw_mean"] * psc

    Cp = _round_up(cin, _LANES)
    Coutp = _round_up(cout, _LANES)
    dw_w = jnp.pad(raw["dw_w"] * dsc, ((0, 0), (0, 0), (0, Cp - cin)))
    dw_b = jnp.pad(dbi, (0, Cp - cin)).reshape(1, Cp)
    pw_w = jnp.pad(raw["pw_w"] * psc, ((0, Cp - cin), (0, Coutp - cout)))
    pw_b = jnp.pad(pbi, (0, Coutp - cout)).reshape(1, Coutp)
    return dict(dw_w=dw_w.astype(jnp.float32), dw_b=dw_b.astype(jnp.float32),
                pw_w=pw_w.astype(mxu_dtype), pw_b=pw_b.astype(jnp.float32),
                cin=cin, cout=cout)


# --------------------------- pure-JAX reference --------------------------------


def reference_forward(x_nchw, raw, *, kernel_size, stride=1, dilation=1):
    k, d, s = kernel_size, dilation, stride
    x = jnp.transpose(x_nchw, (0, 2, 3, 1))
    cin = x.shape[-1]
    pad = (k - 1) * d // 2
    dsc = raw["dw_gamma"] / jnp.sqrt(raw["dw_var"] + _BN_EPS)
    dbi = raw["dw_beta"] - raw["dw_mean"] * dsc
    psc = raw["pw_gamma"] / jnp.sqrt(raw["pw_var"] + _BN_EPS)
    pbi = raw["pw_beta"] - raw["pw_mean"] * psc

    y = jax.lax.conv_general_dilated(
        x, raw["dw_w"].reshape(k, k, 1, cin), (s, s),
        [(pad, pad), (pad, pad)], rhs_dilation=(d, d),
        dimension_numbers=("NHWC", "HWIO", "NHWC"), feature_group_count=cin)
    y = _silu(y * dsc + dbi)
    z = jax.lax.conv_general_dilated(
        y, raw["pw_w"][None, None], (1, 1), [(0, 0), (0, 0)],
        dimension_numbers=("NHWC", "HWIO", "NHWC"))
    z = _silu(z * psc + pbi)
    return jnp.transpose(z, (0, 3, 1, 2))


if __name__ == "__main__":
    key = jax.random.PRNGKey(0)
    kx, kp = jax.random.split(key)
    N, Cin, Cout, H, W, K = 2, 4, 8, 16, 16, 3

    x = jax.random.normal(kx, (N, Cin, H, W), jnp.float32)
    raw = make_params(kp, Cin, Cout, K)
    params = prepare_params(raw)

    out = dwconv_forward(x, params, kernel_size=K, stride=1, dilation=1)
    out = jax.block_until_ready(out)

    ref = reference_forward(x, raw, kernel_size=K, stride=1, dilation=1)
    assert out.shape == (N, Cout, H, W), out.shape
    err = float(jnp.max(jnp.abs(out - ref)))
    # bf16 MXU inputs for the 1x1 conv -> small deviation from the f32 reference
    assert err < 2e-2, err
    print("KERNEL_OK")
</pallas_src>

<mosaic_0001>
module attributes {stable_mosaic.version = 11 : i64} {
  func.func @_kern(%arg0: memref<2x8x128xf32, #tpu.memory_space<vmem>>, %arg1: memref<2x8x128xf32, #tpu.memory_space<vmem>>) attributes {dimension_semantics = [], scalar_prefetch = 0 : i64, scratch_operands = 0 : i64, tpu.core_type = #tpu.core_type<tc>} {
    %c0 = arith.constant 0 : index
    %c0_0 = arith.constant 0 : index
    %c0_1 = arith.constant 0 : index
    %0 = vector.load %arg0[%c0, %c0_0, %c0_1] : memref<2x8x128xf32, #tpu.memory_space<vmem>>, vector<2x8x128xf32>
    %c1_i32 = arith.constant 1 : i32
    %1 = tpu.dynamic_rotate %0 by %c1_i32 dim 1 : vector<2x8x128xf32>, i32 -> vector<2x8x128xf32>
    %c0_2 = arith.constant 0 : index
    %c0_3 = arith.constant 0 : index
    %c0_4 = arith.constant 0 : index
    %2 = vector.load %arg1[%c0_2, %c0_3, %c0_4] : memref<2x8x128xf32, #tpu.memory_space<vmem>>, vector<2x8x128xf32>
    tpu.vector_store %arg1[%c0_2, %c0_3, %c0_4], %1 {strides = array<i32>} : memref<2x8x128xf32, #tpu.memory_space<vmem>>, vector<2x8x128xf32>,
    return
  }
}

module attributes {stable_mosaic.version = 11 : i64} {
  func.func @_fused_dwconv_kernel(%arg0: i32, %arg1: i32, %arg2: memref<2x18x24x128xf32, #tpu.memory_space<any>>, %arg3: memref<3x3x128xf32, #tpu.memory_space<vmem>>, %arg4: memref<1x128xf32, #tpu.memory_space<vmem>>, %arg5: memref<128x128xbf16, #tpu.memory_space<vmem>>, %arg6: memref<1x128xf32, #tpu.memory_space<vmem>>, %arg7: memref<1x16x16x128xf32, #tpu.memory_space<vmem>>, %arg8: memref<2x18x24x128xf32, #tpu.memory_space<vmem>>, %arg9: memref<2x!tpu.dma_semaphore, #tpu.memory_space<semaphore_mem>>) attributes {dimension_semantics = [#tpu.dimension_semantics<parallel>, #tpu.dimension_semantics<arbitrary>], iteration_bounds = array<i64: 1, 2>, scalar_prefetch = 0 : i64, scratch_operands = 2 : i64, tpu.core_type = #tpu.core_type<tc>, window_params = [{}, {pipeline_mode = #tpu.pipeline_mode<synchronous>, transform_indices = @transform_1, window_bounds = array<i64: 3, 3, 128>}, {pipeline_mode = #tpu.pipeline_mode<synchronous>, transform_indices = @transform_2, window_bounds = array<i64: 1, 128>}, {pipeline_mode = #tpu.pipeline_mode<synchronous>, transform_indices = @transform_3, window_bounds = array<i64: 128, 128>}, {pipeline_mode = #tpu.pipeline_mode<synchronous>, transform_indices = @transform_4, window_bounds = array<i64: 1, 128>}, {transform_indices = @transform_5, window_bounds = array<i64: 1, 16, 16, 128>}]} {
    %c16_i32 = arith.constant 16 : i32
    %0 = arith.muli %arg0, %c16_i32 : i32
    %c2_i32 = arith.constant 2 : i32
    %c0_i32 = arith.constant 0 : i32
    %1 = arith.cmpi eq, %c2_i32, %c0_i32 : i32
    %c1_i32 = arith.constant 1 : i32
    %2 = arith.select %1, %c1_i32, %c2_i32 : i32
    %3 = arith.remsi %arg1, %2 : i32
    %c0_i32_0 = arith.constant 0 : i32
    %4 = arith.cmpi ne, %3, %c0_i32_0 : i32
    %c0_i32_1 = arith.constant 0 : i32
    %5 = arith.cmpi slt, %3, %c0_i32_1 : i32
    %c0_i32_2 = arith.constant 0 : i32
    %6 = arith.cmpi slt, %2, %c0_i32_2 : i32
    %7 = arith.xori %5, %6 : i1
    %8 = arith.andi %7, %4 : i1
    %9 = arith.addi %3, %2 : i32
    %10 = arith.select %8, %9, %3 : i32
    %c0_i32_3 = arith.constant 0 : i32
    %11 = arith.cmpi eq, %arg1, %c0_i32_3 : i32
    %12 = arith.extui %11 : i1 to i32
    %c0_i32_4 = arith.constant 0 : i32
    %13 = arith.cmpi ne, %12, %c0_i32_4 : i32
    scf.if %13 {
      %c0_i32_31 = arith.constant 0 : i32
      %c0_i32_32 = arith.constant 0 : i32
      %c0_i32_33 = arith.constant 0 : i32
      %c0_i32_34 = arith.constant 0 : i32
      %c0_i32_35 = arith.constant 0 : i32
      %121 = tpu.memref_slice %arg2[%c0_i32_31, %0, %c0_i32_34, %c0_i32_35] : memref<2x18x24x128xf32, #tpu.memory_space<any>> -> memref<1x18x24x128xf32, #tpu.memory_space<any>>
      %122 = tpu.memref_squeeze %121 : memref<1x18x24x128xf32, #tpu.memory_space<any>> -> memref<18x24x128xf32, #tpu.memory_space<any>>
      %c0_i32_36 = arith.constant 0 : i32
      %c0_i32_37 = arith.constant 0 : i32
      %c0_i32_38 = arith.constant 0 : i32
      %123 = tpu.memref_slice %arg8[%c0_i32_32, %c0_i32_36, %c0_i32_37, %c0_i32_38] : memref<2x18x24x128xf32, #tpu.memory_space<vmem>> -> memref<1x18x24x128xf32, #tpu.memory_space<vmem>>
      %124 = tpu.memref_squeeze %123 : memref<1x18x24x128xf32, #tpu.memory_space<vmem>> -> memref<18x24x128xf32, #tpu.memory_space<vmem>>
      %125 = tpu.memref_slice %arg9[%c0_i32_33] : memref<2x!tpu.dma_semaphore, #tpu.memory_space<semaphore_mem>> -> memref<1x!tpu.dma_semaphore, #tpu.memory_space<semaphore_mem>>
      %126 = tpu.memref_squeeze %125 : memref<1x!tpu.dma_semaphore, #tpu.memory_space<semaphore_mem>> -> memref<!tpu.dma_semaphore, #tpu.memory_space<semaphore_mem>>
      tpu.enqueue_dma source(%122 : memref<18x24x128xf32, #tpu.memory_space<any>>) target(%124 : memref<18x24x128xf32, #tpu.memory_space<vmem>>) target_semaphore(%126 : memref<!tpu.dma_semaphore, #tpu.memory_space<semaphore_mem>>)
    } else {
    }
    %c1_i32_5 = arith.constant 1 : i32
    %14 = arith.addi %arg1, %c1_i32_5 : i32
    %c2_i32_6 = arith.constant 2 : i32
    %15 = arith.cmpi slt, %14, %c2_i32_6 : i32
    %16 = arith.extui %15 : i1 to i32
    %c0_i32_7 = arith.constant 0 : i32
    %17 = arith.cmpi ne, %16, %c0_i32_7 : i32
    scf.if %17 {
      %c1_i32_31 = arith.constant 1 : i32
      %121 = arith.addi %arg1, %c1_i32_31 : i32
      %c1_i32_32 = arith.constant 1 : i32
      %122 = arith.subi %c1_i32_32, %10 : i32
      %c0_i32_33 = arith.constant 0 : i32
      %c0_i32_34 = arith.constant 0 : i32
      %123 = tpu.memref_slice %arg2[%121, %0, %c0_i32_33, %c0_i32_34] : memref<2x18x24x128xf32, #tpu.memory_space<any>> -> memref<1x18x24x128xf32, #tpu.memory_space<any>>
      %124 = tpu.memref_squeeze %123 : memref<1x18x24x128xf32, #tpu.memory_space<any>> -> memref<18x24x128xf32, #tpu.memory_space<any>>
      %c0_i32_35 = arith.constant 0 : i32
      %c0_i32_36 = arith.constant 0 : i32
      %c0_i32_37 = arith.constant 0 : i32
      %125 = tpu.memref_slice %arg8[%122, %c0_i32_35, %c0_i32_36, %c0_i32_37] : memref<2x18x24x128xf32, #tpu.memory_space<vmem>> -> memref<1x18x24x128xf32, #tpu.memory_space<vmem>>
      %126 = tpu.memref_squeeze %125 : memref<1x18x24x128xf32, #tpu.memory_space<vmem>> -> memref<18x24x128xf32, #tpu.memory_space<vmem>>
      %127 = tpu.memref_slice %arg9[%122] : memref<2x!tpu.dma_semaphore, #tpu.memory_space<semaphore_mem>> -> memref<1x!tpu.dma_semaphore, #tpu.memory_space<semaphore_mem>>
      %128 = tpu.memref_squeeze %127 : memref<1x!tpu.dma_semaphore, #tpu.memory_space<semaphore_mem>> -> memref<!tpu.dma_semaphore, #tpu.memory_space<semaphore_mem>>
      tpu.enqueue_dma source(%124 : memref<18x24x128xf32, #tpu.memory_space<any>>) target(%126 : memref<18x24x128xf32, #tpu.memory_space<vmem>>) target_semaphore(%128 : memref<!tpu.dma_semaphore, #tpu.memory_space<semaphore_mem>>)
    } else {
    }
    %c0_i32_8 = arith.constant 0 : i32
    %c0_i32_9 = arith.constant 0 : i32
    %18 = tpu.memref_slice %arg2[%arg1, %0, %c0_i32_8, %c0_i32_9] : memref<2x18x24x128xf32, #tpu.memory_space<any>> -> memref<1x18x24x128xf32, #tpu.memory_space<any>>
    %19 = tpu.memref_squeeze %18 : memref<1x18x24x128xf32, #tpu.memory_space<any>> -> memref<18x24x128xf32, #tpu.memory_space<any>>
    %c0_i32_10 = arith.constant 0 : i32
    %c0_i32_11 = arith.constant 0 : i32
    %c0_i32_12 = arith.constant 0 : i32
    %20 = tpu.memref_slice %arg8[%10, %c0_i32_10, %c0_i32_11, %c0_i32_12] : memref<2x18x24x128xf32, #tpu.memory_space<vmem>> -> memref<1x18x24x128xf32, #tpu.memory_space<vmem>>
    %21 = tpu.memref_squeeze %20 : memref<1x18x24x128xf32, #tpu.memory_space<vmem>> -> memref<18x24x128xf32, #tpu.memory_space<vmem>>
    %22 = tpu.memref_slice %arg9[%10] : memref<2x!tpu.dma_semaphore, #tpu.memory_space<semaphore_mem>> -> memref<1x!tpu.dma_semaphore, #tpu.memory_space<semaphore_mem>>
    %23 = tpu.memref_squeeze %22 : memref<1x!tpu.dma_semaphore, #tpu.memory_space<semaphore_mem>> -> memref<!tpu.dma_semaphore, #tpu.memory_space<semaphore_mem>>
    tpu.wait_dma2 semaphore(%23 : memref<!tpu.dma_semaphore, #tpu.memory_space<semaphore_mem>>) src(%19 : memref<18x24x128xf32, #tpu.memory_space<any>>) dst(%21 : memref<18x24x128xf32, #tpu.memory_space<vmem>>)
    %24 = arith.index_cast %10 : i32 to index
    %c0 = arith.constant 0 : index
    %c0_13 = arith.constant 0 : index
    %c0_14 = arith.constant 0 : index
    %25 = vector.load %arg8[%24, %c0, %c0_13, %c0_14] : memref<2x18x24x128xf32, #tpu.memory_space<vmem>>, vector<1x18x24x128xf32>
    %26 = vector.shape_cast %25 : vector<1x18x24x128xf32> to vector<18x24x128xf32>
    %c0_15 = arith.constant 0 : index
    %c0_16 = arith.constant 0 : index
    %c0_17 = arith.constant 0 : index
    %27 = vector.load %arg3[%c0_15, %c0_16, %c0_17] : memref<3x3x128xf32, #tpu.memory_space<vmem>>, vector<3x3x128xf32>
    %28 = vector.extract_strided_slice %26 {offsets = [0, 0, 0], sizes = [18, 16, 128], strides = [1, 1, 1]} : vector<18x24x128xf32> to vector<18x16x128xf32>
    %29 = vector.extract_strided_slice %26 {offsets = [0, 1, 0], sizes = [18, 16, 128], strides = [1, 1, 1]} : vector<18x24x128xf32> to vector<18x16x128xf32>
    %30 = vector.extract_strided_slice %26 {offsets = [0, 2, 0], sizes = [18, 16, 128], strides = [1, 1, 1]} : vector<18x24x128xf32> to vector<18x16x128xf32>
    %cst = arith.constant 0.000000e+00 : f32
    %31 = vector.broadcast %cst : f32 to vector<16x16x128xf32>
    %32 = vector.extract_strided_slice %28 {offsets = [0, 0, 0], sizes = [16, 16, 128], strides = [1, 1, 1]} : vector<18x16x128xf32> to vector<16x16x128xf32>
    %33 = vector.extract_strided_slice %27 {offsets = [0, 0, 0], sizes = [1, 1, 128], strides = [1, 1, 1]} : vector<3x3x128xf32> to vector<1x1x128xf32>
    %34 = vector.shape_cast %33 : vector<1x1x128xf32> to vector<128xf32>
    %35 = vector.shape_cast %34 : vector<128xf32> to vector<1x1x128xf32>
    %36 = vector.broadcast %35 : vector<1x1x128xf32> to vector<16x16x128xf32>
    %37 = arith.mulf %32, %36 : vector<16x16x128xf32>
    %38 = arith.addf %31, %37 : vector<16x16x128xf32>
    %39 = vector.extract_strided_slice %29 {offsets = [0, 0, 0], sizes = [16, 16, 128], strides = [1, 1, 1]} : vector<18x16x128xf32> to vector<16x16x128xf32>
    %40 = vector.extract_strided_slice %27 {offsets = [0, 1, 0], sizes = [1, 1, 128], strides = [1, 1, 1]} : vector<3x3x128xf32> to vector<1x1x128xf32>
    %41 = vector.shape_cast %40 : vector<1x1x128xf32> to vector<128xf32>
    %42 = vector.shape_cast %41 : vector<128xf32> to vector<1x1x128xf32>
    %43 = vector.broadcast %42 : vector<1x1x128xf32> to vector<16x16x128xf32>
    %44 = arith.mulf %39, %43 : vector<16x16x128xf32>
    %45 = arith.addf %38, %44 : vector<16x16x128xf32>
    %46 = vector.extract_strided_slice %30 {offsets = [0, 0, 0], sizes = [16, 16, 128], strides = [1, 1, 1]} : vector<18x16x128xf32> to vector<16x16x128xf32>
    %47 = vector.extract_strided_slice %27 {offsets = [0, 2, 0], sizes = [1, 1, 128], strides = [1, 1, 1]} : vector<3x3x128xf32> to vector<1x1x128xf32>
    %48 = vector.shape_cast %47 : vector<1x1x128xf32> to vector<128xf32>
    %49 = vector.shape_cast %48 : vector<128xf32> to vector<1x1x128xf32>
    %50 = vector.broadcast %49 : vector<1x1x128xf32> to vector<16x16x128xf32>
    %51 = arith.mulf %46, %50 : vector<16x16x128xf32>
    %52 = arith.addf %45, %51 : vector<16x16x128xf32>
    %53 = vector.extract_strided_slice %28 {offsets = [1, 0, 0], sizes = [16, 16, 128], strides = [1, 1, 1]} : vector<18x16x128xf32> to vector<16x16x128xf32>
    %54 = vector.extract_strided_slice %27 {offsets = [1, 0, 0], sizes = [1, 1, 128], strides = [1, 1, 1]} : vector<3x3x128xf32> to vector<1x1x128xf32>
    %55 = vector.shape_cast %54 : vector<1x1x128xf32> to vector<128xf32>
    %56 = vector.shape_cast %55 : vector<128xf32> to vector<1x1x128xf32>
    %57 = vector.broadcast %56 : vector<1x1x128xf32> to vector<16x16x128xf32>
    %58 = arith.mulf %53, %57 : vector<16x16x128xf32>
    %59 = arith.addf %52, %58 : vector<16x16x128xf32>
    %60 = vector.extract_strided_slice %29 {offsets = [1, 0, 0], sizes = [16, 16, 128], strides = [1, 1, 1]} : vector<18x16x128xf32> to vector<16x16x128xf32>
    %61 = vector.extract_strided_slice %27 {offsets = [1, 1, 0], sizes = [1, 1, 128], strides = [1, 1, 1]} : vector<3x3x128xf32> to vector<1x1x128xf32>
    %62 = vector.shape_cast %61 : vector<1x1x128xf32> to vector<128xf32>
    %63 = vector.shape_cast %62 : vector<128xf32> to vector<1x1x128xf32>
    %64 = vector.broadcast %63 : vector<1x1x128xf32> to vector<16x16x128xf32>
    %65 = arith.mulf %60, %64 : vector<16x16x128xf32>
    %66 = arith.addf %59, %65 : vector<16x16x128xf32>
    %67 = vector.extract_strided_slice %30 {offsets = [1, 0, 0], sizes = [16, 16, 128], strides = [1, 1, 1]} : vector<18x16x128xf32> to vector<16x16x128xf32>
    %68 = vector.extract_strided_slice %27 {offsets = [1, 2, 0], sizes = [1, 1, 128], strides = [1, 1, 1]} : vector<3x3x128xf32> to vector<1x1x128xf32>
    %69 = vector.shape_cast %68 : vector<1x1x128xf32> to vector<128xf32>
    %70 = vector.shape_cast %69 : vector<128xf32> to vector<1x1x128xf32>
    %71 = vector.broadcast %70 : vector<1x1x128xf32> to vector<16x16x128xf32>
    %72 = arith.mulf %67, %71 : vector<16x16x128xf32>
    %73 = arith.addf %66, %72 : vector<16x16x128xf32>
    %74 = vector.extract_strided_slice %28 {offsets = [2, 0, 0], sizes = [16, 16, 128], strides = [1, 1, 1]} : vector<18x16x128xf32> to vector<16x16x128xf32>
    %75 = vector.extract_strided_slice %27 {offsets = [2, 0, 0], sizes = [1, 1, 128], strides = [1, 1, 1]} : vector<3x3x128xf32> to vector<1x1x128xf32>
    %76 = vector.shape_cast %75 : vector<1x1x128xf32> to vector<128xf32>
    %77 = vector.shape_cast %76 : vector<128xf32> to vector<1x1x128xf32>
    %78 = vector.broadcast %77 : vector<1x1x128xf32> to vector<16x16x128xf32>
    %79 = arith.mulf %74, %78 : vector<16x16x128xf32>
    %80 = arith.addf %73, %79 : vector<16x16x128xf32>
    %81 = vector.extract_strided_slice %29 {offsets = [2, 0, 0], sizes = [16, 16, 128], strides = [1, 1, 1]} : vector<18x16x128xf32> to vector<16x16x128xf32>
    %82 = vector.extract_strided_slice %27 {offsets = [2, 1, 0], sizes = [1, 1, 128], strides = [1, 1, 1]} : vector<3x3x128xf32> to vector<1x1x128xf32>
    %83 = vector.shape_cast %82 : vector<1x1x128xf32> to vector<128xf32>
    %84 = vector.shape_cast %83 : vector<128xf32> to vector<1x1x128xf32>
    %85 = vector.broadcast %84 : vector<1x1x128xf32> to vector<16x16x128xf32>
    %86 = arith.mulf %81, %85 : vector<16x16x128xf32>
    %87 = arith.addf %80, %86 : vector<16x16x128xf32>
    %88 = vector.extract_strided_slice %30 {offsets = [2, 0, 0], sizes = [16, 16, 128], strides = [1, 1, 1]} : vector<18x16x128xf32> to vector<16x16x128xf32>
    %89 = vector.extract_strided_slice %27 {offsets = [2, 2, 0], sizes = [1, 1, 128], strides = [1, 1, 1]} : vector<3x3x128xf32> to vector<1x1x128xf32>
    %90 = vector.shape_cast %89 : vector<1x1x128xf32> to vector<128xf32>
    %91 = vector.shape_cast %90 : vector<128xf32> to vector<1x1x128xf32>
    %92 = vector.broadcast %91 : vector<1x1x128xf32> to vector<16x16x128xf32>
    %93 = arith.mulf %88, %92 : vector<16x16x128xf32>
    %94 = arith.addf %87, %93 : vector<16x16x128xf32>
    %95 = vector.shape_cast %94 : vector<16x16x128xf32> to vector<256x128xf32>
    %c0_18 = arith.constant 0 : index
    %c0_19 = arith.constant 0 : index
    %96 = vector.load %arg4[%c0_18, %c0_19] : memref<1x128xf32, #tpu.memory_space<vmem>>, vector<1x128xf32>
    %97 = vector.broadcast %96 : vector<1x128xf32> to vector<256x128xf32>
    %98 = arith.addf %95, %97 : vector<256x128xf32>
    %99 = arith.negf %98 : vector<256x128xf32>
    %100 = math.exp %99 : vector<256x128xf32>
    %cst_20 = arith.constant 1.000000e+00 : f32
    %101 = vector.broadcast %cst_20 : f32 to vector<256x128xf32>
    %102 = arith.addf %101, %100 : vector<256x128xf32>
    %103 = arith.divf %101, %102 : vector<256x128xf32>
    %104 = arith.mulf %98, %103 : vector<256x128xf32>
    %105 = arith.truncf %104 : vector<256x128xf32> to vector<256x128xbf16>
    %c0_21 = arith.constant 0 : index
    %c0_22 = arith.constant 0 : index
    %106 = vector.load %arg5[%c0_21, %c0_22] : memref<128x128xbf16, #tpu.memory_space<vmem>>, vector<128x128xbf16>
    %cst_23 = arith.constant dense<0.000000e+00> : vector<256x128xf32>
    %107 = tpu.matmul %105, %106, %cst_23 {dimension_numbers = #tpu.dot_dimension_numbers<[1], [0], [0], [1], [0, 0, 1, 1], [], []>} : vector<256x128xbf16>, vector<128x128xbf16>, vector<256x128xf32> -> vector<256x128xf32>
    %c0_24 = arith.constant 0 : index
    %c0_25 = arith.constant 0 : index
    %108 = vector.load %arg6[%c0_24, %c0_25] : memref<1x128xf32, #tpu.memory_space<vmem>>, vector<1x128xf32>
    %109 = vector.broadcast %108 : vector<1x128xf32> to vector<256x128xf32>
    %110 = arith.addf %107, %109 : vector<256x128xf32>
    %111 = arith.negf %110 : vector<256x128xf32>
    %112 = math.exp %111 : vector<256x128xf32>
    %cst_26 = arith.constant 1.000000e+00 : f32
    %113 = vector.broadcast %cst_26 : f32 to vector<256x128xf32>
    %114 = arith.addf %113, %112 : vector<256x128xf32>
    %115 = arith.divf %113, %114 : vector<256x128xf32>
    %116 = arith.mulf %110, %115 : vector<256x128xf32>
    %117 = vector.shape_cast %116 : vector<256x128xf32> to vector<16x16x128xf32>
    %c0_27 = arith.constant 0 : index
    %c0_28 = arith.constant 0 : index
    %c0_29 = arith.constant 0 : index
    %c0_30 = arith.constant 0 : index
    %118 = vector.load %arg7[%c0_27, %c0_28, %c0_29, %c0_30] : memref<1x16x16x128xf32, #tpu.memory_space<vmem>>, vector<1x16x16x128xf32>
    %119 = vector.shape_cast %118 : vector<1x16x16x128xf32> to vector<16x16x128xf32>
    %120 = vector.shape_cast %117 : vector<16x16x128xf32> to vector<1x16x16x128xf32>
    tpu.vector_store %arg7[%c0_27, %c0_28, %c0_29, %c0_30], %120 {strides = array<i32>} : memref<1x16x16x128xf32, #tpu.memory_space<vmem>>, vector<1x16x16x128xf32>,
    return
  }
  func.func @transform_1(%arg0: i32, %arg1: i32) -> (i32, i32, i32) {
    %c0_i32 = arith.constant 0 : i32
    %c0_i32_0 = arith.constant 0 : i32
    %c0_i32_1 = arith.constant 0 : i32
    %c0_i32_2 = arith.constant 0 : i32
    return %c0_i32, %c0_i32_0, %c0_i32_1 : i32, i32, i32
  }
  func.func @transform_2(%arg0: i32, %arg1: i32) -> (i32, i32) {
    %c0_i32 = arith.constant 0 : i32
    %c0_i32_0 = arith.constant 0 : i32
    %c0_i32_1 = arith.constant 0 : i32
    return %c0_i32, %c0_i32_0 : i32, i32
  }
  func.func @transform_3(%arg0: i32, %arg1: i32) -> (i32, i32) {
    %c0_i32 = arith.constant 0 : i32
    %c0_i32_0 = arith.constant 0 : i32
    %c0_i32_1 = arith.constant 0 : i32
    return %c0_i32, %c0_i32_0 : i32, i32
  }
  func.func @transform_4(%arg0: i32, %arg1: i32) -> (i32, i32) {
    %c0_i32 = arith.constant 0 : i32
    %c0_i32_0 = arith.constant 0 : i32
    %c0_i32_1 = arith.constant 0 : i32
    return %c0_i32, %c0_i32_0 : i32, i32
  }
  func.func @transform_5(%arg0: i32, %arg1: i32) -> (i32, i32, i32, i32) {
    %c0_i32 = arith.constant 0 : i32
    %c0_i32_0 = arith.constant 0 : i32
    %c0_i32_1 = arith.constant 0 : i32
    return %arg1, %arg0, %c0_i32, %c0_i32_0 : i32, i32, i32, i32
  }
}

</mosaic_0001>

<bundles_post_ra>
// kernel: tpu_custom_call.1
= control target key start
LH: loop header
LB: loop body
LE: loop exit
PB: predicated region body
PF: predicated region fallthrough
CT: control target
= control target key end

     0   :  { %6 = vsyncpa [#allocation3], 0  ;;  %s136_s0 = inlined_call_operand.hbm [shape: f32[2,8,128], index: 0, kind: input, shape index: {}]   ;;  %s137_s1 = inlined_call_operand.hbm [shape: f32[2,8,128], index: 1, kind: output, shape index: {}]  }
   0x1   :  { %7 = vsyncpa [#allocation4], 0  ;;  %s98_s6 = smov [#allocation2]   ;;  %s50_s10 = scalar_lea.hbm %s136_s0, 256 }
   0x2   :  { %s13_s7 = sshll.u32 %s98_s6, 4  ;;  %p51_p0 = scmp.ne.s32.totalorder %s136_s0, %s50_s10  ;;  %s14_s7 = int_to_ptr.vmem [resolvable:$true] %s13_s7 }
   0x3   :  { %p54_p1 = scmp.lt.u32.totalorder %s50_s10, %s136_s0 }
   0x5   :  { %p56_p2 = pnand %p54_p1, %p51_p0 }
   0x7   :  { %59 = shalt.err (!%p56_p2)
}
   0x8   :  { %s60_s15 = scalar_lea.vmem %s14_s7, 256  ;;  %p65_p4 = scmp.lt.s32.totalorder %s14_s7, %s14_s7 }
   0x9   :  { %p61_p3 = scmp.ne.s32.totalorder %s14_s7, %s60_s15  ;;  %p66_p5 = scmp.lt.s32.totalorder %s60_s15, %s60_s15 }
   0xb   :  { %p67_p6 = por %p66_p5, %p65_p4 }
   0xd   :  { %p68_p7 = pnand %p67_p6, %p61_p3 }
   0xf   :  { %71 = shalt.err (!%p68_p7)
}
  0x10   :  { %s99_s16 = smov 128   ;;  %s100_s17 = smov 8  }
  0x11   :  { %19 = dma.hbm_to_vmem [thread:$0]  %s136_s0, 256, %s14_s7, [#allocation3], %s99_s16, %s99_s16, %s100_s17  }
  0x12   :  { %94 = dma.done.wait [#allocation3], 256  }
  0x13   :  { %95 = vsyncadd [#allocation3], 4294967040  ;;  %s101_s20 = smov [#allocation5]   ;;  %v23_v0 = vld [vmem:[#allocation2] sm:$0xff]  ;;  %v24_v1 = vld [vmem:[#allocation2 + $0x8] sm:$0xff] }
  0x14   :  { %s34_s21 = sshll.u32 %s101_s20, 4  ;;  %v25_v2 = vrot.slane %v23_v0, 7  ;;  %v26_v3 = vrot.slane %v24_v1, 7  ;;  %s35_s21 = int_to_ptr.vmem [resolvable:$true] %s34_s21 }
  0x15   :  { %s72_s22 = scalar_lea.vmem %s35_s21, 256  ;;  %p77_p9 = scmp.lt.s32.totalorder %s35_s21, %s35_s21 }
  0x16   :  { %27 = vst [vmem:[#allocation5] sm:$0xff] %v25_v2  ;;  %28 = vst [vmem:[#allocation5 + $0x8] sm:$0xff] %v26_v3  ;;  %p73_p8 = scmp.ne.s32.totalorder %s35_s21, %s72_s22  ;;  %p78_p10 = scmp.lt.s32.totalorder %s72_s22, %s72_s22 }
  0x18   :  { %p79_p11 = por %p78_p10, %p77_p9 }
  0x1a   :  { %p80_p12 = pnand %p79_p11, %p73_p8 }
  0x1c   :  { %83 = shalt.err (!%p80_p12)
}
  0x1d   :  { %s84_s24 = scalar_lea.hbm %s137_s1, 256 }
  0x1e   :  { %p85_p13 = scmp.ne.s32.totalorder %s137_s1, %s84_s24  ;;  %p88_p0 = scmp.lt.u32.totalorder %s84_s24, %s137_s1 }
  0x20   :  { %p90_p1 = pnand %p88_p0, %p85_p13 }
  0x22   :  { %93 = shalt.err (!%p90_p1)
}
  0x23   :  { %40 = dma.vmem_to_hbm [thread:$0]  %s35_s21, 256, %s137_s1, [#allocation4], %s99_s16, %s99_s16, %s100_s17  }
  0x24   :  { %96 = dma.done.wait [#allocation4], 256  }
  0x25   :  { %97 = vsyncadd [#allocation4], 4294967040 }
  0x26   :  { %44 = vsyncpa [#allocation3], 1 }
  0x27   :  { %45 = vsyncpa [#allocation4], 1 }

// kernel: tpu_custom_call.1
= control target key start
LH: loop header
LB: loop body
LE: loop exit
PB: predicated region body
PF: predicated region fallthrough
CT: control target
= control target key end

     0   :  { %s5369_s0 = inlined_call_operand.hbm [shape: f32[2,18,24,128], index: 0, kind: input, shape index: {}]   ;;  %s5370_s1 = inlined_call_operand.hbm [shape: f32[3,3,128], index: 1, kind: input, shape index: {}]   ;;  %s5371_s2 = inlined_call_operand.vmem [shape: f32[1,128], index: 2, kind: input, shape index: {}]   ;;  %s5372_s3 = inlined_call_operand.hbm [shape: bf16[128,128], index: 3, kind: input, shape index: {}]   ;;  %s5373_s4 = inlined_call_operand.vmem [shape: f32[1,128], index: 4, kind: input, shape index: {}]   ;;  %s5374_s5 = inlined_call_operand.hbm [shape: f32[2,16,16,128], index: 5, kind: output, shape index: {}]  }
   0x1   :  { %5383 = sst [smem:[#allocation21_spill]] %s5370_s1 }
   0x2   :  { %5384 = sst [smem:[#allocation22_spill]] %s5372_s3 }
   0x3   :  { %10 = vsyncpa [#allocation5], 0 }
   0x4   :  { %11 = vsyncpa [#allocation8], 0 }
   0x5   :  { %12 = vsyncpa [#allocation6], 0 }
   0x6   :  { %14 = vsyncpa [#allocation6 + $0x1], 0  ;;  %s3690_s18 = smov 0   ;;  %s3692_s19 = smov 0  }
   0x7   :  { %s3694_s20 = smov 0   ;;  %s3696_s21 = smov 0  }
   0x8   :  { %s3698_s22 = smov 0   ;;  %s3700_s23 = smov 0  }
   0x9 LB: > { %s2907_s24 = sadd.s32 4294967295, %s3650_s23   ;;  %s2908_s25 = sadd.s32 4294967294, %s3650_s23   ;;  %s3650_s23 = sphi %s3700_s23, %s20_s23   ;;  %s3646_s22 = sphi %s3698_s22, %s5406_s22   ;;  %s3642_s21 = sphi %s3696_s21, %s5405_s21   ;;  %s3638_s20 = sphi %s3694_s20, %s5404_s20   ;;  %s3634_s19 = sphi %s3692_s19, %s5403_s19   ;;  %s3630_s18 = sphi %s3690_s18, %s5402_s18  }
   0xa   : > { %s29_s26 = sadd.s32 1, %s3646_s22  ;;  %s125_s27 = sadd.s32 1, %s3638_s20 }
   0xb   : > { %p30_p0 = scmp.ge.s32.totalorder %s29_s26, 2  ;;  %p135_p1 = scmp.ne.s32.totalorder %s3638_s20, %s3634_s19 }
   0xc   : > { %p136_p2 = scmp.eq.s32.totalorder %s2907_s24, 1  ;;  %p141_p3 = scmp.ne.s32.totalorder %s3634_s19, %s3630_s18 }
   0xd   : > { %s5408_s26 = smov (%p30_p0, %s29_s26), 0  ;;  %p142_p5 = scmp.eq.s32.totalorder %s2908_s25, 1 }
   0xe   : > { %5385 = sst [smem:[#allocation20_spill]] %s5408_s26  ;;  %p3730_p4 = por %p136_p2, %p135_p1 }
   0xf   : > { %s120_s29 = ssub.s32 %s3646_s22, %s5408_s26  ;;  %p2909_p6 = scmp.ge.s32.totalorder %s3650_s23, 1 }
  0x10   : > { %s5386_s28 = scalar_select %p3730_p4, 1, 0 }
  0x11   : > { %p123_p7 = scmp.eq.s32.totalorder %s120_s29, 0  ;;  %p3737_p8 = por %p142_p5, %p141_p3 }
  0x12   : > { %p149_p9 = scmp.lt.s32.totalorder %s3650_s23, 3  ;;  %p3749_p11 = scmp.eq.s32.totalorder %s2907_s24, 0 }
  0x13   : > { %s5387_s30 = scalar_select %p3737_p8, 1, 0 }
  0x14   : > { %s3743_s6 = scalar_select %p123_p7, %s3638_s20, %s125_s27  }
  0x15   : > { %p3745_p10 = pnand %p2909_p6, %p149_p9  ;;  %s3652_s9 = smov [#allocation4]  }
  0x16   : > { %s5389_s8 = scalar_select %p3749_p11, 1, 0 }
  0x17   : > { %s5388_s7 = scalar_select %p3745_p10, 1, 0 }
  0x18   : > { %p3106_p12 = pneg %p3745_p10  ;;  %s161_s10 = sshll.u32 %s3652_s9, 4  ;;  %s162_s10 = int_to_ptr.vmem [resolvable:$true] %s161_s10 }
  0x19   : > { %s3653_s12 = smov [#allocation7]   ;;  %s5391_s1 = sld [smem:[#allocation21_spill]] }
  0x1a   : > { %p3757_p13 = pnand %p3749_p11, %p3106_p12  ;;  %s177_s13 = sshll.u32 %s3653_s12, 4  ;;  %s3761_s13 = int_to_ptr.vmem [resolvable:$true] %s177_s13 }
  0x1c   : > { %p3453_p1 = pneg %p3757_p13 }
  0x1f   : > { %s3451_s16 = scalar_lea.hbm %s5391_s1, 192 }
  0x20   : > { %p3452_p0 = scmp.ne.s32.totalorder %s5391_s1, %s3451_s16  ;;  %p3458_p5 = scmp.lt.u32.totalorder %s3451_s16, %s5391_s1 }
  0x22   : > { %p3454_p2 = pnand %p3453_p1, %p3452_p0 }
  0x24   : > { %p3455_p3 = pneg %p3454_p2 }
  0x26   : > { %p3460_p6 = pnand %p3458_p5, %p3455_p3 }
  0x28   : > { %3463 = shalt.err (!%p3460_p6)
}
  0x29   : > { %s3464_s29 = scalar_lea.vmem %s162_s10, 192  ;;  %p3472_p8 = scmp.lt.s32.totalorder %s162_s10, %s162_s10 }
  0x2a   : > { %p3465_p7 = scmp.ne.s32.totalorder %s162_s10, %s3464_s29  ;;  %p3473_p4 = scmp.lt.s32.totalorder %s3464_s29, %s3464_s29 }
  0x2c   : > { %p3467_p9 = pnand %p3465_p7, %p3453_p1  ;;  %p3474_p11 = por %p3473_p4, %p3472_p8 }
  0x2e   : > { %p3468_p12 = pneg %p3467_p9 }
  0x30   : > { %p3475_p10 = pnand %p3474_p11, %p3468_p12 }
  0x32   : > { %3478 = shalt.err (!%p3475_p10)
}
  0x33   : > { %s3654_s9 = smov 64   ;;  %s3655_s12 = smov 4  }
  0x34   : > { %3109 = dma.hbm_to_vmem [thread:$0]  (!%p3757_p13), %s5391_s1, 192, %s162_s10, [#allocation5], %s3654_s9, %s3654_s9, %s3655_s12  }
  0x35   : > { %s5392_s3 = sld [smem:[#allocation22_spill]] }
  0x3b   : > { %s3479_s24 = scalar_lea.hbm %s5392_s3, 1024 }
  0x3c   : > { %p3480_p0 = scmp.ne.s32.totalorder %s5392_s3, %s3479_s24  ;;  %p3486_p10 = scmp.lt.u32.totalorder %s3479_s24, %s5392_s3 }
  0x3e   : > { %p3482_p4 = pnand %p3480_p0, %p3453_p1 }
  0x40   : > { %p3483_p8 = pneg %p3482_p4 }
  0x42   : > { %p3488_p11 = pnand %p3486_p10, %p3483_p8 }
  0x44   : > { %3491 = shalt.err (!%p3488_p11)
}
  0x45   : > { %s3492_s10 = scalar_lea.vmem %s3761_s13, 1024  ;;  %p3500_p6 = scmp.lt.s32.totalorder %s3761_s13, %s3761_s13 }
  0x46   : > { %p3493_p2 = scmp.ne.s32.totalorder %s3761_s13, %s3492_s10  ;;  %p3501_p7 = scmp.lt.s32.totalorder %s3492_s10, %s3492_s10 }
  0x48   : > { %p3495_p3 = pnand %p3493_p2, %p3453_p1  ;;  %p3502_p9 = por %p3501_p7, %p3500_p6 }
  0x4a   : > { %p3496_p5 = pneg %p3495_p3 }
  0x4c   : > { %p3503_p12 = pnand %p3502_p9, %p3496_p5 }
  0x4e   : > { %3506 = shalt.err (!%p3503_p12)
}
  0x4f   : > { %3112 = dma.hbm_to_vmem [thread:$0]  (!%p3757_p13), %s5392_s3, 1024, %s3761_s13, [#allocation8], %s3654_s9, %s3654_s9, %s3655_s12  }
  0x50   : > { %p5393_p0 = scmp.ne.s32.totalorder %s5388_s7, 0 }
  0x51   : > { %p5394_p4 = scmp.ne.s32.totalorder (!%p5393_p0), %s5389_s8, 0 }
  0x52   : > { %196 = sbr.rel (%p5393_p0) target bundleno = 783 (0x30f), region = 36 }
  0x59   : > { %3615 = dma.done.wait (%p5394_p4), [#allocation5], 192  }
  0x5a   : > { %3617 = vsyncadd (%p5394_p4), [#allocation5], 4294967104 }
  0x5b   : > { %3619 = dma.done.wait (%p5394_p4), [#allocation8], 1024  }
  0x5c   : > { %3621 = vsyncadd (%p5394_p4), [#allocation8], 4294966272  ;;  %s5380_s7 = sand.u32 1, %s3634_s19   ;;  %p3121_p13 = scmp.eq.s32.totalorder %s3642_s21, 0 }
  0x5d   : > { %s3823_s11 = sshll.u32 %s5380_s7, 8  ;;  %s3656_s13 = smov [#allocation2]  }
  0x5e   : > { %s250_s9 = sshll.u32 %s3656_s13, 4  ;;  %p224_p1 = scmp.lt.s32.totalorder %s3642_s21, 0  ;;  %s3827_s9 = int_to_ptr.vmem [resolvable:$true] %s250_s9 }
  0x5f   : > { %s225_s12 = ssub.s32 0, %s3642_s21  ;;  %s3507_s16 = scalar_lea.hbm %s5369_s0, 6912 }
  0x60   : > { %p3508_p8 = scmp.ne.s32.totalorder %s5369_s0, %s3507_s16  ;;  %s5382_s29 = scalar_lea.hbm %s5369_s0, 13824 }
  0x61   : > { %p3512_p2 = scmp.lt.u32.totalorder %s5382_s29, %s3507_s16  ;;  %p3513_p3 = scmp.lt.u32.totalorder %s3507_s16, %s5369_s0 }
  0x62   : > { %p3509_p10 = pnand %p3508_p8, %p3121_p13 }
  0x63   : > { %p3514_p5 = por %p3513_p3, %p3512_p2 }
  0x64   : > { %p3510_p11 = pneg %p3509_p10 }
  0x66   : > { %p3515_p6 = pnand %p3514_p5, %p3510_p11 }
  0x68   : > { %3518 = shalt.err (!%p3515_p6)  }
  0x69   : > { %s3519_s15 = scalar_lea.vmem %s3827_s9, 6912  ;;  %s5381_s8 = scalar_lea.vmem %s3827_s9, 13824 }
  0x6a   : > { %p3520_p7 = scmp.ne.s32.totalorder %s3827_s9, %s3519_s15  ;;  %p3526_p0 = scmp.lt.s32.totalorder %s3827_s9, %s3827_s9 }
  0x6b   : > { %p3527_p4 = scmp.lt.s32.totalorder %s5381_s8, %s3519_s15 }
  0x6c   : > { %p3521_p9 = pnand %p3520_p7, %p3121_p13 }
  0x6d   : > { %p3528_p8 = por %p3527_p4, %p3526_p0 }
  0x6e   : > { %p3522_p12 = pneg %p3521_p9 }
  0x70   : > { %p3529_p10 = pnand %p3528_p8, %p3522_p12 }
  0x72   : > { %3532 = shalt.err (!%p3529_p10)  }
  0x73   : > { %3101 = dma.hbm_to_vmem [thread:$0]  (%p3121_p13), %s5369_s0, 6912, %s3827_s9, [#allocation3] }
  0x74   : > { %s2916_s24 = smin.u32 %s3642_s21, %s225_s12  ;;  %s254_s25 = sadd.s32 1, %s3642_s21 }
  0x75   : > { %s227_s27 = sand.u32 1, %s2916_s24   ;;  %s2921_s26 = smul.u32 6912, %s3642_s21 }
  0x76   : > { %s228_s10 = ssub.s32 0, %s227_s27  ;;  %p3873_p2 = scmp.lt.s32.totalorder %s254_s25, 2 }
  0x77   : > { %s5410_s10 = smov (!%p224_p1, %s228_s10), %s227_s27  ;;  %s2847_s7 = scalar_lea.hbm %s5369_s0, %s2921_s26 }
  0x78   : > { %p2918_p11 = scmp.lt.s32.totalorder %s5410_s10, 0  ;;  %s234_s14 = sadd.s32 2, %s5410_s10 }
  0x79   : > { %s2848_s24 = scalar_lea.hbm %s2847_s7, 6912  ;;  %s3561_s3 = scalar_lea.hbm %s2847_s7, 13824 }
  0x7a   : > { %s5412_s14 = smov (!%p2918_p11, %s234_s14), %s5410_s10  ;;  %p3534_p13 = scmp.ne.s32.totalorder %s2848_s24, %s3561_s3 }
  0x7b   : > { %s259_s12 = ssub.s32 1, %s5412_s14  ;;  %s279_s17 = smul.u32 432, %s5412_s14 }
  0x7c   : > { %s265_s27 = smul.u32 432, %s259_s12  ;;  %s267_s1 = scalar_lea.sflag [#allocation3], %s259_s12 }
  0x7d   : > { %p3535_p1 = pnand %p3534_p13, %p3873_p2  ;;  %p3538_p5 = scmp.lt.u32.totalorder %s2848_s24, %s5369_s0 }
  0x7e   : > { %s266_s8 = scalar_lea.vmem [#allocation2], %s265_s27  ;;  %s5396_s15 = scalar_lea.hbm %s5369_s0, 13824 }
  0x7f   : > { %s275_s29 = sshll.u32 %s266_s8, 4  ;;  %p3536_p3 = pneg %p3535_p1  ;;  %s276_s29 = int_to_ptr.vmem [resolvable:$true] %s275_s29 }
  0x80   : > { %p3539_p6 = scmp.lt.u32.totalorder %s5396_s15, %s3561_s3  ;;  %p3541_p9 = scmp.lt.u32.totalorder %s3561_s3, %s2848_s24 }
  0x82   : > { %p3540_p7 = por %p3539_p6, %p3538_p5 }
  0x84   : > { %p3542_p12 = por %p3541_p9, %p3540_p7 }
  0x86   : > { %p3543_p0 = pnand %p3542_p12, %p3536_p3 }
  0x88   : > { %3546 = shalt.err (!%p3543_p0)  }
  0x89   : > { %s3547_s8 = scalar_lea.vmem %s276_s29, 6912  ;;  %p3554_p11 = scmp.lt.s32.totalorder %s276_s29, %s3827_s9 }
  0x8a   : > { %p3548_p4 = scmp.ne.s32.totalorder %s276_s29, %s3547_s8  ;;  %s5397_s7 = scalar_lea.vmem %s3827_s9, 13824 }
  0x8b   : > { %p3555_p13 = scmp.lt.s32.totalorder %s5397_s7, %s3547_s8 }
  0x8c   : > { %p3549_p8 = pnand %p3548_p4, %p3873_p2 }
  0x8d   : > { %p3556_p1 = por %p3555_p13, %p3554_p11 }
  0x8e   : > { %p3550_p10 = pneg %p3549_p8 }
  0x90   : > { %p3557_p5 = pnand %p3556_p1, %p3550_p10 }
  0x92   : > { %3560 = shalt.err (!%p3557_p5)  }
  0x93   : > { %3103 = dma.hbm_to_vmem [thread:$0]  (%p3873_p2), %s2848_s24, 6912, %s276_s29, %s267_s1 }
  0x94   : > { %s3896_s3 = scalar_lea.vmem [#allocation9], %s3823_s11  ;;  %s3900_s12 = scalar_lea.vmem [#allocation2], %s279_s17 }
  0x95   : > { %s281_s27 = scalar_lea.sflag [#allocation3], %s5412_s14 }
  0x96   : > { %3622 = dma.done.wait %s281_s27, 6912 }
  0x97   : > { %3623 = vsyncadd %s281_s27, 4294960384  ;;  %v3179_v0 = vld [vmem:[#allocation7] sm:$0xff]   ;;  %v343_v1 = vlaneseq  ;;  %v3180_v2 = vld [vmem:[#allocation7 + $0x8] sm:$0xff]   ;;  %vm511_vm0 = vcmask 1046528   ;;  %vm756_vm1 = vcmask 1045504   ;;  %s3003_s10 = sshll.u32 %s3642_s21, 12 }
  0x98   : > { %3028 = vmatprep.subr.bf16.mxu0 %v3179_v0  ;;  %3076 = vmatprep.subr.bf16.mxu1 %v3179_v0  ;;  %v3181_v3 = vld [vmem:[#allocation7 + $0x10] sm:$0xff]   ;;  %v3182_v5 = vld [vmem:[#allocation7 + $0x18] sm:$0xff]   ;;  %v3183_v14 = vld [vmem:[#allocation7 + $0x20] sm:$0xff]   ;;  %s2797_s26 = sshll.u32 %s3896_s3, 4  ;;  %s5314_s15 = scalar_lea.hbm %s5374_s5, %s3003_s10  ;;  %s5316_s26 = int_to_ptr.vmem [resolvable:$true] %s2797_s26 }
  0x99   : > { %3029 = vmatpush3.bf16.msra.mxu0 %v3179_v0  ;;  %3084 = vmatpush3.bf16.msra.mxu1 %v3179_v0  ;;  %v344_v4 = vshrl.u32 %v343_v1, 7  ;;  %v286_v9 = vld [vmem:[%s3900_s12] sm:$0xff]  ;;  %v287_v10 = vld [vmem:[%s3900_s12 + $0x8] sm:$0xff]  ;;  %v288_v15 = vld [vmem:[%s3900_s12 + $0x10] sm:$0xff]  ;;  %s5398_s21 = sand.u32 1, %s3634_s19   ;;  %s3562_s7 = scalar_lea.vmem %s5316_s26, 4096 }
  0x9a   : > { %3030 = vmatprep.subr.bf16.mxu0 %v3180_v2  ;;  %3077 = vmatprep.subr.bf16.mxu1 %v3180_v2  ;;  %v340_v11 = vld [vmem:[#allocation4] sm:$0x7]  ;;  %v341_v12 = vld [vmem:[#allocation4 + $0x4] sm:$0x7]  ;;  %v3909_v13 = vld [vmem:[#allocation4 + $0x8] sm:$0x7]  ;;  %p3563_p2 = scmp.ne.s32.totalorder %s5316_s26, %s3562_s7 }
  0x9b   : > { %v345_v6 = vsub.s32 0, %v344_v4  ;;  %v3903_v7 = vsub.s32 1, %v344_v4  ;;  %v3905_v8 = vsub.s32 2, %v344_v4  ;;  %v291_v22 = vld [vmem:[%s3900_s12 + $0x28] sm:$0xff]  ;;  %v3941_v35 = vld [vmem:[%s3900_s12 + $0x18] sm:$0xff]  ;;  %v3950_v40 = vld [vmem:[%s3900_s12 + $0x20] sm:$0xff] }
  0x9c   : > { %v3184_v30 = vld [vmem:[#allocation7 + $0x28] sm:$0xff]   ;;  %v3185_v48 = vld [vmem:[#allocation7 + $0x30] sm:$0xff]   ;;  %v3186_v0 = vld [vmem:[#allocation7 + $0x38] sm:$0xff]   ;;  %s5323_s8 = scalar_lea.sflag [#allocation6], %s5398_s21  ;;  %p5399_p3 = scmp.ne.s32.totalorder %s5386_s28, 0 }
  0x9d   : > { %3031 = vmatpush3.bf16.msra.mxu0 %v3180_v2  ;;  %3085 = vmatpush3.bf16.msra.mxu1 %v3180_v2  ;;  %v3912_v16 = vrot.slane %v340_v11, %v345_v6  ;;  %v3915_v17 = vrot.slane %v340_v11, %v3903_v7  ;;  %v3918_v18 = vrot.slane %v340_v11, %v3905_v8  ;;  %v3971_v1 = vld [vmem:[%s3900_s12 + $0x30] sm:$0xff]  ;;  %v3974_v2 = vld [vmem:[%s3900_s12 + $0x38] sm:$0xff] }
  0x9e   : > { %3032 = vmatprep.subr.bf16.mxu0 %v3181_v3  ;;  %3078 = vmatprep.subr.bf16.mxu1 %v3181_v3  ;;  %v3920_v19 = vrot.slane %v341_v12, %v345_v6  ;;  %v3923_v20 = vrot.slane %v341_v12, %v3903_v7  ;;  %v3926_v21 = vrot.slane %v341_v12, %v3905_v8  ;;  %p3564_p6 = pnand %p3563_p2, %p5399_p3 }
  0x9f   : > { %v347_v23 = vmul.f32 %v3912_v16, %v286_v9  ;;  %v415_v24 = vmul.f32 %v3915_v17, %v286_v9  ;;  %v416_v25 = vmul.f32 %v3915_v17, %v287_v10  ;;  %v3933_v26 = vrot.slane %v3909_v13, %v345_v6 }
  0xa0   : > { %v348_v27 = vmul.f32 %v3912_v16, %v287_v10  ;;  %v417_v28 = vmul.f32 %v3915_v17, %v288_v15  ;;  %v660_v29 = vmul.f32 %v3918_v18, %v286_v9  ;;  %v661_v33 = vmul.f32 %v3918_v18, %v287_v10  ;;  %p3565_p7 = pneg %p3564_p6 }
  0xa1   : > { %3033 = vmatpush3.bf16.msra.mxu0 %v3181_v3  ;;  %3086 = vmatpush3.bf16.msra.mxu1 %v3181_v3  ;;  %v512_v31 = vrot.slane %v415_v24, 1  ;;  %v513_v32 = vrot.slane %v416_v25, 1  ;;  %v662_v34 = vmul.f32 %v3918_v18, %v288_v15  ;;  %v3944_v36 = vmul.f32 %v3915_v17, %v291_v22  ;;  %v310_v24 = vld [vmem:[%s3900_s12 + $0xc0] sm:$0xff] }
  0xa2   : > { %3034 = vmatprep.subr.bf16.mxu0 %v3182_v5  ;;  %3079 = vmatprep.subr.bf16.mxu1 %v3182_v5  ;;  %v515_v37 = vrot.slane %v417_v28, 1  ;;  %v3947_v38 = vmul.f32 %v3918_v18, %v291_v22  ;;  %v757_v39 = vrot.slane %v660_v29, 2  ;;  %v758_v42 = vrot.slane %v661_v33, 2  ;;  %v311_v29 = vld [vmem:[%s3900_s12 + $0xc8] sm:$0xff] }
  0xa3   : > { %v514_v41 = vsel %vm511_vm0, %v512_v31, %v513_v32  ;;  %v760_v43 = vrot.slane %v662_v34, 2  ;;  %v905_v44 = vmul.f32 %v3920_v19, %v3941_v35  ;;  %v906_v47 = vmul.f32 %v3920_v19, %v3950_v40  ;;  %v3997_v31 = vld [vmem:[%s3900_s12 + $0x40] sm:$0xff] }
  0xa4   : > { %v516_v45 = vsel %vm511_vm0, %v513_v32, %v515_v37  ;;  %v624_v46 = vadd.f32 %v514_v41, %v347_v23  ;;  %v759_v50 = vsel %vm756_vm1, %v757_v39, %v758_v42  ;;  %v973_v53 = vmul.f32 %v3923_v20, %v3941_v35 }
  0xa5   : > { %3035 = vmatpush3.bf16.msra.mxu0 %v3182_v5  ;;  %3087 = vmatpush3.bf16.msra.mxu1 %v3182_v5  ;;  %v625_v49 = vadd.f32 %v516_v45, %v348_v27  ;;  %v761_v51 = vsel %vm756_vm1, %v758_v42, %v760_v43  ;;  %v974_v54 = vmul.f32 %v3923_v20, %v3950_v40  ;;  %v520_v25 = vrot.slane %v3944_v36, 1  ;;  %v312_v45 = vld [vmem:[%s3900_s12 + $0xd0] sm:$0xff] }
  0xa6   : > { %3036 = vmatprep.subr.bf16.mxu0 %v3183_v14  ;;  %3080 = vmatprep.subr.bf16.mxu1 %v3183_v14  ;;  %v869_v52 = vadd.f32 %v759_v50, %v624_v46  ;;  %v975_v55 = vmul.f32 %v3923_v20, %v291_v22  ;;  %v1217_v57 = vmul.f32 %v3926_v21, %v3941_v35  ;;  %v1069_v61 = vrot.slane %v973_v53, 1 }
  0xa7   : > { %v870_v56 = vadd.f32 %v761_v51, %v625_v49  ;;  %v1218_v58 = vmul.f32 %v3926_v21, %v3950_v40  ;;  %v1219_v59 = vmul.f32 %v3926_v21, %v291_v22  ;;  %v1070_v62 = vrot.slane %v974_v54, 1 }
  0xa8   : > { %v937_v60 = vadd.f32 %v905_v44, %v869_v52  ;;  %v1072_v63 = vrot.slane %v975_v55, 1  ;;  %v1313_v4 = vrot.slane %v1217_v57, 2  ;;  %v1461_v11 = vmul.f32 %v3933_v26, %v3971_v1 }
  0xa9   : > { %3037 = vmatpush3.bf16.msra.mxu0 %v3183_v14  ;;  %3088 = vmatpush3.bf16.msra.mxu1 %v3183_v14  ;;  %v938_v3 = vadd.f32 %v906_v47, %v870_v56  ;;  %v1314_v5 = vrot.slane %v1218_v58, 2  ;;  %v1316_v6 = vrot.slane %v1219_v59, 2  ;;  %v1071_v9 = vsel %vm511_vm0, %v1069_v61, %v1070_v62 }
  0xaa   : > { %3038 = vmatprep.subr.bf16.mxu0 %v3184_v30  ;;  %3081 = vmatprep.subr.bf16.mxu1 %v3184_v30  ;;  %v1073_v10 = vsel %vm511_vm0, %v1070_v62, %v1072_v63  ;;  %v1462_v12 = vmul.f32 %v3933_v26, %v3974_v2  ;;  %v1181_v14 = vadd.f32 %v1071_v9, %v937_v60  ;;  %v765_v32 = vrot.slane %v3947_v38, 2  ;;  %v4025_v62 = vld [vmem:[%s5371_s2] ss:$0 sm:$0xff]  ;;  %v4029_v9 = vld [vmem:[%s3900_s12 + $0xd8] sm:$0xff] }
  0xab   : > { %v1182_v15 = vadd.f32 %v1073_v10, %v938_v3  ;;  %v1315_v22 = vsel %vm756_vm1, %v1313_v4, %v1314_v5  ;;  %v1317_v23 = vsel %vm756_vm1, %v1314_v5, %v1316_v6  ;;  %v3988_v27 = vrot.slane %v3909_v13, %v3903_v7 }
  0xac   : > { %v3992_v28 = vrot.slane %v3909_v13, %v3905_v8  ;;  %v1425_v33 = vadd.f32 %v1315_v22, %v1181_v14  ;;  %v364_v37 = vmul.f32 %v3912_v16, %v311_v29  ;;  %v439_v52 = vmul.f32 %v3915_v17, %v310_v24 }
  0xad   : > { %3039 = vmatpush3.bf16.msra.mxu0 %v3184_v30  ;;  %3089 = vmatpush3.bf16.msra.mxu1 %v3184_v30  ;;  %v363_v30 = vmul.f32 %v3912_v16, %v310_v24  ;;  %v1426_v34 = vadd.f32 %v1317_v23, %v1182_v15  ;;  %v1529_v7 = vmul.f32 %v3988_v27, %v3971_v1 }
  0xae   : > { %3040 = vmatprep.subr.bf16.mxu0 %v3185_v48  ;;  %3082 = vmatprep.subr.bf16.mxu1 %v3185_v48  ;;  %v1530_v8 = vmul.f32 %v3988_v27, %v3974_v2  ;;  %v1531_v13 = vmul.f32 %v3988_v27, %v3997_v31  ;;  %v1773_v39 = vmul.f32 %v3992_v28, %v3971_v1  ;;  %v552_v63 = vrot.slane %v439_v52, 1 }
  0xaf   : > { %v1493_v41 = vadd.f32 %v1461_v11, %v1425_v33  ;;  %v1494_v42 = vadd.f32 %v1462_v12, %v1426_v34  ;;  %v1774_v43 = vmul.f32 %v3992_v28, %v3974_v2  ;;  %v1775_v44 = vmul.f32 %v3992_v28, %v3997_v31 }
  0xb0   : > { %v1625_v46 = vrot.slane %v1529_v7, 1  ;;  %v1626_v47 = vrot.slane %v1530_v8, 1  ;;  %v1869_v49 = vrot.slane %v1773_v39, 2  ;;  %v440_v53 = vmul.f32 %v3915_v17, %v311_v29 }
  0xb1   : > { %3041 = vmatpush3.bf16.msra.mxu0 %v3185_v48  ;;  %3090 = vmatpush3.bf16.msra.mxu1 %v3185_v48  ;;  %v1628_v48 = vrot.slane %v1531_v13, 1  ;;  %v1870_v50 = vrot.slane %v1774_v43, 2  ;;  %v1872_v51 = vrot.slane %v1775_v44, 2  ;;  %v441_v56 = vmul.f32 %v3915_v17, %v312_v45  ;;  %v4053_v43 = vld [vmem:[%s3900_s12 + $0xe8] sm:$0xff] }
  0xb2   : > { %3042 = vmatprep.subr.bf16.mxu0 %v3186_v0  ;;  %3083 = vmatprep.subr.bf16.mxu1 %v3186_v0  ;;  %v1627_v54 = vsel %vm511_vm0, %v1625_v46, %v1626_v47  ;;  %v684_v57 = vmul.f32 %v3918_v18, %v310_v24  ;;  %v685_v4 = vmul.f32 %v3918_v18, %v311_v29  ;;  %v4043_v29 = vld [vmem:[%s3900_s12 + $0xe0] sm:$0xff] }
  0xb3   : > { %v1629_v55 = vsel %vm511_vm0, %v1626_v47, %v1628_v48  ;;  %v1737_v58 = vadd.f32 %v1627_v54, %v1493_v41  ;;  %v1871_v60 = vsel %vm756_vm1, %v1869_v49, %v1870_v50  ;;  %v1873_v61 = vsel %vm756_vm1, %v1870_v50, %v1872_v51  ;;  %v4063_v51 = vld [vmem:[%s3900_s12 + $0xf0] sm:$0xff] }
  0xb4   : > { %v1738_v59 = vadd.f32 %v1629_v55, %v1494_v42  ;;  %v555_v3 = vrot.slane %v441_v56, 1  ;;  %v686_v10 = vmul.f32 %v3918_v18, %v312_v45  ;;  %v797_v11 = vrot.slane %v684_v57, 2 }
  0xb5   : > { %3043 = vmatpush3.bf16.msra.mxu0 %v3186_v0  ;;  %3091 = vmatpush3.bf16.msra.mxu1 %v3186_v0  ;;  %v553_v0 = vrot.slane %v440_v53, 1  ;;  %v1981_v5 = vadd.f32 %v1871_v60, %v1737_v58  ;;  %v798_v15 = vrot.slane %v685_v4, 2  ;;  %v921_v22 = vmul.f32 %v3920_v19, %v4029_v9 }
  0xb6   : > { %v1982_v6 = vadd.f32 %v1873_v61, %v1738_v59  ;;  %v800_v8 = vrot.slane %v686_v10, 2  ;;  %v922_v13 = vmul.f32 %v3920_v19, %v4043_v29  ;;  %v997_v39 = vmul.f32 %v3923_v20, %v4029_v9  ;;  %v4073_v59 = vld [vmem:[%s3900_s12 + $0xf8] sm:$0xff] }
  0xb7   : > { %v554_v12 = vsel %vm511_vm0, %v552_v63, %v553_v0  ;;  %v556_v14 = vsel %vm511_vm0, %v553_v0, %v555_v3  ;;  %v4037_v23 = vadd.f32 %v4025_v62, %v1981_v5  ;;  %v799_v7 = vsel %vm756_vm1, %v797_v11, %v798_v15  ;;  %v4077_v3 = vld [vmem:[%s3900_s12 + $0x100] sm:$0xff] }
  0xb8   : > { %v4040_v24 = vadd.f32 %v4025_v62, %v1982_v6  ;;  %v640_v33 = vadd.f32 %v554_v12, %v363_v30  ;;  %v641_v34 = vadd.f32 %v556_v14, %v364_v37  ;;  %v998_v30 = vmul.f32 %v3923_v20, %v4043_v29 }
  0xb9   : > { %v2923_v41 = vmul.f32 -1.442695, %v4037_v23  ;;  %v801_v37 = vsel %vm756_vm1, %v798_v15, %v800_v8  ;;  %v999_v45 = vmul.f32 %v3923_v20, %v4053_v43  ;;  %v1109_v46 = vrot.slane %v997_v39, 1 }
  0xba   : > { %v2924_v42 = vmul.f32 -1.442695, %v4040_v24  ;;  %v885_v44 = vadd.f32 %v799_v7, %v640_v33  ;;  %v1241_v47 = vmul.f32 %v3926_v21, %v4029_v9  ;;  %v886_v48 = vadd.f32 %v801_v37, %v641_v34 }
  0xbb   : > { %3187 = vpow2.f32 %v2923_v41  ;;  %v1110_v50 = vrot.slane %v998_v30, 1  ;;  %v1112_v52 = vrot.slane %v999_v45, 1  ;;  %v1242_v53 = vmul.f32 %v3926_v21, %v4043_v29 }
  0xbc   : > { %v953_v49 = vadd.f32 %v921_v22, %v885_v44  ;;  %3189 = vpow2.f32 %v2924_v42  ;;  %v1243_v54 = vmul.f32 %v3926_v21, %v4053_v43  ;;  %v954_v55 = vadd.f32 %v922_v13, %v886_v48 }
  0xbd   : > { %v1111_v56 = vsel %vm511_vm0, %v1109_v46, %v1110_v50  ;;  %v1353_v57 = vrot.slane %v1241_v47, 2  ;;  %v1477_v58 = vmul.f32 %v3933_v26, %v4063_v51  ;;  %v1113_v60 = vsel %vm511_vm0, %v1110_v50, %v1112_v52 }
  0xbe   : > { %v1197_v61 = vadd.f32 %v1111_v56, %v953_v49  ;;  %v1354_v63 = vrot.slane %v1242_v53, 2  ;;  %v1356_v0 = vrot.slane %v1243_v54, 2  ;;  %v1198_v4 = vadd.f32 %v1113_v60, %v954_v55 }
  0xbf   : > { %v1478_v5 = vmul.f32 %v3933_v26, %v4073_v59  ;;  %v1553_v6 = vmul.f32 %v3988_v27, %v4063_v51  ;;  %v1554_v10 = vmul.f32 %v3988_v27, %v4073_v59  ;;  %v1555_v14 = vmul.f32 %v3988_v27, %v4077_v3 }
  0xc0   : > { %v1355_v11 = vsel %vm756_vm1, %v1353_v57, %v1354_v63  ;;  %v1357_v12 = vsel %vm756_vm1, %v1354_v63, %v1356_v0  ;;  %v1797_v15 = vmul.f32 %v3992_v28, %v4063_v51  ;;  %v1798_v13 = vmul.f32 %v3992_v28, %v4073_v59 }
  0xc1   : > { %v1441_v22 = vadd.f32 %v1355_v11, %v1197_v61  ;;  %v1442_v33 = vadd.f32 %v1357_v12, %v1198_v4  ;;  %v1665_v34 = vrot.slane %v1553_v6, 1  ;;  %v1666_v7 = vrot.slane %v1554_v10, 1 }
  0xc2   : > { %v1668_v8 = vrot.slane %v1555_v14, 1  ;;  %v1799_v39 = vmul.f32 %v3992_v28, %v4077_v3  ;;  %v1909_v41 = vrot.slane %v1797_v15, 2  ;;  %v349_v37 = vmul.f32 %v3912_v16, %v3941_v35 }
  0xc3   : > { %v1509_v42 = vadd.f32 %v1477_v58, %v1441_v22  ;;  %v1510_v44 = vadd.f32 %v1478_v5, %v1442_v33  ;;  %v1667_v30 = vsel %vm511_vm0, %v1665_v34, %v1666_v7  ;;  %v1910_v46 = vrot.slane %v1798_v13, 2 }
  0xc4   : > { %v1669_v45 = vsel %vm511_vm0, %v1666_v7, %v1668_v8  ;;  %v1912_v47 = vrot.slane %v1799_v39, 2  ;;  %v350_v48 = vmul.f32 %v3912_v16, %v3950_v40  ;;  %v418_v53 = vmul.f32 %v3915_v17, %v3941_v35 }
  0xc5   : > { %v3188_v49 = vpop.eup %3187  ;;  %v1753_v50 = vadd.f32 %v1667_v30, %v1509_v42  ;;  %v1754_v52 = vadd.f32 %v1669_v45, %v1510_v44  ;;  %v419_v54 = vmul.f32 %v3915_v17, %v3950_v40  ;;  %v1911_v57 = vsel %vm756_vm1, %v1909_v41, %v1910_v46 }
  0xc6   : > { %v3190_v55 = vpop.eup %3189  ;;  %v2148_v56 = vadd.f32 1.0, %v3188_v49  ;;  %v1913_v58 = vsel %vm756_vm1, %v1910_v46, %v1912_v47  ;;  %v663_v60 = vmul.f32 %v3918_v18, %v3941_v35  ;;  %v517_v4 = vrot.slane %v418_v53, 1  ;;  %v4145_v49 = vld [vmem:[%s3900_s12 + $0x50] sm:$0xff] }
  0xc7   : > { %v2149_v61 = vadd.f32 1.0, %v3190_v55  ;;  %v1997_v63 = vadd.f32 %v1911_v57, %v1753_v50  ;;  %v1998_v0 = vadd.f32 %v1913_v58, %v1754_v52  ;;  %v518_v5 = vrot.slane %v419_v54, 1 }
  0xc8   : > { %3191 = vrcp.f32 %v2148_v56  ;;  %v664_v6 = vmul.f32 %v3918_v18, %v3950_v40  ;;  %v762_v10 = vrot.slane %v663_v60, 2  ;;  %v907_v35 = vmul.f32 %v3920_v19, %v3971_v1 }
  0xc9   : > { %3193 = vrcp.f32 %v2149_v61  ;;  %v4112_v11 = vadd.f32 %v4025_v62, %v1997_v63  ;;  %v4115_v12 = vadd.f32 %v4025_v62, %v1998_v0  ;;  %v519_v14 = vsel %vm511_vm0, %v517_v4, %v518_v5  ;;  %v4156_v61 = vld [vmem:[%s3900_s12 + $0x58] sm:$0xff] }
  0xca   : > { %v521_v15 = vsel %vm511_vm0, %v518_v5, %v520_v25  ;;  %v763_v22 = vrot.slane %v664_v6, 2  ;;  %v908_v40 = vmul.f32 %v3920_v19, %v3974_v2  ;;  %v626_v7 = vadd.f32 %v519_v14, %v349_v37 }
  0xcb   : > { %v2939_v33 = vmul.f32 -1.442695, %v4112_v11  ;;  %v2940_v34 = vmul.f32 -1.442695, %v4115_v12  ;;  %v627_v8 = vadd.f32 %v521_v15, %v350_v48  ;;  %v976_v36 = vmul.f32 %v3923_v20, %v3971_v1 }
  0xcc   : > { %v764_v13 = vsel %vm756_vm1, %v762_v10, %v763_v22  ;;  %v766_v39 = vsel %vm756_vm1, %v763_v22, %v765_v32  ;;  %v977_v25 = vmul.f32 %v3923_v20, %v3974_v2  ;;  %v978_v44 = vmul.f32 %v3923_v20, %v3997_v31  ;;  %v4140_v32 = vld [vmem:[%s3900_s12 + $0x48] sm:$0xff] }
  0xcd   : > { %3195 = vpow2.f32 %v2939_v33  ;;  %v871_v41 = vadd.f32 %v764_v13, %v626_v7  ;;  %v872_v42 = vadd.f32 %v766_v39, %v627_v8  ;;  %v1074_v30 = vrot.slane %v976_v36, 1 }
  0xce   : > { %3197 = vpow2.f32 %v2940_v34  ;;  %v1075_v37 = vrot.slane %v977_v25, 1  ;;  %v1220_v38 = vmul.f32 %v3926_v21, %v3971_v1  ;;  %v1077_v47 = vrot.slane %v978_v44, 1 }
  0xcf   : > { %v939_v45 = vadd.f32 %v907_v35, %v871_v41  ;;  %v940_v46 = vadd.f32 %v908_v40, %v872_v42  ;;  %v1221_v48 = vmul.f32 %v3926_v21, %v3974_v2  ;;  %v1222_v52 = vmul.f32 %v3926_v21, %v3997_v31 }
  0xd0   : > { %v1076_v50 = vsel %vm511_vm0, %v1074_v30, %v1075_v37  ;;  %v1318_v53 = vrot.slane %v1220_v38, 2  ;;  %v1463_v54 = vmul.f32 %v3933_v26, %v4140_v32  ;;  %v1078_v55 = vsel %vm511_vm0, %v1075_v37, %v1077_v47 }
  0xd1   : > { %v1183_v56 = vadd.f32 %v1076_v50, %v939_v45  ;;  %v1319_v57 = vrot.slane %v1221_v48, 2  ;;  %v1464_v58 = vmul.f32 %v3933_v26, %v4145_v49  ;;  %v1184_v63 = vadd.f32 %v1078_v55, %v940_v46 }
  0xd2   : > { %v3192_v60 = vpop.eup %3191  ;;  %v1321_v0 = vrot.slane %v1222_v52, 2  ;;  %v1532_v4 = vmul.f32 %v3988_v27, %v4140_v32  ;;  %v1533_v5 = vmul.f32 %v3988_v27, %v4145_v49  ;;  %v1534_v14 = vmul.f32 %v3988_v27, %v4156_v61 }
  0xd3   : > { %v3194_v6 = vpop.eup %3193  ;;  %v2244_v10 = vmul.f32 %v3192_v60, %v4037_v23  ;;  %v1320_v35 = vsel %vm756_vm1, %v1318_v53, %v1319_v57  ;;  %v1776_v15 = vmul.f32 %v3992_v28, %v4140_v32  ;;  %v1777_v23 = vmul.f32 %v3992_v28, %v4145_v49 }
  0xd4   : > { %v2245_v22 = vmul.f32 %v3194_v6, %v4040_v24  ;;  %v1322_v40 = vsel %vm756_vm1, %v1319_v57, %v1321_v0  ;;  %v1427_v33 = vadd.f32 %v1320_v35, %v1183_v56  ;;  %v1630_v34 = vrot.slane %v1532_v4, 1 }
  0xd5   : > { %v1428_v7 = vadd.f32 %v1322_v40, %v1184_v63  ;;  %v1631_v8 = vrot.slane %v1533_v5, 1  ;;  %v1633_v13 = vrot.slane %v1534_v14, 1  ;;  %v1778_v25 = vmul.f32 %v3992_v28, %v4156_v61 }
  0xd6   : > { %v2276_v39 = vpack.c.bf16 %v2245_v22, %v2244_v10  ;;  %v1495_v36 = vadd.f32 %v1463_v54, %v1427_v33  ;;  %v1874_v41 = vrot.slane %v1776_v15, 2  ;;  %v1875_v37 = vrot.slane %v1777_v23, 2 }
  0xd7   : > { %v3196_v42 = vpop.eup %3195  ;;  %v1496_v44 = vadd.f32 %v1464_v58, %v1428_v7  ;;  %v1632_v24 = vsel %vm511_vm0, %v1630_v34, %v1631_v8  ;;  %v1634_v30 = vsel %vm511_vm0, %v1631_v8, %v1633_v13  ;;  %v1877_v47 = vrot.slane %v1778_v25, 2 }
  0xd8   : > { %v3198_v38 = vpop.eup %3197  ;;  %3044 = vmatprep.mubr.bf16.mxu0 %v2276_v39  ;;  %v2164_v45 = vadd.f32 1.0, %v3196_v42  ;;  %v1739_v46 = vadd.f32 %v1632_v24, %v1495_v36  ;;  %v365_v48 = vmul.f32 %v3912_v16, %v4029_v9  ;;  %v1876_v53 = vsel %vm756_vm1, %v1874_v41, %v1875_v37 }
  0xd9   : > { %v2165_v50 = vadd.f32 1.0, %v3198_v38  ;;  %v1740_v52 = vadd.f32 %v1634_v30, %v1496_v44  ;;  %v366_v54 = vmul.f32 %v3912_v16, %v4043_v29  ;;  %v1878_v55 = vsel %vm756_vm1, %v1875_v37, %v1877_v47 }
  0xda   : > { %3199 = vrcp.f32 %v2164_v45  ;;  %v1983_v56 = vadd.f32 %v1876_v53, %v1739_v46  ;;  %v442_v57 = vmul.f32 %v3915_v17, %v4029_v9  ;;  %v443_v60 = vmul.f32 %v3915_v17, %v4043_v29 }
  0xdb   : > { %3201 = vrcp.f32 %v2165_v50  ;;  %v1984_v58 = vadd.f32 %v1878_v55, %v1740_v52  ;;  %v444_v63 = vmul.f32 %v3915_v17, %v4053_v43  ;;  %v687_v5 = vmul.f32 %v3918_v18, %v4029_v9  ;;  %v4224_v55 = vld [vmem:[%s3900_s12 + $0x108] sm:$0xff] }
  0xdc   : > { %v4189_v0 = vadd.f32 %v4025_v62, %v1983_v56  ;;  %v557_v4 = vrot.slane %v442_v57, 1  ;;  %v688_v6 = vmul.f32 %v3918_v18, %v4043_v29  ;;  %v558_v35 = vrot.slane %v443_v60, 1 }
  0xdd   : > { %v4196_v10 = vadd.f32 %v4025_v62, %v1984_v58  ;;  %v560_v14 = vrot.slane %v444_v63, 1  ;;  %v689_v15 = vmul.f32 %v3918_v18, %v4053_v43  ;;  %v802_v40 = vrot.slane %v687_v5, 2 }
  0xde   : > { %v2925_v22 = vmul.f32 -1.442695, %v4189_v0  ;;  %v803_v33 = vrot.slane %v688_v6, 2  ;;  %v923_v34 = vmul.f32 %v3920_v19, %v4063_v51  ;;  %v559_v7 = vsel %vm511_vm0, %v557_v4, %v558_v35  ;;  %v4232_v6 = vld [vmem:[%s3900_s12 + $0x110] sm:$0xff] }
  0xdf   : > { %v2926_v9 = vmul.f32 -1.442695, %v4196_v10  ;;  %v561_v29 = vsel %vm511_vm0, %v558_v35, %v560_v14  ;;  %v805_v8 = vrot.slane %v689_v15, 2  ;;  %v642_v13 = vadd.f32 %v559_v7, %v365_v48 }
  0xe0   : > { %3203 = vpow2.f32 %v2925_v22  ;;  %v643_v23 = vadd.f32 %v561_v29, %v366_v54  ;;  %v804_v39 = vsel %vm756_vm1, %v802_v40, %v803_v33  ;;  %v924_v36 = vmul.f32 %v3920_v19, %v4073_v59  ;;  %v4237_v40 = vld [vmem:[%s3900_s12 + $0x118] sm:$0xff] }
  0xe1   : > { %3205 = vpow2.f32 %v2926_v9  ;;  %v806_v43 = vsel %vm756_vm1, %v803_v33, %v805_v8  ;;  %v1000_v25 = vmul.f32 %v3923_v20, %v4063_v51  ;;  %v887_v41 = vadd.f32 %v804_v39, %v642_v13 }
  0xe2   : > { %v888_v42 = vadd.f32 %v806_v43, %v643_v23  ;;  %v1001_v44 = vmul.f32 %v3923_v20, %v4073_v59  ;;  %v1002_v24 = vmul.f32 %v3923_v20, %v4077_v3  ;;  %v1244_v37 = vmul.f32 %v3926_v21, %v4063_v51 }
  0xe3   : > { %v1114_v30 = vrot.slane %v1000_v25, 1  ;;  %v1245_v38 = vmul.f32 %v3926_v21, %v4073_v59  ;;  %v1246_v45 = vmul.f32 %v3926_v21, %v4077_v3  ;;  %v955_v47 = vadd.f32 %v923_v34, %v887_v41 }
  0xe4   : > { %v3200_v46 = vpop.eup %3199  ;;  %v956_v48 = vadd.f32 %v924_v36, %v888_v42  ;;  %v1115_v50 = vrot.slane %v1001_v44, 1  ;;  %v1117_v52 = vrot.slane %v1002_v24, 1  ;;  %v1358_v56 = vrot.slane %v1244_v37, 2 }
  0xe5   : > { %v3202_v53 = vpop.eup %3201  ;;  %v2260_v54 = vmul.f32 %v3200_v46, %v4112_v11  ;;  %v1359_v57 = vrot.slane %v1245_v38, 2  ;;  %v1361_v58 = vrot.slane %v1246_v45, 2  ;;  %v1479_v5 = vmul.f32 %v3933_v26, %v4224_v55 }
  0xe6   : > { %v2261_v60 = vmul.f32 %v3202_v53, %v4115_v12  ;;  %v1116_v63 = vsel %vm511_vm0, %v1114_v30, %v1115_v50  ;;  %v1118_v4 = vsel %vm511_vm0, %v1115_v50, %v1117_v52  ;;  %v1480_v12 = vmul.f32 %v3933_v26, %v4232_v6 }
  0xe7   : > { %v1199_v35 = vadd.f32 %v1116_v63, %v955_v47  ;;  %v1200_v14 = vadd.f32 %v1118_v4, %v956_v48  ;;  %v1360_v11 = vsel %vm756_vm1, %v1358_v56, %v1359_v57  ;;  %v1362_v15 = vsel %vm756_vm1, %v1359_v57, %v1361_v58 }
  0xe8   : > { %v2284_v22 = vpack.c.bf16 %v2261_v60, %v2260_v54  ;;  %v1556_v33 = vmul.f32 %v3988_v27, %v4224_v55  ;;  %v1557_v34 = vmul.f32 %v3988_v27, %v4232_v6  ;;  %v1558_v29 = vmul.f32 %v3988_v27, %v4237_v40 }
  0xe9   : > { %v1443_v9 = vadd.f32 %v1360_v11, %v1199_v35  ;;  %v1444_v7 = vadd.f32 %v1362_v15, %v1200_v14  ;;  %v1800_v8 = vmul.f32 %v3992_v28, %v4224_v55  ;;  %v1801_v43 = vmul.f32 %v3992_v28, %v4232_v6 }
  0xea   : > { %v3204_v13 = vpop.eup %3203  ;;  %3060 = vmatprep.mubr.bf16.mxu1 %v2284_v22  ;;  %v1670_v23 = vrot.slane %v1556_v33, 1  ;;  %v1671_v39 = vrot.slane %v1557_v34, 1  ;;  %v1802_v36 = vmul.f32 %v3992_v28, %v4237_v40  ;;  %v1673_v24 = vrot.slane %v1558_v29, 1 }
  0xeb   : > { %v3206_v25 = vpop.eup %3205  ;;  %v2150_v41 = vadd.f32 1.0, %v3204_v13  ;;  %v1511_v42 = vadd.f32 %v1479_v5, %v1443_v9  ;;  %v1512_v44 = vadd.f32 %v1480_v12, %v1444_v7  ;;  %v1914_v38 = vrot.slane %v1800_v8, 2 }
  0xec   : > { %v2151_v30 = vadd.f32 1.0, %v3206_v25  ;;  %v1672_v37 = vsel %vm511_vm0, %v1670_v23, %v1671_v39  ;;  %v1915_v45 = vrot.slane %v1801_v43, 2  ;;  %v1674_v46 = vsel %vm511_vm0, %v1671_v39, %v1673_v24 }
  0xed   : > { %3207 = vrcp.f32 %v2150_v41  ;;  %v1755_v47 = vadd.f32 %v1672_v37, %v1511_v42  ;;  %v1917_v48 = vrot.slane %v1802_v36, 2  ;;  %v1756_v50 = vadd.f32 %v1674_v46, %v1512_v44 }
  0xee   : > { %3209 = vrcp.f32 %v2151_v30  ;;  %v1916_v52 = vsel %vm756_vm1, %v1914_v38, %v1915_v45  ;;  %v351_v53 = vmul.f32 %v3912_v16, %v3971_v1  ;;  %v352_v57 = vmul.f32 %v3912_v16, %v3974_v2 }
  0xef   : > { %v1918_v54 = vsel %vm756_vm1, %v1915_v45, %v1917_v48  ;;  %v1999_v56 = vadd.f32 %v1916_v52, %v1755_v47  ;;  %v421_v58 = vmul.f32 %v3915_v17, %v3971_v1  ;;  %v422_v63 = vmul.f32 %v3915_v17, %v3974_v2 }
  0xf0   : > { %v2000_v60 = vadd.f32 %v1918_v54, %v1756_v50  ;;  %v423_v4 = vmul.f32 %v3915_v17, %v3997_v31  ;;  %v666_v5 = vmul.f32 %v3918_v18, %v3971_v1  ;;  %v667_v11 = vmul.f32 %v3918_v18, %v3974_v2 }
  0xf1   : > { %v4270_v35 = vadd.f32 %v4025_v62, %v1999_v56  ;;  %v522_v14 = vrot.slane %v421_v58, 1  ;;  %v668_v15 = vmul.f32 %v3918_v18, %v3997_v31  ;;  %v523_v12 = vrot.slane %v422_v63, 1  ;;  %v4302_v56 = vld [vmem:[%s3900_s12 + $0x60] sm:$0xff] }
  0xf2   : > { %v4277_v22 = vadd.f32 %v4025_v62, %v2000_v60  ;;  %v525_v33 = vrot.slane %v423_v4, 1  ;;  %v767_v34 = vrot.slane %v666_v5, 2  ;;  %v768_v7 = vrot.slane %v667_v11, 2  ;;  %v4308_v4 = vld [vmem:[%s3900_s12 + $0x68] sm:$0xff]  ;;  %v4314_v11 = vld [vmem:[%s3900_s12 + $0x70] sm:$0xff] }
  0xf3   : > { %v2941_v9 = vmul.f32 -1.442695, %v4270_v35  ;;  %v770_v1 = vrot.slane %v668_v15, 2  ;;  %v909_v29 = vmul.f32 %v3920_v19, %v4140_v32  ;;  %v524_v2 = vsel %vm511_vm0, %v522_v14, %v523_v12 }
  0xf4   : > { %v2942_v8 = vmul.f32 -1.442695, %v4277_v22  ;;  %v526_v13 = vsel %vm511_vm0, %v523_v12, %v525_v33  ;;  %v910_v31 = vmul.f32 %v3920_v19, %v4145_v49  ;;  %v628_v23 = vadd.f32 %v524_v2, %v351_v53 }
  0xf5   : > { %3211 = vpow2.f32 %v2941_v9  ;;  %v629_v39 = vadd.f32 %v526_v13, %v352_v57  ;;  %v769_v43 = vsel %vm756_vm1, %v767_v34, %v768_v7  ;;  %v771_v36 = vsel %vm756_vm1, %v768_v7, %v770_v1 }
  0xf6   : > { %3213 = vpow2.f32 %v2942_v8  ;;  %v979_v25 = vmul.f32 %v3923_v20, %v4140_v32  ;;  %v980_v41 = vmul.f32 %v3923_v20, %v4145_v49  ;;  %v873_v44 = vadd.f32 %v769_v43, %v628_v23 }
  0xf7   : > { %v3208_v42 = vpop.eup %3207  ;;  %v874_v24 = vadd.f32 %v771_v36, %v629_v39  ;;  %v981_v30 = vmul.f32 %v3923_v20, %v4156_v61  ;;  %v1223_v37 = vmul.f32 %v3926_v21, %v4140_v32  ;;  %v1224_v48 = vmul.f32 %v3926_v21, %v4145_v49 }
  0xf8   : > { %v3210_v38 = vpop.eup %3209  ;;  %v2246_v45 = vmul.f32 %v3208_v42, %v4189_v0  ;;  %v1079_v46 = vrot.slane %v979_v25, 1  ;;  %v1080_v47 = vrot.slane %v980_v41, 1  ;;  %v941_v52 = vadd.f32 %v909_v29, %v873_v44 }
  0xf9   : > { %v2247_v50 = vmul.f32 %v3210_v38, %v4196_v10  ;;  %v942_v53 = vadd.f32 %v910_v31, %v874_v24  ;;  %v1082_v54 = vrot.slane %v981_v30, 1  ;;  %v1225_v58 = vmul.f32 %v3926_v21, %v4156_v61 }
  0xfa   : > { %v1081_v57 = vsel %vm511_vm0, %v1079_v46, %v1080_v47  ;;  %v1323_v60 = vrot.slane %v1223_v37, 2  ;;  %v1324_v0 = vrot.slane %v1224_v48, 2  ;;  %v1465_v10 = vmul.f32 %v3933_v26, %v4302_v56 }
  0xfb   : > { %v2277_v63 = vpack.c.bf16 %v2247_v50, %v2246_v45  ;;  %v1083_v5 = vsel %vm511_vm0, %v1080_v47, %v1082_v54  ;;  %v1185_v14 = vadd.f32 %v1081_v57, %v941_v52  ;;  %v1326_v33 = vrot.slane %v1225_v58, 2 }
  0xfc   : > { %v1186_v15 = vadd.f32 %v1083_v5, %v942_v53  ;;  %v1325_v12 = vsel %vm756_vm1, %v1323_v60, %v1324_v0  ;;  %v1466_v34 = vmul.f32 %v3933_v26, %v4308_v4  ;;  %v1535_v7 = vmul.f32 %v3988_v27, %v4302_v56 }
  0xfd   : > { %3045 = vmatmul.mubr.bf16.vlgmr.msra.gmra.mrb[0].mxu0 %v2277_v63  ;;  %v1429_v9 = vadd.f32 %v1325_v12, %v1185_v14  ;;  %v1536_v1 = vmul.f32 %v3988_v27, %v4308_v4  ;;  %v1537_v29 = vmul.f32 %v3988_v27, %v4314_v11  ;;  %v1327_v8 = vsel %vm756_vm1, %v1324_v0, %v1326_v33 }
  0xfe   : > { %v1779_v2 = vmul.f32 %v3992_v28, %v4302_v56  ;;  %v1780_v13 = vmul.f32 %v3992_v28, %v4308_v4  ;;  %v1781_v31 = vmul.f32 %v3992_v28, %v4314_v11  ;;  %v1430_v39 = vadd.f32 %v1327_v8, %v1186_v15 }
  0xff   : > { %v3212_v23 = vpop.eup %3211  ;;  %v1497_v43 = vadd.f32 %v1465_v10, %v1429_v9  ;;  %v1635_v36 = vrot.slane %v1535_v7, 1  ;;  %v1636_v25 = vrot.slane %v1536_v1, 1  ;;  %v1638_v44 = vrot.slane %v1537_v29, 1 }
 0x100   : > { %v3214_v41 = vpop.eup %3213  ;;  %v2166_v42 = vadd.f32 1.0, %v3212_v23  ;;  %v1879_v24 = vrot.slane %v1779_v2, 2  ;;  %v1880_v30 = vrot.slane %v1780_v13, 2  ;;  %v1498_v38 = vadd.f32 %v1466_v34, %v1430_v39 }
 0x101   : > { %v2167_v37 = vadd.f32 1.0, %v3214_v41  ;;  %v1637_v45 = vsel %vm511_vm0, %v1635_v36, %v1636_v25  ;;  %v1882_v46 = vrot.slane %v1781_v31, 2  ;;  %v1639_v47 = vsel %vm511_vm0, %v1636_v25, %v1638_v44 }
 0x102   : > { %3215 = vrcp.f32 %v2166_v42  ;;  %v1741_v48 = vadd.f32 %v1637_v45, %v1497_v43  ;;  %v1881_v50 = vsel %vm756_vm1, %v1879_v24, %v1880_v30  ;;  %v1742_v52 = vadd.f32 %v1639_v47, %v1498_v38 }
 0x103   : > { %3217 = vrcp.f32 %v2167_v37  ;;  %v1883_v53 = vsel %vm756_vm1, %v1880_v30, %v1882_v46  ;;  %v367_v54 = vmul.f32 %v3912_v16, %v4063_v51  ;;  %v368_v58 = vmul.f32 %v3912_v16, %v4073_v59 }
 0x104   : > { %v1985_v57 = vadd.f32 %v1881_v50, %v1741_v48  ;;  %v445_v60 = vmul.f32 %v3915_v17, %v4063_v51  ;;  %v446_v0 = vmul.f32 %v3915_v17, %v4073_v59  ;;  %v1986_v63 = vadd.f32 %v1883_v53, %v1742_v52  ;;  %v4381_v53 = vld [vmem:[%s3900_s12 + $0x120] sm:$0xff] }
 0x105   : > { %v447_v5 = vmul.f32 %v3915_v17, %v4077_v3  ;;  %v690_v14 = vmul.f32 %v3918_v18, %v4063_v51  ;;  %v691_v10 = vmul.f32 %v3918_v18, %v4073_v59  ;;  %v692_v34 = vmul.f32 %v3918_v18, %v4077_v3 }
 0x106   : > { %v4351_v15 = vadd.f32 %v4025_v62, %v1985_v57  ;;  %v562_v12 = vrot.slane %v445_v60, 1  ;;  %v563_v33 = vrot.slane %v446_v0, 1  ;;  %v4356_v9 = vadd.f32 %v4025_v62, %v1986_v63 }
 0x107   : > { %v565_v7 = vrot.slane %v447_v5, 1  ;;  %v807_v1 = vrot.slane %v690_v14, 2  ;;  %v808_v29 = vrot.slane %v691_v10, 2  ;;  %v810_v2 = vrot.slane %v692_v34, 2  ;;  %v4389_v14 = vld [vmem:[%s3900_s12 + $0x128] sm:$0xff] }
 0x108   : > { %v2927_v8 = vmul.f32 -1.442695, %v4351_v15  ;;  %v564_v51 = vsel %vm511_vm0, %v562_v12, %v563_v33  ;;  %v925_v59 = vmul.f32 %v3920_v19, %v4224_v55  ;;  %v2928_v13 = vmul.f32 -1.442695, %v4356_v9 }
 0x109   : > { %v566_v31 = vsel %vm511_vm0, %v563_v33, %v565_v7  ;;  %v644_v23 = vadd.f32 %v564_v51, %v367_v54  ;;  %v809_v3 = vsel %vm756_vm1, %v807_v1, %v808_v29  ;;  %v811_v43 = vsel %vm756_vm1, %v808_v29, %v810_v2  ;;  %v4393_v33 = vld [vmem:[%s3900_s12 + $0x130] sm:$0xff] }
 0x10a   : > { %3219 = vpow2.f32 %v2927_v8  ;;  %v645_v39 = vadd.f32 %v566_v31, %v368_v58  ;;  %v926_v36 = vmul.f32 %v3920_v19, %v4232_v6  ;;  %v1003_v41 = vmul.f32 %v3923_v20, %v4224_v55 }
 0x10b   : > { %3221 = vpow2.f32 %v2928_v13  ;;  %v889_v25 = vadd.f32 %v809_v3, %v644_v23  ;;  %v1004_v42 = vmul.f32 %v3923_v20, %v4232_v6  ;;  %v1005_v30 = vmul.f32 %v3923_v20, %v4237_v40 }
 0x10c   : > { %v3216_v44 = vpop.eup %3215  ;;  %v890_v24 = vadd.f32 %v811_v43, %v645_v39  ;;  %v1247_v37 = vmul.f32 %v3926_v21, %v4224_v55  ;;  %v1248_v38 = vmul.f32 %v3926_v21, %v4232_v6  ;;  %v1119_v48 = vrot.slane %v1003_v41, 1 }
 0x10d   : > { %v3218_v45 = vpop.eup %3217  ;;  %v2262_v46 = vmul.f32 %v3216_v44, %v4270_v35  ;;  %v957_v47 = vadd.f32 %v925_v59, %v889_v25  ;;  %v1120_v50 = vrot.slane %v1004_v42, 1  ;;  %v1122_v57 = vrot.slane %v1005_v30, 1 }
 0x10e   : > { %v2263_v52 = vmul.f32 %v3218_v45, %v4277_v22  ;;  %v958_v54 = vadd.f32 %v926_v36, %v890_v24  ;;  %v1249_v58 = vmul.f32 %v3926_v21, %v4237_v40  ;;  %v1363_v0 = vrot.slane %v1247_v37, 2 }
 0x10f   : > { %v1121_v60 = vsel %vm511_vm0, %v1119_v48, %v1120_v50  ;;  %v1364_v63 = vrot.slane %v1248_v38, 2  ;;  %v1481_v35 = vmul.f32 %v3933_v26, %v4381_v53  ;;  %v1123_v10 = vsel %vm511_vm0, %v1120_v50, %v1122_v57 }
 0x110   : > { %v2285_v5 = vpack.c.bf16 %v2263_v52, %v2262_v46  ;;  %v1201_v22 = vadd.f32 %v1121_v60, %v957_v47  ;;  %v1366_v12 = vrot.slane %v1249_v58, 2  ;;  %v1202_v34 = vadd.f32 %v1123_v10, %v958_v54 }
 0x111   : > { %v1365_v7 = vsel %vm756_vm1, %v1363_v0, %v1364_v63  ;;  %v1482_v1 = vmul.f32 %v3933_v26, %v4389_v14  ;;  %v1559_v29 = vmul.f32 %v3988_v27, %v4381_v53  ;;  %v1560_v2 = vmul.f32 %v3988_v27, %v4389_v14 }
 0x112   : > { %3061 = vmatmul.mubr.bf16.vlgmr.msra.gmra.mrb[0].mxu1 %v2285_v5  ;;  %v1367_v8 = vsel %vm756_vm1, %v1364_v63, %v1366_v12  ;;  %v1445_v51 = vadd.f32 %v1365_v7, %v1201_v22  ;;  %v1561_v59 = vmul.f32 %v3988_v27, %v4393_v33  ;;  %v1803_v23 = vmul.f32 %v3992_v28, %v4381_v53 }
 0x113   : > { %v1446_v13 = vadd.f32 %v1367_v8, %v1202_v34  ;;  %v1675_v31 = vrot.slane %v1559_v29, 1  ;;  %v1804_v3 = vmul.f32 %v3992_v28, %v4389_v14  ;;  %v1676_v36 = vrot.slane %v1560_v2, 1 }
 0x114   : > { %v3220_v39 = vpop.eup %3219  ;;  %v1513_v43 = vadd.f32 %v1481_v35, %v1445_v51  ;;  %v1678_v25 = vrot.slane %v1561_v59, 1  ;;  %v1805_v41 = vmul.f32 %v3992_v28, %v4393_v33  ;;  %v1919_v30 = vrot.slane %v1803_v23, 2 }
 0x115   : > { %v3222_v42 = vpop.eup %3221  ;;  %v2152_v44 = vadd.f32 1.0, %v3220_v39  ;;  %v1514_v24 = vadd.f32 %v1482_v1, %v1446_v13  ;;  %v1920_v37 = vrot.slane %v1804_v3, 2  ;;  %v1677_v45 = vsel %vm511_vm0, %v1675_v31, %v1676_v36 }
 0x116   : > { %v2153_v38 = vadd.f32 1.0, %v3222_v42  ;;  %v1679_v46 = vsel %vm511_vm0, %v1676_v36, %v1678_v25  ;;  %v1922_v47 = vrot.slane %v1805_v41, 2  ;;  %v1757_v48 = vadd.f32 %v1677_v45, %v1513_v43 }
 0x117   : > { %3223 = vrcp.f32 %v2152_v44  ;;  %v1758_v50 = vadd.f32 %v1679_v46, %v1514_v24  ;;  %v1921_v52 = vsel %vm756_vm1, %v1919_v30, %v1920_v37  ;;  %v353_v57 = vmul.f32 %v3912_v16, %v4140_v32 }
 0x118   : > { %3225 = vrcp.f32 %v2153_v38  ;;  %v1923_v54 = vsel %vm756_vm1, %v1920_v37, %v1922_v47  ;;  %v354_v58 = vmul.f32 %v3912_v16, %v4145_v49  ;;  %v2001_v60 = vadd.f32 %v1921_v52, %v1757_v48 }
 0x119   : > { %v2002_v0 = vadd.f32 %v1923_v54, %v1758_v50  ;;  %v424_v63 = vmul.f32 %v3915_v17, %v4140_v32  ;;  %v425_v35 = vmul.f32 %v3915_v17, %v4145_v49  ;;  %v426_v5 = vmul.f32 %v3915_v17, %v4156_v61  ;;  %v4460_v54 = vld [vmem:[%s3900_s12 + $0x78] sm:$0xff] }
 0x11a   : > { %v669_v10 = vmul.f32 %v3918_v18, %v4140_v32  ;;  %v670_v22 = vmul.f32 %v3918_v18, %v4145_v49  ;;  %v671_v12 = vmul.f32 %v3918_v18, %v4156_v61  ;;  %v4432_v34 = vadd.f32 %v4025_v62, %v2001_v60 }
 0x11b   : > { %v4435_v7 = vadd.f32 %v4025_v62, %v2002_v0  ;;  %v527_v1 = vrot.slane %v424_v63, 1  ;;  %v528_v29 = vrot.slane %v425_v35, 1  ;;  %v530_v8 = vrot.slane %v426_v5, 1 }
 0x11c   : > { %v772_v51 = vrot.slane %v669_v10, 2  ;;  %v773_v2 = vrot.slane %v670_v22, 2  ;;  %v775_v59 = vrot.slane %v671_v12, 2  ;;  %v2943_v32 = vmul.f32 -1.442695, %v4432_v34  ;;  %v4469_v10 = vld [vmem:[%s3900_s12 + $0x80] sm:$0xff] }
 0x11d   : > { %v2944_v13 = vmul.f32 -1.442695, %v4435_v7  ;;  %v529_v49 = vsel %vm511_vm0, %v527_v1, %v528_v29  ;;  %v911_v61 = vmul.f32 %v3920_v19, %v4302_v56  ;;  %v531_v31 = vsel %vm511_vm0, %v528_v29, %v530_v8  ;;  %v4472_v1 = vld [vmem:[%s3900_s12 + $0x88] sm:$0xff] }
 0x11e   : > { %v630_v23 = vadd.f32 %v529_v49, %v353_v57  ;;  %v774_v62 = vsel %vm756_vm1, %v772_v51, %v773_v2  ;;  %v776_v3 = vsel %vm756_vm1, %v773_v2, %v775_v59  ;;  %3227 = vpow2.f32 %v2943_v32 }
 0x11f   : > { %v631_v39 = vadd.f32 %v531_v31, %v354_v58  ;;  %v912_v43 = vmul.f32 %v3920_v19, %v4308_v4  ;;  %v982_v36 = vmul.f32 %v3923_v20, %v4302_v56  ;;  %3229 = vpow2.f32 %v2944_v13 }
 0x120   : > { %v875_v25 = vadd.f32 %v774_v62, %v630_v23  ;;  %v983_v41 = vmul.f32 %v3923_v20, %v4308_v4  ;;  %v984_v42 = vmul.f32 %v3923_v20, %v4314_v11  ;;  %v1226_v37 = vmul.f32 %v3926_v21, %v4302_v56 }
 0x121   : > { %v3224_v44 = vpop.eup %3223  ;;  %v876_v24 = vadd.f32 %v776_v3, %v631_v39  ;;  %v1084_v30 = vrot.slane %v982_v36, 1  ;;  %v1227_v38 = vmul.f32 %v3926_v21, %v4308_v4  ;;  %v1228_v58 = vmul.f32 %v3926_v21, %v4314_v11 }
 0x122   : > { %v3226_v45 = vpop.eup %3225  ;;  %v2248_v46 = vmul.f32 %v3224_v44, %v4351_v15  ;;  %v943_v47 = vadd.f32 %v911_v61, %v875_v25  ;;  %v1085_v48 = vrot.slane %v983_v41, 1  ;;  %v1087_v50 = vrot.slane %v984_v42, 1 }
 0x123   : > { %v2249_v52 = vmul.f32 %v3226_v45, %v4356_v9  ;;  %v944_v57 = vadd.f32 %v912_v43, %v876_v24  ;;  %v1328_v60 = vrot.slane %v1226_v37, 2  ;;  %v1329_v35 = vrot.slane %v1227_v38, 2 }
 0x124   : > { %v1086_v0 = vsel %vm511_vm0, %v1084_v30, %v1085_v48  ;;  %v1088_v63 = vsel %vm511_vm0, %v1085_v48, %v1087_v50  ;;  %v1467_v15 = vmul.f32 %v3933_v26, %v4460_v54  ;;  %v1331_v12 = vrot.slane %v1228_v58, 2 }
 0x125   : > { %v2278_v5 = vpack.c.bf16 %v2249_v52, %v2248_v46  ;;  %v1187_v22 = vadd.f32 %v1086_v0, %v943_v47  ;;  %v1188_v9 = vadd.f32 %v1088_v63, %v944_v57  ;;  %v1330_v29 = vsel %vm756_vm1, %v1328_v60, %v1329_v35 }
 0x126   : > { %v1468_v8 = vmul.f32 %v3933_v26, %v4469_v10  ;;  %v1538_v51 = vmul.f32 %v3988_v27, %v4460_v54  ;;  %v1539_v2 = vmul.f32 %v3988_v27, %v4469_v10  ;;  %v1332_v59 = vsel %vm756_vm1, %v1329_v35, %v1331_v12 }
 0x127   : > { %3048 = vmatprep.mubr.bf16.mxu0 %v2278_v5  ;;  %v1431_v32 = vadd.f32 %v1330_v29, %v1187_v22  ;;  %v1540_v13 = vmul.f32 %v3988_v27, %v4472_v1  ;;  %v1782_v49 = vmul.f32 %v3992_v28, %v4460_v54  ;;  %v1432_v61 = vadd.f32 %v1332_v59, %v1188_v9 }
 0x128   : > { %v1640_v31 = vrot.slane %v1538_v51, 1  ;;  %v1641_v23 = vrot.slane %v1539_v2, 1  ;;  %v1783_v62 = vmul.f32 %v3992_v28, %v4469_v10  ;;  %v3228_v3 = vpop.eup %3227  ;;  %v1784_v36 = vmul.f32 %v3992_v28, %v4472_v1 }
 0x129   : > { %v1499_v39 = vadd.f32 %v1467_v15, %v1431_v32  ;;  %v1643_v43 = vrot.slane %v1540_v13, 1  ;;  %v1884_v25 = vrot.slane %v1782_v49, 2  ;;  %v3230_v41 = vpop.eup %3229  ;;  %v2168_v42 = vadd.f32 1.0, %v3228_v3  ;;  %v4507_v15 = vld [vmem:[%s5371_s2] ss:$0 sm:$0xff] }
 0x12a   : > { %v1500_v44 = vadd.f32 %v1468_v8, %v1432_v61  ;;  %v1642_v24 = vsel %vm511_vm0, %v1640_v31, %v1641_v23  ;;  %v1885_v30 = vrot.slane %v1783_v62, 2  ;;  %v2169_v37 = vadd.f32 1.0, %v3230_v41 }
 0x12b   : > { %v1644_v38 = vsel %vm511_vm0, %v1641_v23, %v1643_v43  ;;  %v1743_v45 = vadd.f32 %v1642_v24, %v1499_v39  ;;  %v1887_v46 = vrot.slane %v1784_v36, 2  ;;  %3231 = vrcp.f32 %v2168_v42 }
 0x12c   : > { %v1744_v47 = vadd.f32 %v1644_v38, %v1500_v44  ;;  %v1886_v48 = vsel %vm756_vm1, %v1884_v25, %v1885_v30  ;;  %v369_v50 = vmul.f32 %v3912_v16, %v4224_v55  ;;  %3233 = vrcp.f32 %v2169_v37 }
 0x12d   : > { %v1888_v52 = vsel %vm756_vm1, %v1885_v30, %v1887_v46  ;;  %v1987_v57 = vadd.f32 %v1886_v48, %v1743_v45  ;;  %v370_v58 = vmul.f32 %v3912_v16, %v4232_v6  ;;  %v448_v0 = vmul.f32 %v3915_v17, %v4224_v55 }
 0x12e   : > { %v1988_v60 = vadd.f32 %v1888_v52, %v1744_v47  ;;  %v449_v63 = vmul.f32 %v3915_v17, %v4232_v6  ;;  %v450_v35 = vmul.f32 %v3915_v17, %v4237_v40  ;;  %v693_v22 = vmul.f32 %v3918_v18, %v4224_v55 }
 0x12f   : > { %v4510_v5 = vadd.f32 %v4507_v15, %v1987_v57  ;;  %v694_v9 = vmul.f32 %v3918_v18, %v4232_v6  ;;  %v695_v12 = vmul.f32 %v3918_v18, %v4237_v40  ;;  %v567_v8 = vrot.slane %v448_v0, 1  ;;  %v4546_v57 = vld [vmem:[%s3900_s12 + $0x138] sm:$0xff] }
 0x130   : > { %v4519_v29 = vadd.f32 %v4507_v15, %v1988_v60  ;;  %v568_v51 = vrot.slane %v449_v63, 1  ;;  %v570_v2 = vrot.slane %v450_v35, 1  ;;  %v812_v32 = vrot.slane %v693_v22, 2 }
 0x131   : > { %v2929_v59 = vmul.f32 -1.442695, %v4510_v5  ;;  %v813_v13 = vrot.slane %v694_v9, 2  ;;  %v815_v49 = vrot.slane %v695_v12, 2  ;;  %v927_v40 = vmul.f32 %v3920_v19, %v4381_v53 }
 0x132   : > { %v2930_v61 = vmul.f32 -1.442695, %v4519_v29  ;;  %v569_v55 = vsel %vm511_vm0, %v567_v8, %v568_v51  ;;  %v571_v6 = vsel %vm511_vm0, %v568_v51, %v570_v2  ;;  %v928_v39 = vmul.f32 %v3920_v19, %v4389_v14  ;;  %v4559_v2 = vld [vmem:[%s3900_s12 + $0x148] sm:$0xff] }
 0x133   : > { %3235 = vpow2.f32 %v2929_v59  ;;  %v646_v31 = vadd.f32 %v569_v55, %v369_v50  ;;  %v647_v23 = vadd.f32 %v571_v6, %v370_v58  ;;  %v814_v62 = vsel %vm756_vm1, %v812_v32, %v813_v13  ;;  %v4549_v58 = vld [vmem:[%s3900_s12 + $0x140] sm:$0xff] }
 0x134   : > { %3237 = vpow2.f32 %v2930_v61  ;;  %v816_v3 = vsel %vm756_vm1, %v813_v13, %v815_v49  ;;  %v1006_v43 = vmul.f32 %v3923_v20, %v4381_v53  ;;  %v1007_v41 = vmul.f32 %v3923_v20, %v4389_v14 }
 0x135   : > { %v891_v36 = vadd.f32 %v814_v62, %v646_v31  ;;  %v892_v25 = vadd.f32 %v816_v3, %v647_v23  ;;  %v1008_v42 = vmul.f32 %v3923_v20, %v4393_v33  ;;  %v3232_v44 = vpop.eup %3231  ;;  %v1250_v30 = vmul.f32 %v3926_v21, %v4381_v53 }
 0x136   : > { %v1124_v24 = vrot.slane %v1006_v43, 1  ;;  %v1251_v37 = vmul.f32 %v3926_v21, %v4389_v14  ;;  %v1252_v38 = vmul.f32 %v3926_v21, %v4393_v33  ;;  %v3234_v45 = vpop.eup %3233  ;;  %v2264_v46 = vmul.f32 %v3232_v44, %v4432_v34 }
 0x137   : > { %v959_v47 = vadd.f32 %v927_v40, %v891_v36  ;;  %v960_v48 = vadd.f32 %v928_v39, %v892_v25  ;;  %v1125_v50 = vrot.slane %v1007_v41, 1  ;;  %v2265_v52 = vmul.f32 %v3234_v45, %v4435_v7 }
 0x138   : > { %v1127_v60 = vrot.slane %v1008_v42, 1  ;;  %v1368_v0 = vrot.slane %v1250_v30, 2  ;;  %v1369_v63 = vrot.slane %v1251_v37, 2  ;;  %v1371_v22 = vrot.slane %v1252_v38, 2 }
 0x139   : > { %v1126_v35 = vsel %vm511_vm0, %v1124_v24, %v1125_v50  ;;  %v1483_v9 = vmul.f32 %v3933_v26, %v4546_v57  ;;  %v1484_v34 = vmul.f32 %v3933_v26, %v4549_v58  ;;  %v2286_v12 = vpack.c.bf16 %v2265_v52, %v2264_v46 }
 0x13a   : > { %v1128_v8 = vsel %vm511_vm0, %v1125_v50, %v1127_v60  ;;  %v1203_v7 = vadd.f32 %v1126_v35, %v959_v47  ;;  %v1370_v51 = vsel %vm756_vm1, %v1368_v0, %v1369_v63  ;;  %v1372_v32 = vsel %vm756_vm1, %v1369_v63, %v1371_v22 }
 0x13b   : > { %v1204_v59 = vadd.f32 %v1128_v8, %v960_v48  ;;  %v1562_v13 = vmul.f32 %v3988_v27, %v4546_v57  ;;  %v1563_v49 = vmul.f32 %v3988_v27, %v4549_v58  ;;  %3064 = vmatprep.mubr.bf16.mxu1 %v2286_v12  ;;  %v1564_v55 = vmul.f32 %v3988_v27, %v4559_v2 }
 0x13c   : > { %v1447_v61 = vadd.f32 %v1370_v51, %v1203_v7  ;;  %v1806_v6 = vmul.f32 %v3992_v28, %v4546_v57  ;;  %v1807_v40 = vmul.f32 %v3992_v28, %v4549_v58  ;;  %v1808_v39 = vmul.f32 %v3992_v28, %v4559_v2 }
 0x13d   : > { %v3236_v31 = vpop.eup %3235  ;;  %v1448_v23 = vadd.f32 %v1372_v32, %v1204_v59  ;;  %v1680_v62 = vrot.slane %v1562_v13, 1  ;;  %v1681_v3 = vrot.slane %v1563_v49, 1  ;;  %v1683_v41 = vrot.slane %v1564_v55, 1 }
 0x13e   : > { %v3238_v43 = vpop.eup %3237  ;;  %v2154_v36 = vadd.f32 1.0, %v3236_v31  ;;  %v1515_v25 = vadd.f32 %v1483_v9, %v1447_v61  ;;  %v1924_v42 = vrot.slane %v1806_v6, 2  ;;  %v1925_v37 = vrot.slane %v1807_v40, 2 }
 0x13f   : > { %v2155_v44 = vadd.f32 1.0, %v3238_v43  ;;  %v1516_v24 = vadd.f32 %v1484_v34, %v1448_v23  ;;  %v1682_v30 = vsel %vm511_vm0, %v1680_v62, %v1681_v3  ;;  %v1684_v38 = vsel %vm511_vm0, %v1681_v3, %v1683_v41 }
 0x140   : > { %3239 = vrcp.f32 %v2154_v36  ;;  %v1759_v45 = vadd.f32 %v1682_v30, %v1515_v25  ;;  %v1927_v46 = vrot.slane %v1808_v39, 2  ;;  %v1926_v48 = vsel %vm756_vm1, %v1924_v42, %v1925_v37 }
 0x141   : > { %3241 = vrcp.f32 %v2155_v44  ;;  %v1760_v47 = vadd.f32 %v1684_v38, %v1516_v24  ;;  %v355_v50 = vmul.f32 %v3912_v16, %v4302_v56  ;;  %v356_v0 = vmul.f32 %v3912_v16, %v4308_v4 }
 0x142   : > { %v1928_v52 = vsel %vm756_vm1, %v1925_v37, %v1927_v46  ;;  %v2003_v60 = vadd.f32 %v1926_v48, %v1759_v45  ;;  %v427_v63 = vmul.f32 %v3915_v17, %v4302_v56  ;;  %v428_v22 = vmul.f32 %v3915_v17, %v4308_v4 }
 0x143   : > { %v2004_v35 = vadd.f32 %v1928_v52, %v1760_v47  ;;  %v429_v9 = vmul.f32 %v3915_v17, %v4314_v11  ;;  %v672_v34 = vmul.f32 %v3918_v18, %v4302_v56  ;;  %v673_v7 = vmul.f32 %v3918_v18, %v4308_v4 }
 0x144   : > { %v4591_v12 = vadd.f32 %v4507_v15, %v2003_v60  ;;  %v532_v8 = vrot.slane %v427_v63, 1  ;;  %v674_v51 = vmul.f32 %v3918_v18, %v4314_v11  ;;  %v533_v32 = vrot.slane %v428_v22, 1  ;;  %v4623_v60 = vld [vmem:[%s3900_s12 + $0x90] sm:$0xff] }
 0x145   : > { %v4598_v59 = vadd.f32 %v4507_v15, %v2004_v35  ;;  %v535_v13 = vrot.slane %v429_v9, 1  ;;  %v777_v49 = vrot.slane %v672_v34, 2  ;;  %v778_v55 = vrot.slane %v673_v7, 2  ;;  %v4629_v9 = vld [vmem:[%s3900_s12 + $0x98] sm:$0xff]  ;;  %v4635_v7 = vld [vmem:[%s3900_s12 + $0xa0] sm:$0xff] }
 0x146   : > { %v2945_v61 = vmul.f32 -1.442695, %v4591_v12  ;;  %v780_v56 = vrot.slane %v674_v51, 2  ;;  %v913_v6 = vmul.f32 %v3920_v19, %v4460_v54  ;;  %v534_v4 = vsel %vm511_vm0, %v532_v8, %v533_v32 }
 0x147   : > { %v2946_v40 = vmul.f32 -1.442695, %v4598_v59  ;;  %v536_v31 = vsel %vm511_vm0, %v533_v32, %v535_v13  ;;  %v914_v11 = vmul.f32 %v3920_v19, %v4469_v10  ;;  %v632_v23 = vadd.f32 %v534_v4, %v355_v50 }
 0x148   : > { %3243 = vpow2.f32 %v2945_v61  ;;  %v633_v62 = vadd.f32 %v536_v31, %v356_v0  ;;  %v779_v3 = vsel %vm756_vm1, %v777_v49, %v778_v55  ;;  %v781_v39 = vsel %vm756_vm1, %v778_v55, %v780_v56 }
 0x149   : > { %3245 = vpow2.f32 %v2946_v40  ;;  %v985_v43 = vmul.f32 %v3923_v20, %v4460_v54  ;;  %v986_v36 = vmul.f32 %v3923_v20, %v4469_v10  ;;  %v877_v41 = vadd.f32 %v779_v3, %v632_v23 }
 0x14a   : > { %v3240_v25 = vpop.eup %3239  ;;  %v878_v42 = vadd.f32 %v781_v39, %v633_v62  ;;  %v987_v44 = vmul.f32 %v3923_v20, %v4472_v1  ;;  %v1229_v24 = vmul.f32 %v3926_v21, %v4460_v54  ;;  %v1230_v46 = vmul.f32 %v3926_v21, %v4469_v10 }
 0x14b   : > { %v3242_v30 = vpop.eup %3241  ;;  %v2250_v37 = vmul.f32 %v3240_v25, %v4510_v5  ;;  %v1089_v38 = vrot.slane %v985_v43, 1  ;;  %v1090_v45 = vrot.slane %v986_v36, 1  ;;  %v945_v48 = vadd.f32 %v913_v6, %v877_v41 }
 0x14c   : > { %v2251_v47 = vmul.f32 %v3242_v30, %v4519_v29  ;;  %v946_v50 = vadd.f32 %v914_v11, %v878_v42  ;;  %v1092_v52 = vrot.slane %v987_v44, 1  ;;  %v1231_v63 = vmul.f32 %v3926_v21, %v4472_v1 }
 0x14d   : > { %v1091_v0 = vsel %vm511_vm0, %v1089_v38, %v1090_v45  ;;  %v1333_v35 = vrot.slane %v1229_v24, 2  ;;  %v1334_v5 = vrot.slane %v1230_v46, 2  ;;  %v1469_v29 = vmul.f32 %v3933_v26, %v4623_v60 }
 0x14e   : > { %v2279_v22 = vpack.c.bf16 %v2251_v47, %v2250_v37  ;;  %v1093_v34 = vsel %vm511_vm0, %v1090_v45, %v1092_v52  ;;  %v1189_v8 = vadd.f32 %v1091_v0, %v945_v48  ;;  %v1336_v13 = vrot.slane %v1231_v63, 2 }
 0x14f   : > { %v1190_v51 = vadd.f32 %v1093_v34, %v946_v50  ;;  %v1335_v32 = vsel %vm756_vm1, %v1333_v35, %v1334_v5  ;;  %v1470_v49 = vmul.f32 %v3933_v26, %v4629_v9  ;;  %v1541_v55 = vmul.f32 %v3988_v27, %v4623_v60 }
 0x150   : > { %3049 = vmatmul.mubr.bf16.gmra.mrb[4].mxu0 %v2279_v22  ;;  %v1433_v61 = vadd.f32 %v1335_v32, %v1189_v8  ;;  %v1542_v56 = vmul.f32 %v3988_v27, %v4629_v9  ;;  %v1543_v6 = vmul.f32 %v3988_v27, %v4635_v7  ;;  %v1337_v40 = vsel %vm756_vm1, %v1334_v5, %v1336_v13 }
 0x151   : > { %v1785_v4 = vmul.f32 %v3992_v28, %v4623_v60  ;;  %v1786_v31 = vmul.f32 %v3992_v28, %v4629_v9  ;;  %v1787_v11 = vmul.f32 %v3992_v28, %v4635_v7  ;;  %v1434_v62 = vadd.f32 %v1337_v40, %v1190_v51 }
 0x152   : > { %v3244_v23 = vpop.eup %3243  ;;  %v1501_v3 = vadd.f32 %v1469_v29, %v1433_v61  ;;  %v1645_v39 = vrot.slane %v1541_v55, 1  ;;  %v1646_v43 = vrot.slane %v1542_v56, 1  ;;  %v1648_v41 = vrot.slane %v1543_v6, 1 }
 0x153   : > { %v3246_v36 = vpop.eup %3245  ;;  %v2170_v25 = vadd.f32 1.0, %v3244_v23  ;;  %v1889_v42 = vrot.slane %v1785_v4, 2  ;;  %v1890_v44 = vrot.slane %v1786_v31, 2  ;;  %v1502_v30 = vadd.f32 %v1470_v49, %v1434_v62 }
 0x154   : > { %v2171_v24 = vadd.f32 1.0, %v3246_v36  ;;  %v1647_v37 = vsel %vm511_vm0, %v1645_v39, %v1646_v43  ;;  %v1892_v38 = vrot.slane %v1787_v11, 2  ;;  %v1649_v45 = vsel %vm511_vm0, %v1646_v43, %v1648_v41 }
 0x155   : > { %3247 = vrcp.f32 %v2170_v25  ;;  %v1745_v46 = vadd.f32 %v1647_v37, %v1501_v3  ;;  %v1891_v47 = vsel %vm756_vm1, %v1889_v42, %v1890_v44  ;;  %v1746_v48 = vadd.f32 %v1649_v45, %v1502_v30 }
 0x156   : > { %3249 = vrcp.f32 %v2171_v24  ;;  %v1893_v50 = vsel %vm756_vm1, %v1890_v44, %v1892_v38  ;;  %v371_v52 = vmul.f32 %v3912_v16, %v4381_v53  ;;  %v372_v63 = vmul.f32 %v3912_v16, %v4389_v14 }
 0x157   : > { %v1989_v0 = vadd.f32 %v1891_v47, %v1745_v46  ;;  %v451_v35 = vmul.f32 %v3915_v17, %v4381_v53  ;;  %v452_v5 = vmul.f32 %v3915_v17, %v4389_v14  ;;  %v1990_v22 = vadd.f32 %v1893_v50, %v1746_v48  ;;  %v4702_v50 = vld [vmem:[%s3900_s12 + $0x150] sm:$0xff] }
 0x158   : > { %v453_v34 = vmul.f32 %v3915_v17, %v4393_v33  ;;  %v696_v8 = vmul.f32 %v3918_v18, %v4381_v53  ;;  %v697_v29 = vmul.f32 %v3918_v18, %v4389_v14  ;;  %v698_v49 = vmul.f32 %v3918_v18, %v4393_v33 }
 0x159   : > { %v4672_v51 = vadd.f32 %v4507_v15, %v1989_v0  ;;  %v572_v32 = vrot.slane %v451_v35, 1  ;;  %v573_v13 = vrot.slane %v452_v5, 1  ;;  %v4677_v61 = vadd.f32 %v4507_v15, %v1990_v22 }
 0x15a   : > { %v575_v55 = vrot.slane %v453_v34, 1  ;;  %v817_v56 = vrot.slane %v696_v8, 2  ;;  %v818_v6 = vrot.slane %v697_v29, 2  ;;  %v820_v4 = vrot.slane %v698_v49, 2  ;;  %v4710_v8 = vld [vmem:[%s3900_s12 + $0x158] sm:$0xff] }
 0x15b   : > { %v2931_v40 = vmul.f32 -1.442695, %v4672_v51  ;;  %v574_v53 = vsel %vm511_vm0, %v572_v32, %v573_v13  ;;  %v929_v14 = vmul.f32 %v3920_v19, %v4546_v57  ;;  %v2932_v31 = vmul.f32 -1.442695, %v4677_v61 }
 0x15c   : > { %v576_v11 = vsel %vm511_vm0, %v573_v13, %v575_v55  ;;  %v648_v23 = vadd.f32 %v574_v53, %v371_v52  ;;  %v819_v33 = vsel %vm756_vm1, %v817_v56, %v818_v6  ;;  %v821_v3 = vsel %vm756_vm1, %v818_v6, %v820_v4  ;;  %v4714_v13 = vld [vmem:[%s3900_s12 + $0x160] sm:$0xff] }
 0x15d   : > { %3251 = vpow2.f32 %v2931_v40  ;;  %v649_v62 = vadd.f32 %v576_v11, %v372_v63  ;;  %v930_v39 = vmul.f32 %v3920_v19, %v4549_v58  ;;  %v1009_v36 = vmul.f32 %v3923_v20, %v4546_v57 }
 0x15e   : > { %3253 = vpow2.f32 %v2932_v31  ;;  %v893_v43 = vadd.f32 %v819_v33, %v648_v23  ;;  %v1010_v25 = vmul.f32 %v3923_v20, %v4549_v58  ;;  %v1011_v44 = vmul.f32 %v3923_v20, %v4559_v2 }
 0x15f   : > { %v3248_v41 = vpop.eup %3247  ;;  %v894_v42 = vadd.f32 %v821_v3, %v649_v62  ;;  %v1253_v24 = vmul.f32 %v3926_v21, %v4546_v57  ;;  %v1254_v30 = vmul.f32 %v3926_v21, %v4549_v58  ;;  %v1129_v46 = vrot.slane %v1009_v36, 1 }
 0x160   : > { %v3250_v37 = vpop.eup %3249  ;;  %v2266_v38 = vmul.f32 %v3248_v41, %v4591_v12  ;;  %v961_v45 = vadd.f32 %v929_v14, %v893_v43  ;;  %v1130_v47 = vrot.slane %v1010_v25, 1  ;;  %v1132_v0 = vrot.slane %v1011_v44, 1 }
 0x161   : > { %v2267_v48 = vmul.f32 %v3250_v37, %v4598_v59  ;;  %v962_v52 = vadd.f32 %v930_v39, %v894_v42  ;;  %v1255_v63 = vmul.f32 %v3926_v21, %v4559_v2  ;;  %v1373_v5 = vrot.slane %v1253_v24, 2 }
 0x162   : > { %v1131_v35 = vsel %vm511_vm0, %v1129_v46, %v1130_v47  ;;  %v1374_v22 = vrot.slane %v1254_v30, 2  ;;  %v1485_v12 = vmul.f32 %v3933_v26, %v4702_v50  ;;  %v1133_v29 = vsel %vm511_vm0, %v1130_v47, %v1132_v0 }
 0x163   : > { %v2287_v34 = vpack.c.bf16 %v2267_v48, %v2266_v38  ;;  %v1205_v59 = vadd.f32 %v1131_v35, %v961_v45  ;;  %v1376_v32 = vrot.slane %v1255_v63, 2  ;;  %v1206_v49 = vadd.f32 %v1133_v29, %v962_v52 }
 0x164   : > { %v1375_v55 = vsel %vm756_vm1, %v1373_v5, %v1374_v22  ;;  %v1486_v56 = vmul.f32 %v3933_v26, %v4710_v8  ;;  %v1565_v6 = vmul.f32 %v3988_v27, %v4702_v50  ;;  %v1566_v4 = vmul.f32 %v3988_v27, %v4710_v8 }
 0x165   : > { %3065 = vmatmul.mubr.bf16.gmra.mrb[4].mxu1 %v2287_v34  ;;  %v1377_v40 = vsel %vm756_vm1, %v1374_v22, %v1376_v32  ;;  %v1449_v53 = vadd.f32 %v1375_v55, %v1205_v59  ;;  %v1567_v14 = vmul.f32 %v3988_v27, %v4714_v13  ;;  %v1809_v23 = vmul.f32 %v3992_v28, %v4702_v50 }
 0x166   : > { %v1450_v31 = vadd.f32 %v1377_v40, %v1206_v49  ;;  %v1685_v11 = vrot.slane %v1565_v6, 1  ;;  %v1810_v33 = vmul.f32 %v3992_v28, %v4710_v8  ;;  %v1686_v39 = vrot.slane %v1566_v4, 1 }
 0x167   : > { %v3252_v62 = vpop.eup %3251  ;;  %v1517_v3 = vadd.f32 %v1485_v12, %v1449_v53  ;;  %v1688_v43 = vrot.slane %v1567_v14, 1  ;;  %v1811_v36 = vmul.f32 %v3992_v28, %v4714_v13  ;;  %v1929_v44 = vrot.slane %v1809_v23, 2 }
 0x168   : > { %v3254_v25 = vpop.eup %3253  ;;  %v2156_v41 = vadd.f32 1.0, %v3252_v62  ;;  %v1518_v42 = vadd.f32 %v1486_v56, %v1450_v31  ;;  %v1930_v24 = vrot.slane %v1810_v33, 2  ;;  %v1687_v37 = vsel %vm511_vm0, %v1685_v11, %v1686_v39 }
 0x169   : > { %v2157_v30 = vadd.f32 1.0, %v3254_v25  ;;  %v1689_v38 = vsel %vm511_vm0, %v1686_v39, %v1688_v43  ;;  %v1932_v45 = vrot.slane %v1811_v36, 2  ;;  %v1761_v46 = vadd.f32 %v1687_v37, %v1517_v3 }
 0x16a   : > { %3255 = vrcp.f32 %v2156_v41  ;;  %v1762_v47 = vadd.f32 %v1689_v38, %v1518_v42  ;;  %v1931_v48 = vsel %vm756_vm1, %v1929_v44, %v1930_v24  ;;  %v357_v0 = vmul.f32 %v3912_v16, %v4460_v54 }
 0x16b   : > { %3257 = vrcp.f32 %v2157_v30  ;;  %v1933_v52 = vsel %vm756_vm1, %v1930_v24, %v1932_v45  ;;  %v358_v63 = vmul.f32 %v3912_v16, %v4469_v10  ;;  %v2005_v35 = vadd.f32 %v1931_v48, %v1761_v46 }
 0x16c   : > { %v2006_v5 = vadd.f32 %v1933_v52, %v1762_v47  ;;  %v430_v22 = vmul.f32 %v3915_v17, %v4460_v54  ;;  %v431_v12 = vmul.f32 %v3915_v17, %v4469_v10  ;;  %v432_v34 = vmul.f32 %v3915_v17, %v4472_v1 }
 0x16d   : > { %v675_v29 = vmul.f32 %v3918_v18, %v4460_v54  ;;  %v676_v59 = vmul.f32 %v3918_v18, %v4469_v10  ;;  %v677_v32 = vmul.f32 %v3918_v18, %v4472_v1  ;;  %v4753_v49 = vadd.f32 %v4507_v15, %v2005_v35 }
 0x16e   : > { %v4756_v55 = vadd.f32 %v4507_v15, %v2006_v5  ;;  %v537_v56 = vrot.slane %v430_v22, 1  ;;  %v538_v6 = vrot.slane %v431_v12, 1  ;;  %v540_v40 = vrot.slane %v432_v34, 1 }
 0x16f   : > { %v782_v53 = vrot.slane %v675_v29, 2  ;;  %v783_v4 = vrot.slane %v676_v59, 2  ;;  %v785_v14 = vrot.slane %v677_v32, 2  ;;  %v2947_v54 = vmul.f32 -1.442695, %v4753_v49  ;;  %v4790_v59 = vld [vmem:[%s3900_s12 + $0xb0] sm:$0xff] }
 0x170   : > { %v2948_v31 = vmul.f32 -1.442695, %v4756_v55  ;;  %v539_v10 = vsel %vm511_vm0, %v537_v56, %v538_v6  ;;  %v915_v1 = vmul.f32 %v3920_v19, %v4623_v60  ;;  %v541_v11 = vsel %vm511_vm0, %v538_v6, %v540_v40  ;;  %v4793_v6 = vld [vmem:[%s3900_s12 + $0xb8] sm:$0xff] }
 0x171   : > { %v634_v23 = vadd.f32 %v539_v10, %v357_v0  ;;  %v784_v33 = vsel %vm756_vm1, %v782_v53, %v783_v4  ;;  %v786_v62 = vsel %vm756_vm1, %v783_v4, %v785_v14  ;;  %3259 = vpow2.f32 %v2947_v54  ;;  %v4781_v0 = vld [vmem:[%s3900_s12 + $0xa8] sm:$0xff] }
 0x172   : > { %v635_v3 = vadd.f32 %v541_v11, %v358_v63  ;;  %v916_v39 = vmul.f32 %v3920_v19, %v4629_v9  ;;  %v988_v43 = vmul.f32 %v3923_v20, %v4623_v60  ;;  %3261 = vpow2.f32 %v2948_v31 }
 0x173   : > { %v879_v36 = vadd.f32 %v784_v33, %v634_v23  ;;  %v989_v25 = vmul.f32 %v3923_v20, %v4629_v9  ;;  %v990_v41 = vmul.f32 %v3923_v20, %v4635_v7  ;;  %v1232_v30 = vmul.f32 %v3926_v21, %v4623_v60 }
 0x174   : > { %v3256_v42 = vpop.eup %3255  ;;  %v880_v44 = vadd.f32 %v786_v62, %v635_v3  ;;  %v1094_v24 = vrot.slane %v988_v43, 1  ;;  %v1233_v37 = vmul.f32 %v3926_v21, %v4629_v9  ;;  %v1234_v35 = vmul.f32 %v3926_v21, %v4635_v7 }
 0x175   : > { %v3258_v38 = vpop.eup %3257  ;;  %v2252_v45 = vmul.f32 %v3256_v42, %v4672_v51  ;;  %v947_v46 = vadd.f32 %v915_v1, %v879_v36  ;;  %v1095_v47 = vrot.slane %v989_v25, 1  ;;  %v1097_v48 = vrot.slane %v990_v41, 1 }
 0x176   : > { %v2253_v52 = vmul.f32 %v3258_v38, %v4677_v61  ;;  %v948_v63 = vadd.f32 %v916_v39, %v880_v44  ;;  %v1338_v5 = vrot.slane %v1232_v30, 2  ;;  %v1339_v34 = vrot.slane %v1233_v37, 2 }
 0x177   : > { %v1096_v22 = vsel %vm511_vm0, %v1094_v24, %v1095_v47  ;;  %v1098_v12 = vsel %vm511_vm0, %v1095_v47, %v1097_v48  ;;  %v1471_v51 = vmul.f32 %v3933_v26, %v4781_v0  ;;  %v1341_v56 = vrot.slane %v1234_v35, 2 }
 0x178   : > { %v2280_v29 = vpack.c.bf16 %v2253_v52, %v2252_v45  ;;  %v1191_v32 = vadd.f32 %v1096_v22, %v947_v46  ;;  %v1192_v61 = vadd.f32 %v1098_v12, %v948_v63  ;;  %v1340_v40 = vsel %vm756_vm1, %v1338_v5, %v1339_v34 }
 0x179   : > { %v1472_v53 = vmul.f32 %v3933_v26, %v4790_v59  ;;  %v1544_v4 = vmul.f32 %v3988_v27, %v4781_v0  ;;  %v1545_v14 = vmul.f32 %v3988_v27, %v4790_v59  ;;  %v1342_v54 = vsel %vm756_vm1, %v1339_v34, %v1341_v56 }
 0x17a   : > { %3052 = vmatprep.mubr.bf16.mxu0 %v2280_v29  ;;  %v1435_v31 = vadd.f32 %v1340_v40, %v1191_v32  ;;  %v1546_v10 = vmul.f32 %v3988_v27, %v4793_v6  ;;  %v1788_v1 = vmul.f32 %v3992_v28, %v4781_v0  ;;  %v1436_v11 = vadd.f32 %v1342_v54, %v1192_v61 }
 0x17b   : > { %v1650_v23 = vrot.slane %v1544_v4, 1  ;;  %v1651_v33 = vrot.slane %v1545_v14, 1  ;;  %v1789_v62 = vmul.f32 %v3992_v28, %v4790_v59  ;;  %v3260_v3 = vpop.eup %3259  ;;  %v1790_v36 = vmul.f32 %v3992_v28, %v4793_v6 }
 0x17c   : > { %v1503_v39 = vadd.f32 %v1471_v51, %v1435_v31  ;;  %v1653_v43 = vrot.slane %v1546_v10, 1  ;;  %v1894_v25 = vrot.slane %v1788_v1, 2  ;;  %v3262_v41 = vpop.eup %3261  ;;  %v2172_v42 = vadd.f32 1.0, %v3260_v3 }
 0x17d   : > { %v1504_v44 = vadd.f32 %v1472_v53, %v1436_v11  ;;  %v1652_v24 = vsel %vm511_vm0, %v1650_v23, %v1651_v33  ;;  %v1895_v30 = vrot.slane %v1789_v62, 2  ;;  %v2173_v37 = vadd.f32 1.0, %v3262_v41 }
 0x17e   : > { %v1654_v38 = vsel %vm511_vm0, %v1651_v33, %v1653_v43  ;;  %v1747_v45 = vadd.f32 %v1652_v24, %v1503_v39  ;;  %v1897_v46 = vrot.slane %v1790_v36, 2  ;;  %3263 = vrcp.f32 %v2172_v42 }
 0x17f   : > { %v1748_v47 = vadd.f32 %v1654_v38, %v1504_v44  ;;  %v1896_v48 = vsel %vm756_vm1, %v1894_v25, %v1895_v30  ;;  %v373_v52 = vmul.f32 %v3912_v16, %v4546_v57  ;;  %3265 = vrcp.f32 %v2173_v37 }
 0x180   : > { %v1898_v63 = vsel %vm756_vm1, %v1895_v30, %v1897_v46  ;;  %v1991_v35 = vadd.f32 %v1896_v48, %v1747_v45  ;;  %v374_v5 = vmul.f32 %v3912_v16, %v4549_v58  ;;  %v454_v12 = vmul.f32 %v3915_v17, %v4546_v57 }
 0x181   : > { %v1992_v22 = vadd.f32 %v1898_v63, %v1748_v47  ;;  %v455_v34 = vmul.f32 %v3915_v17, %v4549_v58  ;;  %v456_v51 = vmul.f32 %v3915_v17, %v4559_v2  ;;  %v699_v32 = vmul.f32 %v3918_v18, %v4546_v57 }
 0x182   : > { %v4826_v29 = vadd.f32 %v4507_v15, %v1991_v35  ;;  %v700_v61 = vmul.f32 %v3918_v18, %v4549_v58  ;;  %v701_v56 = vmul.f32 %v3918_v18, %v4559_v2  ;;  %v577_v53 = vrot.slane %v454_v12, 1  ;;  %v4862_v35 = vld [vmem:[%s3900_s12 + $0x168] sm:$0xff] }
 0x183   : > { %v4835_v40 = vadd.f32 %v4507_v15, %v1992_v22  ;;  %v578_v4 = vrot.slane %v455_v34, 1  ;;  %v580_v14 = vrot.slane %v456_v51, 1  ;;  %v822_v31 = vrot.slane %v699_v32, 2 }
 0x184   : > { %v2933_v54 = vmul.f32 -1.442695, %v4826_v29  ;;  %v823_v10 = vrot.slane %v700_v61, 2  ;;  %v825_v1 = vrot.slane %v701_v56, 2  ;;  %v931_v2 = vmul.f32 %v3920_v19, %v4702_v50 }
 0x185   : > { %v2934_v11 = vmul.f32 -1.442695, %v4835_v40  ;;  %v579_v57 = vsel %vm511_vm0, %v577_v53, %v578_v4  ;;  %v581_v58 = vsel %vm511_vm0, %v578_v4, %v580_v14  ;;  %v932_v39 = vmul.f32 %v3920_v19, %v4710_v8  ;;  %v4875_v14 = vld [vmem:[%s3900_s12 + $0x178] sm:$0xff] }
 0x186   : > { %3267 = vpow2.f32 %v2933_v54  ;;  %v650_v23 = vadd.f32 %v579_v57, %v373_v52  ;;  %v651_v33 = vadd.f32 %v581_v58, %v374_v5  ;;  %v824_v62 = vsel %vm756_vm1, %v822_v31, %v823_v10  ;;  %v4865_v5 = vld [vmem:[%s3900_s12 + $0x170] sm:$0xff] }
 0x187   : > { %3269 = vpow2.f32 %v2934_v11  ;;  %v826_v3 = vsel %vm756_vm1, %v823_v10, %v825_v1  ;;  %v1012_v43 = vmul.f32 %v3923_v20, %v4702_v50  ;;  %v1013_v41 = vmul.f32 %v3923_v20, %v4710_v8 }
 0x188   : > { %v895_v36 = vadd.f32 %v824_v62, %v650_v23  ;;  %v896_v25 = vadd.f32 %v826_v3, %v651_v33  ;;  %v1014_v42 = vmul.f32 %v3923_v20, %v4714_v13  ;;  %v3264_v44 = vpop.eup %3263  ;;  %v1256_v30 = vmul.f32 %v3926_v21, %v4702_v50 }
 0x189   : > { %v1134_v24 = vrot.slane %v1012_v43, 1  ;;  %v1257_v37 = vmul.f32 %v3926_v21, %v4710_v8  ;;  %v1258_v38 = vmul.f32 %v3926_v21, %v4714_v13  ;;  %v3266_v45 = vpop.eup %3265  ;;  %v2268_v46 = vmul.f32 %v3264_v44, %v4753_v49 }
 0x18a   : > { %v963_v47 = vadd.f32 %v931_v2, %v895_v36  ;;  %v964_v48 = vadd.f32 %v932_v39, %v896_v25  ;;  %v1135_v52 = vrot.slane %v1013_v41, 1  ;;  %v2269_v63 = vmul.f32 %v3266_v45, %v4756_v55 }
 0x18b   : > { %v1137_v22 = vrot.slane %v1014_v42, 1  ;;  %v1378_v12 = vrot.slane %v1256_v30, 2  ;;  %v1379_v34 = vrot.slane %v1257_v37, 2  ;;  %v1381_v32 = vrot.slane %v1258_v38, 2 }
 0x18c   : > { %v1136_v51 = vsel %vm511_vm0, %v1134_v24, %v1135_v52  ;;  %v1487_v61 = vmul.f32 %v3933_v26, %v4862_v35  ;;  %v1488_v49 = vmul.f32 %v3933_v26, %v4865_v5  ;;  %v2288_v56 = vpack.c.bf16 %v2269_v63, %v2268_v46 }
 0x18d   : > { %v1138_v53 = vsel %vm511_vm0, %v1135_v52, %v1137_v22  ;;  %v1207_v55 = vadd.f32 %v1136_v51, %v963_v47  ;;  %v1380_v4 = vsel %vm756_vm1, %v1378_v12, %v1379_v34  ;;  %v1382_v31 = vsel %vm756_vm1, %v1379_v34, %v1381_v32 }
 0x18e   : > { %v1208_v54 = vadd.f32 %v1138_v53, %v964_v48  ;;  %v1568_v10 = vmul.f32 %v3988_v27, %v4862_v35  ;;  %v1569_v1 = vmul.f32 %v3988_v27, %v4865_v5  ;;  %3068 = vmatprep.mubr.bf16.mxu1 %v2288_v56  ;;  %v1570_v57 = vmul.f32 %v3988_v27, %v4875_v14 }
 0x18f   : > { %v1451_v11 = vadd.f32 %v1380_v4, %v1207_v55  ;;  %v1812_v58 = vmul.f32 %v3992_v28, %v4862_v35  ;;  %v1813_v2 = vmul.f32 %v3992_v28, %v4865_v5  ;;  %v1814_v39 = vmul.f32 %v3992_v28, %v4875_v14 }
 0x190   : > { %v3268_v23 = vpop.eup %3267  ;;  %v1452_v33 = vadd.f32 %v1382_v31, %v1208_v54  ;;  %v1690_v62 = vrot.slane %v1568_v10, 1  ;;  %v1691_v3 = vrot.slane %v1569_v1, 1  ;;  %v1693_v41 = vrot.slane %v1570_v57, 1 }
 0x191   : > { %v3270_v43 = vpop.eup %3269  ;;  %v2158_v36 = vadd.f32 1.0, %v3268_v23  ;;  %v1519_v25 = vadd.f32 %v1487_v61, %v1451_v11  ;;  %v1934_v42 = vrot.slane %v1812_v58, 2  ;;  %v1935_v37 = vrot.slane %v1813_v2, 2 }
 0x192   : > { %v2159_v44 = vadd.f32 1.0, %v3270_v43  ;;  %v1520_v24 = vadd.f32 %v1488_v49, %v1452_v33  ;;  %v1692_v30 = vsel %vm511_vm0, %v1690_v62, %v1691_v3  ;;  %v1694_v38 = vsel %vm511_vm0, %v1691_v3, %v1693_v41 }
 0x193   : > { %3271 = vrcp.f32 %v2158_v36  ;;  %v1763_v45 = vadd.f32 %v1692_v30, %v1519_v25  ;;  %v1937_v46 = vrot.slane %v1814_v39, 2  ;;  %v1936_v48 = vsel %vm756_vm1, %v1934_v42, %v1935_v37 }
 0x194   : > { %3273 = vrcp.f32 %v2159_v44  ;;  %v1764_v47 = vadd.f32 %v1694_v38, %v1520_v24  ;;  %v359_v52 = vmul.f32 %v3912_v16, %v4623_v60  ;;  %v360_v12 = vmul.f32 %v3912_v16, %v4629_v9 }
 0x195   : > { %v1938_v63 = vsel %vm756_vm1, %v1935_v37, %v1937_v46  ;;  %v2007_v22 = vadd.f32 %v1936_v48, %v1763_v45  ;;  %v433_v34 = vmul.f32 %v3915_v17, %v4623_v60  ;;  %v434_v32 = vmul.f32 %v3915_v17, %v4629_v9 }
 0x196   : > { %v2008_v51 = vadd.f32 %v1938_v63, %v1764_v47  ;;  %v435_v61 = vmul.f32 %v3915_v17, %v4635_v7  ;;  %v678_v49 = vmul.f32 %v3918_v18, %v4623_v60  ;;  %v679_v55 = vmul.f32 %v3918_v18, %v4629_v9 }
 0x197   : > { %v4907_v56 = vadd.f32 %v4507_v15, %v2007_v22  ;;  %v542_v53 = vrot.slane %v433_v34, 1  ;;  %v680_v4 = vmul.f32 %v3918_v18, %v4635_v7  ;;  %v543_v31 = vrot.slane %v434_v32, 1 }
 0x198   : > { %v4914_v54 = vadd.f32 %v4507_v15, %v2008_v51  ;;  %v545_v10 = vrot.slane %v435_v61, 1  ;;  %v787_v1 = vrot.slane %v678_v49, 2  ;;  %v788_v57 = vrot.slane %v679_v55, 2  ;;  %v4943_v61 = vld [vmem:[%s3900_s12 + $0xc0] sm:$0xff] }
 0x199   : > { %v2949_v11 = vmul.f32 -1.442695, %v4907_v56  ;;  %v790_v60 = vrot.slane %v680_v4, 2  ;;  %v917_v58 = vmul.f32 %v3920_v19, %v4781_v0  ;;  %v544_v9 = vsel %vm511_vm0, %v542_v53, %v543_v31  ;;  %v4949_v4 = vld [vmem:[%s3900_s12 + $0xc8] sm:$0xff] }
 0x19a   : > { %v2950_v2 = vmul.f32 -1.442695, %v4914_v54  ;;  %v546_v23 = vsel %vm511_vm0, %v543_v31, %v545_v10  ;;  %v918_v15 = vmul.f32 %v3920_v19, %v4790_v59  ;;  %v636_v7 = vadd.f32 %v544_v9, %v359_v52 }
 0x19b   : > { %3275 = vpow2.f32 %v2949_v11  ;;  %v637_v33 = vadd.f32 %v546_v23, %v360_v12  ;;  %v789_v62 = vsel %vm756_vm1, %v787_v1, %v788_v57  ;;  %v791_v3 = vsel %vm756_vm1, %v788_v57, %v790_v60  ;;  %v4958_v57 = vld [vmem:[%s3900_s12 + $0xd0] sm:$0xff] }
 0x19c   : > { %3277 = vpow2.f32 %v2950_v2  ;;  %v991_v39 = vmul.f32 %v3923_v20, %v4781_v0  ;;  %v992_v43 = vmul.f32 %v3923_v20, %v4790_v59  ;;  %v881_v25 = vadd.f32 %v789_v62, %v636_v7 }
 0x19d   : > { %v3272_v36 = vpop.eup %3271  ;;  %v882_v41 = vadd.f32 %v791_v3, %v637_v33  ;;  %v993_v42 = vmul.f32 %v3923_v20, %v4793_v6  ;;  %v1235_v44 = vmul.f32 %v3926_v21, %v4781_v0  ;;  %v1236_v45 = vmul.f32 %v3926_v21, %v4790_v59 }
 0x19e   : > { %v3274_v24 = vpop.eup %3273  ;;  %v2254_v30 = vmul.f32 %v3272_v36, %v4826_v29  ;;  %v1099_v37 = vrot.slane %v991_v39, 1  ;;  %v1100_v38 = vrot.slane %v992_v43, 1  ;;  %v949_v47 = vadd.f32 %v917_v58, %v881_v25 }
 0x19f   : > { %v2255_v46 = vmul.f32 %v3274_v24, %v4835_v40  ;;  %v950_v48 = vadd.f32 %v918_v15, %v882_v41  ;;  %v1102_v52 = vrot.slane %v993_v42, 1  ;;  %v1237_v22 = vmul.f32 %v3926_v21, %v4793_v6 }
 0x1a0   : > { %v1101_v63 = vsel %vm511_vm0, %v1099_v37, %v1100_v38  ;;  %v1343_v12 = vrot.slane %v1235_v44, 2  ;;  %v1344_v34 = vrot.slane %v1236_v45, 2  ;;  %v1473_v40 = vmul.f32 %v4943_v61, %v3933_v26 }
 0x1a1   : > { %v2281_v29 = vpack.c.bf16 %v2255_v46, %v2254_v30  ;;  %v1103_v51 = vsel %vm511_vm0, %v1100_v38, %v1102_v52  ;;  %v1193_v32 = vadd.f32 %v1101_v63, %v949_v47  ;;  %v1346_v55 = vrot.slane %v1237_v22, 2 }
 0x1a2   : > { %v1194_v49 = vadd.f32 %v1103_v51, %v950_v48  ;;  %v1345_v53 = vsel %vm756_vm1, %v1343_v12, %v1344_v34  ;;  %v1474_v31 = vmul.f32 %v4949_v4, %v3933_v26  ;;  %v1547_v1 = vmul.f32 %v4943_v61, %v3988_v27 }
 0x1a3   : > { %3053 = vmatmul.mubr.bf16.gmra.mrb[8].mxu0 %v2281_v29  ;;  %v1437_v10 = vadd.f32 %v1345_v53, %v1193_v32  ;;  %v1548_v11 = vmul.f32 %v4949_v4, %v3988_v27  ;;  %v1549_v60 = vmul.f32 %v4958_v57, %v3988_v27  ;;  %v1347_v58 = vsel %vm756_vm1, %v1344_v34, %v1346_v55 }
 0x1a4   : > { %v1791_v2 = vmul.f32 %v4943_v61, %v3992_v28  ;;  %v1792_v9 = vmul.f32 %v4949_v4, %v3992_v28  ;;  %v1793_v23 = vmul.f32 %v4958_v57, %v3992_v28  ;;  %v1438_v7 = vadd.f32 %v1347_v58, %v1194_v49 }
 0x1a5   : > { %v3276_v15 = vpop.eup %3275  ;;  %v1505_v33 = vadd.f32 %v1473_v40, %v1437_v10  ;;  %v1655_v62 = vrot.slane %v1547_v1, 1  ;;  %v1656_v3 = vrot.slane %v1548_v11, 1  ;;  %v1658_v36 = vrot.slane %v1549_v60, 1  ;;  %v4990_v40 = vld [vmem:[%s5371_s2] ss:$0 sm:$0xff] }
 0x1a6   : > { %v3278_v39 = vpop.eup %3277  ;;  %v2174_v43 = vadd.f32 1.0, %v3276_v15  ;;  %v1899_v25 = vrot.slane %v1791_v2, 2  ;;  %v1900_v41 = vrot.slane %v1792_v9, 2  ;;  %v1506_v44 = vadd.f32 %v1474_v31, %v1438_v7 }
 0x1a7   : > { %v2175_v42 = vadd.f32 1.0, %v3278_v39  ;;  %v1657_v24 = vsel %vm511_vm0, %v1655_v62, %v1656_v3  ;;  %v1902_v30 = vrot.slane %v1793_v23, 2  ;;  %v1659_v37 = vsel %vm511_vm0, %v1656_v3, %v1658_v36 }
 0x1a8   : > { %3279 = vrcp.f32 %v2174_v43  ;;  %v1749_v38 = vadd.f32 %v1657_v24, %v1505_v33  ;;  %v1901_v45 = vsel %vm756_vm1, %v1899_v25, %v1900_v41  ;;  %v1750_v46 = vadd.f32 %v1659_v37, %v1506_v44 }
 0x1a9   : > { %3281 = vrcp.f32 %v2175_v42  ;;  %v1903_v47 = vsel %vm756_vm1, %v1900_v41, %v1902_v30  ;;  %v375_v48 = vmul.f32 %v3912_v16, %v4702_v50  ;;  %v376_v63 = vmul.f32 %v3912_v16, %v4710_v8 }
 0x1aa   : > { %v1993_v52 = vadd.f32 %v1901_v45, %v1749_v38  ;;  %v457_v22 = vmul.f32 %v3915_v17, %v4702_v50  ;;  %v458_v12 = vmul.f32 %v3915_v17, %v4710_v8  ;;  %v1994_v34 = vadd.f32 %v1903_v47, %v1750_v46  ;;  %v5023_v47 = vld [vmem:[%s3900_s12 + $0x180] sm:$0xff] }
 0x1ab   : > { %v459_v29 = vmul.f32 %v3915_v17, %v4714_v13  ;;  %v702_v51 = vmul.f32 %v3918_v18, %v4702_v50  ;;  %v703_v32 = vmul.f32 %v3918_v18, %v4710_v8  ;;  %v704_v31 = vmul.f32 %v3918_v18, %v4714_v13 }
 0x1ac   : > { %v4993_v49 = vadd.f32 %v4990_v40, %v1993_v52  ;;  %v582_v53 = vrot.slane %v457_v22, 1  ;;  %v583_v55 = vrot.slane %v458_v12, 1  ;;  %v4998_v10 = vadd.f32 %v4990_v40, %v1994_v34 }
 0x1ad   : > { %v585_v50 = vrot.slane %v459_v29, 1  ;;  %v827_v1 = vrot.slane %v702_v51, 2  ;;  %v828_v11 = vrot.slane %v703_v32, 2  ;;  %v830_v58 = vrot.slane %v704_v31, 2  ;;  %v5031_v51 = vld [vmem:[%s3900_s12 + $0x188] sm:$0xff] }
 0x1ae   : > { %v2935_v8 = vmul.f32 -1.442695, %v4993_v49  ;;  %v584_v60 = vsel %vm511_vm0, %v582_v53, %v583_v55  ;;  %v933_v2 = vmul.f32 %v3920_v19, %v4862_v35  ;;  %v2936_v9 = vmul.f32 -1.442695, %v4998_v10 }
 0x1af   : > { %v586_v23 = vsel %vm511_vm0, %v583_v55, %v585_v50  ;;  %v652_v15 = vadd.f32 %v584_v60, %v375_v48  ;;  %v829_v13 = vsel %vm756_vm1, %v827_v1, %v828_v11  ;;  %v831_v33 = vsel %vm756_vm1, %v828_v11, %v830_v58  ;;  %v5035_v55 = vld [vmem:[%s3900_s12 + $0x190] sm:$0xff] }
 0x1b0   : > { %3283 = vpow2.f32 %v2935_v8  ;;  %v653_v7 = vadd.f32 %v586_v23, %v376_v63  ;;  %v934_v62 = vmul.f32 %v3920_v19, %v4865_v5  ;;  %v1015_v39 = vmul.f32 %v3923_v20, %v4862_v35 }
 0x1b1   : > { %3285 = vpow2.f32 %v2936_v9  ;;  %v897_v3 = vadd.f32 %v829_v13, %v652_v15  ;;  %v1016_v43 = vmul.f32 %v3923_v20, %v4865_v5  ;;  %v1017_v41 = vmul.f32 %v3923_v20, %v4875_v14 }
 0x1b2   : > { %v3280_v36 = vpop.eup %3279  ;;  %v898_v25 = vadd.f32 %v831_v33, %v653_v7  ;;  %v1259_v42 = vmul.f32 %v3926_v21, %v4862_v35  ;;  %v1260_v44 = vmul.f32 %v3926_v21, %v4865_v5  ;;  %v1139_v38 = vrot.slane %v1015_v39, 1 }
 0x1b3   : > { %v3282_v24 = vpop.eup %3281  ;;  %v2270_v30 = vmul.f32 %v3280_v36, %v4907_v56  ;;  %v965_v37 = vadd.f32 %v933_v2, %v897_v3  ;;  %v1140_v45 = vrot.slane %v1016_v43, 1  ;;  %v1142_v52 = vrot.slane %v1017_v41, 1 }
 0x1b4   : > { %v2271_v46 = vmul.f32 %v3282_v24, %v4914_v54  ;;  %v966_v48 = vadd.f32 %v934_v62, %v898_v25  ;;  %v1261_v63 = vmul.f32 %v3926_v21, %v4875_v14  ;;  %v1383_v12 = vrot.slane %v1259_v42, 2 }
 0x1b5   : > { %v1141_v22 = vsel %vm511_vm0, %v1139_v38, %v1140_v45  ;;  %v1384_v34 = vrot.slane %v1260_v44, 2  ;;  %v1489_v56 = vmul.f32 %v3933_v26, %v5023_v47  ;;  %v1143_v32 = vsel %vm511_vm0, %v1140_v45, %v1142_v52 }
 0x1b6   : > { %v2289_v29 = vpack.c.bf16 %v2271_v46, %v2270_v30  ;;  %v1209_v54 = vadd.f32 %v1141_v22, %v965_v37  ;;  %v1386_v53 = vrot.slane %v1261_v63, 2  ;;  %v1210_v31 = vadd.f32 %v1143_v32, %v966_v48 }
 0x1b7   : > { %v1385_v50 = vsel %vm756_vm1, %v1383_v12, %v1384_v34  ;;  %v1490_v1 = vmul.f32 %v3933_v26, %v5031_v51  ;;  %v1571_v11 = vmul.f32 %v3988_v27, %v5023_v47  ;;  %v1572_v58 = vmul.f32 %v3988_v27, %v5031_v51 }
 0x1b8   : > { %3069 = vmatmul.mubr.bf16.gmra.mrb[8].mxu1 %v2289_v29  ;;  %v1387_v8 = vsel %vm756_vm1, %v1384_v34, %v1386_v53  ;;  %v1453_v60 = vadd.f32 %v1385_v50, %v1209_v54  ;;  %v1573_v2 = vmul.f32 %v3988_v27, %v5035_v55  ;;  %v1815_v15 = vmul.f32 %v3992_v28, %v5023_v47 }
 0x1b9   : > { %v1454_v9 = vadd.f32 %v1387_v8, %v1210_v31  ;;  %v1695_v23 = vrot.slane %v1571_v11, 1  ;;  %v1816_v13 = vmul.f32 %v3992_v28, %v5031_v51  ;;  %v1696_v62 = vrot.slane %v1572_v58, 1 }
 0x1ba   : > { %v3284_v7 = vpop.eup %3283  ;;  %v1521_v33 = vadd.f32 %v1489_v56, %v1453_v60  ;;  %v1698_v3 = vrot.slane %v1573_v2, 1  ;;  %v1817_v39 = vmul.f32 %v3992_v28, %v5035_v55  ;;  %v1939_v41 = vrot.slane %v1815_v15, 2 }
 0x1bb   : > { %v3286_v43 = vpop.eup %3285  ;;  %v2160_v36 = vadd.f32 1.0, %v3284_v7  ;;  %v1522_v25 = vadd.f32 %v1490_v1, %v1454_v9  ;;  %v1940_v42 = vrot.slane %v1816_v13, 2  ;;  %v1697_v24 = vsel %vm511_vm0, %v1695_v23, %v1696_v62 }
 0x1bc   : > { %v2161_v44 = vadd.f32 1.0, %v3286_v43  ;;  %v1699_v30 = vsel %vm511_vm0, %v1696_v62, %v1698_v3  ;;  %v1942_v37 = vrot.slane %v1817_v39, 2  ;;  %v1765_v38 = vadd.f32 %v1697_v24, %v1521_v33 }
 0x1bd   : > { %3287 = vrcp.f32 %v2160_v36  ;;  %v1766_v45 = vadd.f32 %v1699_v30, %v1522_v25  ;;  %v1941_v46 = vsel %vm756_vm1, %v1939_v41, %v1940_v42  ;;  %v361_v52 = vmul.f32 %v3912_v16, %v4781_v0 }
 0x1be   : > { %3289 = vrcp.f32 %v2161_v44  ;;  %v1943_v48 = vsel %vm756_vm1, %v1940_v42, %v1942_v37  ;;  %v362_v63 = vmul.f32 %v3912_v16, %v4790_v59  ;;  %v2009_v22 = vadd.f32 %v1941_v46, %v1765_v38 }
 0x1bf   : > { %v2010_v12 = vadd.f32 %v1943_v48, %v1766_v45  ;;  %v436_v34 = vmul.f32 %v3915_v17, %v4781_v0  ;;  %v437_v56 = vmul.f32 %v3915_v17, %v4790_v59  ;;  %v438_v29 = vmul.f32 %v3915_v17, %v4793_v6 }
 0x1c0   : > { %v681_v32 = vmul.f32 %v3918_v18, %v4781_v0  ;;  %v682_v54 = vmul.f32 %v3918_v18, %v4790_v59  ;;  %v683_v53 = vmul.f32 %v3918_v18, %v4793_v6  ;;  %v5074_v31 = vadd.f32 %v4990_v40, %v2009_v22 }
 0x1c1   : > { %v5077_v50 = vadd.f32 %v4990_v40, %v2010_v12  ;;  %v547_v1 = vrot.slane %v436_v34, 1  ;;  %v548_v11 = vrot.slane %v437_v56, 1  ;;  %v550_v8 = vrot.slane %v438_v29, 1  ;;  %v3448_v34 = vld [vmem:[%s3900_s12 + $0xd8] sm:$0xff] }
 0x1c2   : > { %v792_v60 = vrot.slane %v681_v32, 2  ;;  %v793_v58 = vrot.slane %v682_v54, 2  ;;  %v795_v2 = vrot.slane %v683_v53, 2  ;;  %v2951_v0 = vmul.f32 -1.442695, %v5074_v31  ;;  %v3449_v53 = vld [vmem:[%s3900_s12 + $0xe0] sm:$0xff] }
 0x1c3   : > { %v2952_v9 = vmul.f32 -1.442695, %v5077_v50  ;;  %v549_v59 = vsel %vm511_vm0, %v547_v1, %v548_v11  ;;  %v919_v6 = vmul.f32 %v4943_v61, %v3920_v19  ;;  %v551_v23 = vsel %vm511_vm0, %v548_v11, %v550_v8 }
 0x1c4   : > { %v638_v15 = vadd.f32 %v549_v59, %v361_v52  ;;  %v794_v13 = vsel %vm756_vm1, %v792_v60, %v793_v58  ;;  %v796_v7 = vsel %vm756_vm1, %v793_v58, %v795_v2  ;;  %3291 = vpow2.f32 %v2951_v0  ;;  %v3450_v58 = vld [vmem:[%s3900_s12 + $0xe8] sm:$0xff] }
 0x1c5   : > { %v639_v33 = vadd.f32 %v551_v23, %v362_v63  ;;  %v920_v62 = vmul.f32 %v4949_v4, %v3920_v19  ;;  %v994_v3 = vmul.f32 %v4943_v61, %v3923_v20  ;;  %3293 = vpow2.f32 %v2952_v9 }
 0x1c6   : > { %v883_v39 = vadd.f32 %v794_v13, %v638_v15  ;;  %v995_v43 = vmul.f32 %v4949_v4, %v3923_v20  ;;  %v996_v36 = vmul.f32 %v4958_v57, %v3923_v20  ;;  %v1238_v44 = vmul.f32 %v4943_v61, %v3926_v21 }
 0x1c7   : > { %v3288_v25 = vpop.eup %3287  ;;  %v884_v41 = vadd.f32 %v796_v7, %v639_v33  ;;  %v1104_v42 = vrot.slane %v994_v3, 1  ;;  %v1239_v24 = vmul.f32 %v4949_v4, %v3926_v21  ;;  %v1240_v63 = vmul.f32 %v4958_v57, %v3926_v21 }
 0x1c8   : > { %v3290_v30 = vpop.eup %3289  ;;  %v2256_v37 = vmul.f32 %v3288_v25, %v4993_v49  ;;  %v951_v38 = vadd.f32 %v919_v6, %v883_v39  ;;  %v1105_v45 = vrot.slane %v995_v43, 1  ;;  %v1107_v46 = vrot.slane %v996_v36, 1 }
 0x1c9   : > { %v2257_v48 = vmul.f32 %v3290_v30, %v4998_v10  ;;  %v952_v52 = vadd.f32 %v920_v62, %v884_v41  ;;  %v1348_v22 = vrot.slane %v1238_v44, 2  ;;  %v1349_v4 = vrot.slane %v1239_v24, 2 }
 0x1ca   : > { %v1106_v12 = vsel %vm511_vm0, %v1104_v42, %v1105_v45  ;;  %v1108_v61 = vsel %vm511_vm0, %v1105_v45, %v1107_v46  ;;  %v1475_v49 = vmul.f32 %v3448_v34, %v3933_v26  ;;  %v1351_v54 = vrot.slane %v1240_v63, 2 }
 0x1cb   : > { %v2282_v56 = vpack.c.bf16 %v2257_v48, %v2256_v37  ;;  %v1195_v29 = vadd.f32 %v1106_v12, %v951_v38  ;;  %v1196_v32 = vadd.f32 %v1108_v61, %v952_v52  ;;  %v1350_v10 = vsel %vm756_vm1, %v1348_v22, %v1349_v4 }
 0x1cc   : > { %v1476_v1 = vmul.f32 %v3449_v53, %v3933_v26  ;;  %v1550_v57 = vmul.f32 %v3448_v34, %v3988_v27  ;;  %v1551_v11 = vmul.f32 %v3449_v53, %v3988_v27  ;;  %v1352_v8 = vsel %vm756_vm1, %v1349_v4, %v1351_v54 }
 0x1cd   : > { %3056 = vmatprep.mubr.bf16.mxu0 %v2282_v56  ;;  %v1439_v60 = vadd.f32 %v1350_v10, %v1195_v29  ;;  %v1552_v2 = vmul.f32 %v3450_v58, %v3988_v27  ;;  %v1794_v0 = vmul.f32 %v3448_v34, %v3992_v28  ;;  %v1440_v9 = vadd.f32 %v1352_v8, %v1196_v32 }
 0x1ce   : > { %v1660_v59 = vrot.slane %v1550_v57, 1  ;;  %v1661_v6 = vrot.slane %v1551_v11, 1  ;;  %v1795_v23 = vmul.f32 %v3449_v53, %v3992_v28  ;;  %v3292_v15 = vpop.eup %3291  ;;  %v1796_v33 = vmul.f32 %v3450_v58, %v3992_v28 }
 0x1cf   : > { %v1507_v13 = vadd.f32 %v1475_v49, %v1439_v60  ;;  %v1663_v7 = vrot.slane %v1552_v2, 1  ;;  %v1904_v62 = vrot.slane %v1794_v0, 2  ;;  %v3294_v3 = vpop.eup %3293  ;;  %v2176_v39 = vadd.f32 1.0, %v3292_v15 }
 0x1d0   : > { %v1508_v43 = vadd.f32 %v1476_v1, %v1440_v9  ;;  %v1662_v36 = vsel %vm511_vm0, %v1660_v59, %v1661_v6  ;;  %v1905_v25 = vrot.slane %v1795_v23, 2  ;;  %v5119_v41 = vpop.f32.mrb[0].mxu0  ;;  %v2177_v42 = vadd.f32 1.0, %v3294_v3 }
 0x1d1   : > { %v1664_v44 = vsel %vm511_vm0, %v1661_v6, %v1663_v7  ;;  %v1751_v24 = vadd.f32 %v1662_v36, %v1507_v13  ;;  %v1907_v30 = vrot.slane %v1796_v33, 2  ;;  %v5122_v37 = vpop.f32.mrb[1].mxu0  ;;  %3295 = vrcp.f32 %v2176_v39  ;;  %v337_v33 = vld [vmem:[%s3900_s12 + $0x198] sm:$0xff] }
 0x1d2   : > { %v1752_v38 = vadd.f32 %v1664_v44, %v1508_v43  ;;  %v1906_v45 = vsel %vm756_vm1, %v1904_v62, %v1905_v25  ;;  %v377_v46 = vmul.f32 %v3912_v16, %v4862_v35  ;;  %v5127_v48 = vpop.f32.mrb[2].mxu0  ;;  %3297 = vrcp.f32 %v2177_v42  ;;  %v338_v62 = vld [vmem:[%s3900_s12 + $0x1a0] sm:$0xff] }
 0x1d3   : > { %v1908_v52 = vsel %vm756_vm1, %v1905_v25, %v1907_v30  ;;  %v1995_v63 = vadd.f32 %v1906_v45, %v1751_v24  ;;  %v378_v22 = vmul.f32 %v3912_v16, %v4865_v5  ;;  %v5132_v12 = vpop.f32.mrb[3].mxu0  ;;  %v460_v4 = vmul.f32 %v3915_v17, %v4862_v35 }
 0x1d4   : > { %v1996_v61 = vadd.f32 %v1908_v52, %v1752_v38  ;;  %v461_v34 = vmul.f32 %v3915_v17, %v4865_v5  ;;  %v462_v49 = vmul.f32 %v3915_v17, %v4875_v14  ;;  %v705_v29 = vmul.f32 %v3918_v18, %v4862_v35 }
 0x1d5   : > { %v5141_v56 = vadd.f32 %v4990_v40, %v1995_v63  ;;  %v706_v16 = vmul.f32 %v3918_v18, %v4865_v5  ;;  %v707_v32 = vmul.f32 %v3918_v18, %v4875_v14  ;;  %v587_v10 = vrot.slane %v460_v4, 1 }
 0x1d6   : > { %v5150_v54 = vadd.f32 %v4990_v40, %v1996_v61  ;;  %v588_v53 = vrot.slane %v461_v34, 1  ;;  %v590_v1 = vrot.slane %v462_v49, 1  ;;  %v832_v57 = vrot.slane %v705_v29, 2 }
 0x1d7   : > { %v2937_v17 = vmul.f32 -1.442695, %v5141_v56  ;;  %v833_v11 = vrot.slane %v706_v16, 2  ;;  %v835_v8 = vrot.slane %v707_v32, 2  ;;  %v935_v18 = vmul.f32 %v3920_v19, %v5023_v47 }
 0x1d8   : > { %v2938_v60 = vmul.f32 -1.442695, %v5150_v54  ;;  %v589_v35 = vsel %vm511_vm0, %v587_v10, %v588_v53  ;;  %v591_v5 = vsel %vm511_vm0, %v588_v53, %v590_v1  ;;  %v936_v9 = vmul.f32 %v3920_v19, %v5031_v51 }
 0x1d9   : > { %3299 = vpow2.f32 %v2937_v17  ;;  %v654_v14 = vadd.f32 %v589_v35, %v377_v46  ;;  %v655_v58 = vadd.f32 %v591_v5, %v378_v22  ;;  %v834_v2 = vsel %vm756_vm1, %v832_v57, %v833_v11  ;;  %v339_v46 = vld [vmem:[%s3900_s12 + $0x1a8] sm:$0xff]  ;;  %v5194_v5 = vld [vmem:[%s5373_s4] ss:$0 sm:$0xff]  ;;  %s3657_s12 = smov [#allocation9]  }
 0x1da   : > { %3301 = vpow2.f32 %v2938_v60  ;;  %v836_v0 = vsel %vm756_vm1, %v833_v11, %v835_v8  ;;  %v1018_v59 = vmul.f32 %v3923_v20, %v5023_v47  ;;  %v1019_v15 = vmul.f32 %v3923_v20, %v5031_v51  ;;  %s3566_s27 = sshll.u32 %s3657_s12, 4  ;;  %s3567_s27 = int_to_ptr.vmem [resolvable:$false] %s3566_s27 }
 0x1db   : > { %v899_v6 = vadd.f32 %v834_v2, %v654_v14  ;;  %v900_v23 = vadd.f32 %v836_v0, %v655_v58  ;;  %v1020_v13 = vmul.f32 %v3923_v20, %v5035_v55  ;;  %v3296_v7 = vpop.eup %3295  ;;  %v1262_v39 = vmul.f32 %v3926_v21, %v5023_v47  ;;  %s3568_s1 = scalar_lea.vmem %s3567_s27, 8192  ;;  %p3569_p9 = scmp.lt.s32.totalorder %s5316_s26, %s3567_s27 }
 0x1dc   : > { %v1144_v3 = vrot.slane %v1018_v59, 1  ;;  %v1263_v19 = vmul.f32 %v3926_v21, %v5031_v51  ;;  %v1264_v43 = vmul.f32 %v3926_v21, %v5035_v55  ;;  %v3298_v36 = vpop.eup %3297  ;;  %v2272_v25 = vmul.f32 %v3296_v7, %v5074_v31  ;;  %p3570_p12 = scmp.lt.s32.totalorder %s3568_s1, %s3562_s7 }
 0x1dd   : > { %v967_v42 = vadd.f32 %v935_v18, %v899_v6  ;;  %v968_v44 = vadd.f32 %v936_v9, %v900_v23  ;;  %v1145_v20 = vrot.slane %v1019_v15, 1  ;;  %v2273_v24 = vmul.f32 %v3298_v36, %v5077_v50 }
 0x1de   : > { %v1147_v30 = vrot.slane %v1020_v13, 1  ;;  %v1388_v38 = vrot.slane %v1262_v39, 2  ;;  %v1389_v45 = vrot.slane %v1263_v19, 2  ;;  %v1391_v52 = vrot.slane %v1264_v43, 2  ;;  %p3571_p0 = por %p3570_p12, %p3569_p9 }
 0x1df   : > { %v1146_v47 = vsel %vm511_vm0, %v1144_v3, %v1145_v20  ;;  %v1491_v51 = vmul.f32 %v3933_v26, %v337_v33  ;;  %v1492_v63 = vmul.f32 %v3933_v26, %v338_v62  ;;  %v2290_v21 = vpack.c.bf16 %v2273_v24, %v2272_v25 }
 0x1e0   : > { %v1148_v55 = vsel %vm511_vm0, %v1145_v20, %v1147_v30  ;;  %v1211_v31 = vadd.f32 %v1146_v47, %v967_v42  ;;  %v1390_v22 = vsel %vm756_vm1, %v1388_v38, %v1389_v45  ;;  %v1392_v50 = vsel %vm756_vm1, %v1389_v45, %v1391_v52  ;;  %p3572_p4 = pnand %p3571_p0, %p3565_p7 }
 0x1e1   : > { %v1212_v61 = vadd.f32 %v1148_v55, %v968_v44  ;;  %v1574_v4 = vmul.f32 %v3988_v27, %v337_v33  ;;  %v1575_v34 = vmul.f32 %v3988_v27, %v338_v62  ;;  %3072 = vmatprep.mubr.bf16.mxu1 %v2290_v21  ;;  %v1576_v29 = vmul.f32 %v3988_v27, %v339_v46 }
 0x1e2   : > { %v1455_v49 = vadd.f32 %v1390_v22, %v1211_v31  ;;  %v1818_v16 = vmul.f32 %v3992_v28, %v337_v33  ;;  %v1819_v26 = vmul.f32 %v3992_v28, %v338_v62  ;;  %v1820_v17 = vmul.f32 %v3992_v28, %v339_v46 }
 0x1e3   : > { %v3300_v32 = vpop.eup %3299  ;;  %v1456_v10 = vadd.f32 %v1392_v50, %v1212_v61  ;;  %v1700_v53 = vrot.slane %v1574_v4, 1  ;;  %v1701_v1 = vrot.slane %v1575_v34, 1  ;;  %v1703_v60 = vrot.slane %v1576_v29, 1 }
 0x1e4   : > { %v3302_v57 = vpop.eup %3301  ;;  %v2162_v11 = vadd.f32 1.0, %v3300_v32  ;;  %v1523_v8 = vadd.f32 %v1491_v51, %v1455_v49  ;;  %v1944_v35 = vrot.slane %v1818_v16, 2  ;;  %v1945_v58 = vrot.slane %v1819_v26, 2 }
 0x1e5   : > { %v2163_v27 = vadd.f32 1.0, %v3302_v57  ;;  %v1524_v18 = vadd.f32 %v1492_v63, %v1456_v10  ;;  %v1702_v14 = vsel %vm511_vm0, %v1700_v53, %v1701_v1  ;;  %v3062_v2 = vpop.f32.mrb[0].mxu1  ;;  %v1704_v0 = vsel %vm511_vm0, %v1701_v1, %v1703_v60 }
 0x1e6   : > { %3303 = vrcp.f32 %v2162_v11  ;;  %v1767_v28 = vadd.f32 %v1702_v14, %v1523_v8  ;;  %v1947_v9 = vrot.slane %v1820_v17, 2  ;;  %v2461_v59 = vpop.f32.mrb[1].mxu1  ;;  %v1946_v23 = vsel %vm756_vm1, %v1944_v35, %v1945_v58 }
 0x1e7   : > { %3305 = vrcp.f32 %v2163_v27  ;;  %v1768_v6 = vadd.f32 %v1704_v0, %v1524_v18  ;;  %v5201_v15 = vadd.f32 %v5119_v41, %v5194_v5  ;;  %v3063_v13 = vpop.f32.mrb[2].mxu1  ;;  %v5205_v62 = vadd.f32 %v3062_v2, %v5194_v5 }
 0x1e8   : > { %v1948_v7 = vsel %vm756_vm1, %v1945_v58, %v1947_v9  ;;  %v2011_v33 = vadd.f32 %v1946_v23, %v1767_v28  ;;  %v5209_v3 = vadd.f32 %v5194_v5, %v5122_v37  ;;  %v2464_v39 = vpop.f32.mrb[3].mxu1  ;;  %v5213_v36 = vadd.f32 %v5194_v5, %v2461_v59 }
 0x1e9   : > { %v2012_v19 = vadd.f32 %v1948_v7, %v1768_v6  ;;  %v2966_v43 = vmul.f32 -1.442695, %v5201_v15  ;;  %v5217_v41 = vadd.f32 %v5127_v48, %v5194_v5  ;;  %v2982_v42 = vmul.f32 -1.442695, %v5205_v62 }
 0x1ea   : > { %v5220_v25 = vadd.f32 %v4990_v40, %v2011_v33  ;;  %v2964_v44 = vmul.f32 -1.442695, %v5209_v3  ;;  %v5225_v37 = vadd.f32 %v3063_v13, %v5194_v5  ;;  %v2980_v48 = vmul.f32 -1.442695, %v5213_v36 }
 0x1eb   : > { %v5228_v20 = vadd.f32 %v4990_v40, %v2012_v19  ;;  %3307 = vpow2.f32 %v2966_v43  ;;  %v5234_v30 = vadd.f32 %v5194_v5, %v5132_v12  ;;  %v2967_v45 = vmul.f32 -1.442695, %v5217_v41 }
 0x1ec   : > { %v2953_v24 = vmul.f32 -1.442695, %v5220_v25  ;;  %3309 = vpow2.f32 %v2982_v42  ;;  %v5239_v46 = vadd.f32 %v5194_v5, %v2464_v39  ;;  %v2983_v40 = vmul.f32 -1.442695, %v5225_v37 }
 0x1ed   : > { %v2954_v38 = vmul.f32 -1.442695, %v5228_v20  ;;  %3311 = vpow2.f32 %v2964_v44  ;;  %v2965_v47 = vmul.f32 -1.442695, %v5234_v30 }
 0x1ee   : > { %3313 = vpow2.f32 %v2953_v24  ;;  %v2981_v51 = vmul.f32 -1.442695, %v5239_v46 }
 0x1ef   : > { %3315 = vpow2.f32 %v2954_v38 }
 0x1f0   : > { %v3304_v52 = vpop.eup %3303  ;;  %3317 = vpow2.f32 %v2980_v48 }
 0x1f1   : > { %v3306_v12 = vpop.eup %3305  ;;  %v2258_v63 = vmul.f32 %v3304_v52, %v5141_v56  ;;  %3319 = vpow2.f32 %v2967_v45 }
 0x1f2   : > { %v2259_v21 = vmul.f32 %v3306_v12, %v5150_v54  ;;  %3321 = vpow2.f32 %v2983_v40 }
 0x1f3   : > { %3323 = vpow2.f32 %v2965_v47 }
 0x1f4   : > { %v2283_v55 = vpack.c.bf16 %v2259_v21, %v2258_v63  ;;  %3325 = vpow2.f32 %v2981_v51 }
 0x1f5   : > { %v3308_v31 = vpop.eup %3307 }
 0x1f6   : > { %v3310_v22 = vpop.eup %3309  ;;  %3057 = vmatmul.mubr.bf16.gmra.mrb[12].mxu0 %v2283_v55  ;;  %v2622_v61 = vadd.f32 1.0, %v3308_v31 }
 0x1f7   : > { %v3312_v50 = vpop.eup %3311  ;;  %v2638_v4 = vadd.f32 1.0, %v3310_v22 }
 0x1f8   : > { %v3314_v34 = vpop.eup %3313  ;;  %3327 = vrcp.f32 %v2622_v61  ;;  %v2620_v49 = vadd.f32 1.0, %v3312_v50 }
 0x1f9   : > { %v3316_v29 = vpop.eup %3315  ;;  %v2178_v16 = vadd.f32 1.0, %v3314_v34  ;;  %3329 = vrcp.f32 %v2638_v4 }
 0x1fa   : > { %v3318_v56 = vpop.eup %3317  ;;  %v2179_v26 = vadd.f32 1.0, %v3316_v29  ;;  %3331 = vrcp.f32 %v2620_v49 }
 0x1fb   : > { %v3320_v54 = vpop.eup %3319  ;;  %3333 = vrcp.f32 %v2178_v16  ;;  %v2636_v32 = vadd.f32 1.0, %v3318_v56 }
 0x1fc   : > { %v3322_v10 = vpop.eup %3321  ;;  %3335 = vrcp.f32 %v2179_v26  ;;  %v2623_v53 = vadd.f32 1.0, %v3320_v54 }
 0x1fd   : > { %v3324_v1 = vpop.eup %3323  ;;  %3337 = vrcp.f32 %v2636_v32  ;;  %v2639_v17 = vadd.f32 1.0, %v3322_v10 }
 0x1fe   : > { %v3326_v57 = vpop.eup %3325  ;;  %3339 = vrcp.f32 %v2623_v53  ;;  %v2621_v11 = vadd.f32 1.0, %v3324_v1 }
 0x1ff   : > { %3341 = vrcp.f32 %v2639_v17  ;;  %v2637_v8 = vadd.f32 1.0, %v3326_v57 }
 0x200   : > { %3343 = vrcp.f32 %v2621_v11 }
 0x201   : > { %3345 = vrcp.f32 %v2637_v8 }
 0x202   : > { %v3328_v60 = vpop.eup %3327 }
 0x203   : > { %v3330_v35 = vpop.eup %3329  ;;  %v2718_v27 = vmul.f32 %v3328_v60, %v5201_v15 }
 0x204   : > { %v3332_v18 = vpop.eup %3331  ;;  %v2734_v14 = vmul.f32 %v3330_v35, %v5205_v62 }
 0x205   : > { %v3334_v58 = vpop.eup %3333  ;;  %2750 = vst [vmem:[%s3896_s3 + $0x10] sm:$0xff] %v2718_v27  ;;  %v2716_v2 = vmul.f32 %v3332_v18, %v5209_v3 }
 0x206   : > { %v3336_v0 = vpop.eup %3335  ;;  %v2274_v28 = vmul.f32 %v3334_v58, %v5220_v25  ;;  %2766 = vst [vmem:[%s3896_s3 + $0x90] sm:$0xff] %v2734_v14 }
 0x207   : > { %v3338_v9 = vpop.eup %3337  ;;  %v2275_v59 = vmul.f32 %v3336_v0, %v5228_v20  ;;  %2748 = vst [vmem:[%s3896_s3] sm:$0xff] %v2716_v2 }
 0x208   : > { %v3340_v6 = vpop.eup %3339  ;;  %v2732_v23 = vmul.f32 %v3338_v9, %v5213_v36 }
 0x209   : > { %v3342_v15 = vpop.eup %3341  ;;  %v2291_v13 = vpack.c.bf16 %v2275_v59, %v2274_v28  ;;  %v2719_v7 = vmul.f32 %v3340_v6, %v5217_v41 }
 0x20a   : > { %v3344_v33 = vpop.eup %3343  ;;  %2764 = vst [vmem:[%s3896_s3 + $0x80] sm:$0xff] %v2732_v23  ;;  %v2735_v62 = vmul.f32 %v3342_v15, %v5225_v37 }
 0x20b   : > { %v3346_v3 = vpop.eup %3345  ;;  %3073 = vmatmul.mubr.bf16.gmra.mrb[12].mxu1 %v2291_v13  ;;  %2751 = vst [vmem:[%s3896_s3 + $0x18] sm:$0xff] %v2719_v7  ;;  %v2717_v39 = vmul.f32 %v3344_v33, %v5234_v30 }
 0x20c   : > { %2767 = vst [vmem:[%s3896_s3 + $0x98] sm:$0xff] %v2735_v62  ;;  %v2733_v19 = vmul.f32 %v3346_v3, %v5239_v46 }
 0x20d   : > { %2749 = vst [vmem:[%s3896_s3 + $0x8] sm:$0xff] %v2717_v39 }
 0x20e   : > { %2765 = vst [vmem:[%s3896_s3 + $0x88] sm:$0xff] %v2733_v19 }
 0x223   : > { %v3050_v43 = vpop.f32.mrb[4].mxu0 }
 0x224   : > { %v2422_v36 = vadd.f32 %v3050_v43, %v5194_v5  ;;  %v2413_v25 = vpop.f32.mrb[5].mxu0 }
 0x225   : > { %v2414_v41 = vadd.f32 %v5194_v5, %v2413_v25  ;;  %v3051_v42 = vpop.f32.mrb[6].mxu0 }
 0x226   : > { %v2970_v44 = vmul.f32 -1.442695, %v2422_v36  ;;  %v2425_v37 = vadd.f32 %v3051_v42, %v5194_v5  ;;  %v2416_v20 = vpop.f32.mrb[7].mxu0 }
 0x227   : > { %v2968_v24 = vmul.f32 -1.442695, %v2414_v41  ;;  %v2417_v48 = vadd.f32 %v5194_v5, %v2416_v20 }
 0x228   : > { %3347 = vpow2.f32 %v2970_v44  ;;  %v2971_v30 = vmul.f32 -1.442695, %v2425_v37 }
 0x229   : > { %3349 = vpow2.f32 %v2968_v24  ;;  %v2969_v38 = vmul.f32 -1.442695, %v2417_v48 }
 0x22a   : > { %3351 = vpow2.f32 %v2971_v30 }
 0x22b   : > { %3353 = vpow2.f32 %v2969_v38 }
 0x232   : > { %v3348_v45 = vpop.eup %3347 }
 0x233   : > { %v3350_v46 = vpop.eup %3349  ;;  %v2626_v40 = vadd.f32 1.0, %v3348_v45 }
 0x234   : > { %v3352_v47 = vpop.eup %3351  ;;  %v2624_v52 = vadd.f32 1.0, %v3350_v46 }
 0x235   : > { %v3354_v51 = vpop.eup %3353  ;;  %3355 = vrcp.f32 %v2626_v40  ;;  %v2627_v12 = vadd.f32 1.0, %v3352_v47 }
 0x236   : > { %3357 = vrcp.f32 %v2624_v52  ;;  %v2625_v63 = vadd.f32 1.0, %v3354_v51 }
 0x237   : > { %3359 = vrcp.f32 %v2627_v12 }
 0x238   : > { %v3066_v21 = vpop.f32.mrb[4].mxu1  ;;  %3361 = vrcp.f32 %v2625_v63 }
 0x239   : > { %v2486_v55 = vadd.f32 %v3066_v21, %v5194_v5  ;;  %v2477_v31 = vpop.f32.mrb[5].mxu1 }
 0x23a   : > { %v2478_v22 = vadd.f32 %v5194_v5, %v2477_v31  ;;  %v3067_v61 = vpop.f32.mrb[6].mxu1 }
 0x23b   : > { %v2986_v50 = vmul.f32 -1.442695, %v2486_v55  ;;  %v2489_v4 = vadd.f32 %v3067_v61, %v5194_v5  ;;  %v2480_v34 = vpop.f32.mrb[7].mxu1 }
 0x23c   : > { %v2984_v49 = vmul.f32 -1.442695, %v2478_v22  ;;  %v2481_v29 = vadd.f32 %v5194_v5, %v2480_v34 }
 0x23d   : > { %3363 = vpow2.f32 %v2986_v50  ;;  %v2987_v16 = vmul.f32 -1.442695, %v2489_v4 }
 0x23e   : > { %3365 = vpow2.f32 %v2984_v49  ;;  %v2985_v56 = vmul.f32 -1.442695, %v2481_v29 }
 0x23f   : > { %v3356_v26 = vpop.eup %3355  ;;  %3367 = vpow2.f32 %v2987_v16 }
 0x240   : > { %v3358_v54 = vpop.eup %3357  ;;  %v2722_v32 = vmul.f32 %v3356_v26, %v2422_v36  ;;  %3369 = vpow2.f32 %v2985_v56 }
 0x241   : > { %v3360_v10 = vpop.eup %3359  ;;  %v2720_v53 = vmul.f32 %v3358_v54, %v2414_v41 }
 0x242   : > { %v3362_v1 = vpop.eup %3361  ;;  %2754 = vst [vmem:[%s3896_s3 + $0x30] sm:$0xff] %v2722_v32  ;;  %v2723_v17 = vmul.f32 %v3360_v10, %v2425_v37 }
 0x243   : > { %2752 = vst [vmem:[%s3896_s3 + $0x20] sm:$0xff] %v2720_v53  ;;  %v2721_v57 = vmul.f32 %v3362_v1, %v2417_v48 }
 0x244   : > { %2755 = vst [vmem:[%s3896_s3 + $0x38] sm:$0xff] %v2723_v17 }
 0x245   : > { %2753 = vst [vmem:[%s3896_s3 + $0x28] sm:$0xff] %v2721_v57 }
 0x247   : > { %v3364_v11 = vpop.eup %3363 }
 0x248   : > { %v3366_v8 = vpop.eup %3365  ;;  %v2642_v60 = vadd.f32 1.0, %v3364_v11 }
 0x249   : > { %v3368_v35 = vpop.eup %3367  ;;  %v2640_v27 = vadd.f32 1.0, %v3366_v8 }
 0x24a   : > { %v3370_v18 = vpop.eup %3369  ;;  %3371 = vrcp.f32 %v2642_v60  ;;  %v2643_v14 = vadd.f32 1.0, %v3368_v35 }
 0x24b   : > { %3373 = vrcp.f32 %v2640_v27  ;;  %v2641_v58 = vadd.f32 1.0, %v3370_v18 }
 0x24c   : > { %3375 = vrcp.f32 %v2643_v14 }
 0x24d   : > { %3377 = vrcp.f32 %v2641_v58 }
 0x254   : > { %v3372_v2 = vpop.eup %3371 }
 0x255   : > { %v3374_v0 = vpop.eup %3373  ;;  %v2738_v28 = vmul.f32 %v3372_v2, %v2486_v55 }
 0x256   : > { %v3376_v9 = vpop.eup %3375  ;;  %v2736_v59 = vmul.f32 %v3374_v0, %v2478_v22 }
 0x257   : > { %v3378_v6 = vpop.eup %3377  ;;  %2770 = vst [vmem:[%s3896_s3 + $0xb0] sm:$0xff] %v2738_v28  ;;  %v2739_v23 = vmul.f32 %v3376_v9, %v2489_v4 }
 0x258   : > { %2768 = vst [vmem:[%s3896_s3 + $0xa0] sm:$0xff] %v2736_v59  ;;  %v2737_v15 = vmul.f32 %v3378_v6, %v2481_v29 }
 0x259   : > { %2771 = vst [vmem:[%s3896_s3 + $0xb8] sm:$0xff] %v2739_v23 }
 0x25a   : > { %2769 = vst [vmem:[%s3896_s3 + $0xa8] sm:$0xff] %v2737_v15 }
 0x276   : > { %v3054_v13 = vpop.f32.mrb[8].mxu0 }
 0x277   : > { %v2438_v7 = vadd.f32 %v3054_v13, %v5194_v5  ;;  %v2429_v33 = vpop.f32.mrb[9].mxu0 }
 0x278   : > { %v2430_v62 = vadd.f32 %v5194_v5, %v2429_v33  ;;  %v3055_v3 = vpop.f32.mrb[10].mxu0 }
 0x279   : > { %v2974_v39 = vmul.f32 -1.442695, %v2438_v7  ;;  %v2441_v19 = vadd.f32 %v3055_v3, %v5194_v5  ;;  %v2432_v43 = vpop.f32.mrb[11].mxu0 }
 0x27a   : > { %v2972_v36 = vmul.f32 -1.442695, %v2430_v62  ;;  %v2433_v25 = vadd.f32 %v5194_v5, %v2432_v43 }
 0x27b   : > { %3379 = vpow2.f32 %v2974_v39  ;;  %v2975_v41 = vmul.f32 -1.442695, %v2441_v19 }
 0x27c   : > { %3381 = vpow2.f32 %v2972_v36  ;;  %v2973_v42 = vmul.f32 -1.442695, %v2433_v25 }
 0x27d   : > { %3383 = vpow2.f32 %v2975_v41 }
 0x27e   : > { %3385 = vpow2.f32 %v2973_v42 }
 0x285   : > { %v3380_v44 = vpop.eup %3379 }
 0x286   : > { %v3382_v37 = vpop.eup %3381  ;;  %v2630_v20 = vadd.f32 1.0, %v3380_v44 }
 0x287   : > { %v3384_v24 = vpop.eup %3383  ;;  %v2628_v48 = vadd.f32 1.0, %v3382_v37 }
 0x288   : > { %v3386_v30 = vpop.eup %3385  ;;  %3387 = vrcp.f32 %v2630_v20  ;;  %v2631_v38 = vadd.f32 1.0, %v3384_v24 }
 0x289   : > { %3389 = vrcp.f32 %v2628_v48  ;;  %v2629_v45 = vadd.f32 1.0, %v3386_v30 }
 0x28a   : > { %3391 = vrcp.f32 %v2631_v38 }
 0x28b   : > { %v3070_v46 = vpop.f32.mrb[8].mxu1  ;;  %3393 = vrcp.f32 %v2629_v45 }
 0x28c   : > { %v2502_v40 = vadd.f32 %v3070_v46, %v5194_v5  ;;  %v2493_v47 = vpop.f32.mrb[9].mxu1 }
 0x28d   : > { %v2494_v52 = vadd.f32 %v5194_v5, %v2493_v47  ;;  %v3071_v51 = vpop.f32.mrb[10].mxu1 }
 0x28e   : > { %v2990_v12 = vmul.f32 -1.442695, %v2502_v40  ;;  %v2505_v63 = vadd.f32 %v3071_v51, %v5194_v5  ;;  %v2496_v21 = vpop.f32.mrb[11].mxu1 }
 0x28f   : > { %v2988_v55 = vmul.f32 -1.442695, %v2494_v52  ;;  %v2497_v31 = vadd.f32 %v5194_v5, %v2496_v21 }
 0x290   : > { %3395 = vpow2.f32 %v2990_v12  ;;  %v2991_v22 = vmul.f32 -1.442695, %v2505_v63 }
 0x291   : > { %3397 = vpow2.f32 %v2988_v55  ;;  %v2989_v61 = vmul.f32 -1.442695, %v2497_v31 }
 0x292   : > { %v3388_v50 = vpop.eup %3387  ;;  %3399 = vpow2.f32 %v2991_v22 }
 0x293   : > { %v3390_v4 = vpop.eup %3389  ;;  %v2726_v34 = vmul.f32 %v3388_v50, %v2438_v7  ;;  %3401 = vpow2.f32 %v2989_v61 }
 0x294   : > { %v3392_v49 = vpop.eup %3391  ;;  %v2724_v29 = vmul.f32 %v3390_v4, %v2430_v62 }
 0x295   : > { %v3394_v16 = vpop.eup %3393  ;;  %2758 = vst [vmem:[%s3896_s3 + $0x50] sm:$0xff] %v2726_v34  ;;  %v2727_v56 = vmul.f32 %v3392_v49, %v2441_v19 }
 0x296   : > { %2756 = vst [vmem:[%s3896_s3 + $0x40] sm:$0xff] %v2724_v29  ;;  %v2725_v26 = vmul.f32 %v3394_v16, %v2433_v25 }
 0x297   : > { %2759 = vst [vmem:[%s3896_s3 + $0x58] sm:$0xff] %v2727_v56 }
 0x298   : > { %2757 = vst [vmem:[%s3896_s3 + $0x48] sm:$0xff] %v2725_v26 }
 0x29a   : > { %v3396_v54 = vpop.eup %3395 }
 0x29b   : > { %v3398_v32 = vpop.eup %3397  ;;  %v2646_v10 = vadd.f32 1.0, %v3396_v54 }
 0x29c   : > { %v3400_v53 = vpop.eup %3399  ;;  %v2644_v1 = vadd.f32 1.0, %v3398_v32 }
 0x29d   : > { %v3402_v17 = vpop.eup %3401  ;;  %3403 = vrcp.f32 %v2646_v10  ;;  %v2647_v57 = vadd.f32 1.0, %v3400_v53 }
 0x29e   : > { %3405 = vrcp.f32 %v2644_v1  ;;  %v2645_v11 = vadd.f32 1.0, %v3402_v17 }
 0x29f   : > { %3407 = vrcp.f32 %v2647_v57 }
 0x2a0   : > { %3409 = vrcp.f32 %v2645_v11 }
 0x2a7   : > { %v3404_v8 = vpop.eup %3403 }
 0x2a8   : > { %v3406_v60 = vpop.eup %3405  ;;  %v2742_v35 = vmul.f32 %v3404_v8, %v2502_v40 }
 0x2a9   : > { %v3408_v27 = vpop.eup %3407  ;;  %v2740_v18 = vmul.f32 %v3406_v60, %v2494_v52 }
 0x2aa   : > { %v3410_v14 = vpop.eup %3409  ;;  %2774 = vst [vmem:[%s3896_s3 + $0xd0] sm:$0xff] %v2742_v35  ;;  %v2743_v58 = vmul.f32 %v3408_v27, %v2505_v63 }
 0x2ab   : > { %2772 = vst [vmem:[%s3896_s3 + $0xc0] sm:$0xff] %v2740_v18  ;;  %v2741_v2 = vmul.f32 %v3410_v14, %v2497_v31 }
 0x2ac   : > { %2775 = vst [vmem:[%s3896_s3 + $0xd8] sm:$0xff] %v2743_v58 }
 0x2ad   : > { %2773 = vst [vmem:[%s3896_s3 + $0xc8] sm:$0xff] %v2741_v2 }
 0x2c9   : > { %v3058_v0 = vpop.f32.mrb[12].mxu0 }
 0x2ca   : > { %v2454_v28 = vadd.f32 %v3058_v0, %v5194_v5  ;;  %v2445_v9 = vpop.f32.mrb[13].mxu0 }
 0x2cb   : > { %v2446_v59 = vadd.f32 %v5194_v5, %v2445_v9  ;;  %v3059_v6 = vpop.f32.mrb[14].mxu0 }
 0x2cc   : > { %v2978_v23 = vmul.f32 -1.442695, %v2454_v28  ;;  %v2457_v15 = vadd.f32 %v3059_v6, %v5194_v5  ;;  %v2448_v13 = vpop.f32.mrb[15].mxu0 }
 0x2cd   : > { %v2976_v7 = vmul.f32 -1.442695, %v2446_v59  ;;  %v2449_v33 = vadd.f32 %v5194_v5, %v2448_v13 }
 0x2ce   : > { %3411 = vpow2.f32 %v2978_v23  ;;  %v2979_v62 = vmul.f32 -1.442695, %v2457_v15 }
 0x2cf   : > { %3413 = vpow2.f32 %v2976_v7  ;;  %v2977_v3 = vmul.f32 -1.442695, %v2449_v33 }
 0x2d0   : > { %3415 = vpow2.f32 %v2979_v62 }
 0x2d1   : > { %3417 = vpow2.f32 %v2977_v3 }
 0x2d8   : > { %v3412_v39 = vpop.eup %3411 }
 0x2d9   : > { %v3414_v19 = vpop.eup %3413  ;;  %v2634_v43 = vadd.f32 1.0, %v3412_v39 }
 0x2da   : > { %v3416_v36 = vpop.eup %3415  ;;  %v2632_v25 = vadd.f32 1.0, %v3414_v19 }
 0x2db   : > { %v3418_v41 = vpop.eup %3417  ;;  %3419 = vrcp.f32 %v2634_v43  ;;  %v2635_v42 = vadd.f32 1.0, %v3416_v36 }
 0x2dc   : > { %3421 = vrcp.f32 %v2632_v25  ;;  %v2633_v44 = vadd.f32 1.0, %v3418_v41 }
 0x2dd   : > { %3423 = vrcp.f32 %v2635_v42 }
 0x2de   : > { %v3074_v37 = vpop.f32.mrb[12].mxu1  ;;  %3425 = vrcp.f32 %v2633_v44 }
 0x2df   : > { %v2518_v20 = vadd.f32 %v3074_v37, %v5194_v5  ;;  %v2509_v24 = vpop.f32.mrb[13].mxu1 }
 0x2e0   : > { %v2510_v48 = vadd.f32 %v5194_v5, %v2509_v24  ;;  %v3075_v30 = vpop.f32.mrb[14].mxu1 }
 0x2e1   : > { %v2994_v38 = vmul.f32 -1.442695, %v2518_v20  ;;  %v2521_v45 = vadd.f32 %v3075_v30, %v5194_v5  ;;  %v2512_v46 = vpop.f32.mrb[15].mxu1 }
 0x2e2   : > { %v2992_v40 = vmul.f32 -1.442695, %v2510_v48  ;;  %v2513_v47 = vadd.f32 %v5194_v5, %v2512_v46 }
 0x2e3   : > { %3427 = vpow2.f32 %v2994_v38  ;;  %v2995_v52 = vmul.f32 -1.442695, %v2521_v45 }
 0x2e4   : > { %3429 = vpow2.f32 %v2992_v40  ;;  %v2993_v51 = vmul.f32 -1.442695, %v2513_v47 }
 0x2e5   : > { %v3420_v12 = vpop.eup %3419  ;;  %3431 = vpow2.f32 %v2995_v52 }
 0x2e6   : > { %v3422_v63 = vpop.eup %3421  ;;  %v2730_v21 = vmul.f32 %v3420_v12, %v2454_v28  ;;  %3433 = vpow2.f32 %v2993_v51 }
 0x2e7   : > { %v3424_v55 = vpop.eup %3423  ;;  %v2728_v31 = vmul.f32 %v3422_v63, %v2446_v59 }
 0x2e8   : > { %v3426_v22 = vpop.eup %3425  ;;  %2762 = vst [vmem:[%s3896_s3 + $0x70] sm:$0xff] %v2730_v21  ;;  %v2731_v61 = vmul.f32 %v3424_v55, %v2457_v15 }
 0x2e9   : > { %2760 = vst [vmem:[%s3896_s3 + $0x60] sm:$0xff] %v2728_v31  ;;  %v2729_v50 = vmul.f32 %v3426_v22, %v2449_v33 }
 0x2ea   : > { %2763 = vst [vmem:[%s3896_s3 + $0x78] sm:$0xff] %v2731_v61 }
 0x2eb   : > { %2761 = vst [vmem:[%s3896_s3 + $0x68] sm:$0xff] %v2729_v50 }
 0x2ed   : > { %v3428_v5 = vpop.eup %3427 }
 0x2ee   : > { %v3430_v4 = vpop.eup %3429  ;;  %v2650_v34 = vadd.f32 1.0, %v3428_v5 }
 0x2ef   : > { %v3432_v49 = vpop.eup %3431  ;;  %v2648_v29 = vadd.f32 1.0, %v3430_v4 }
 0x2f0   : > { %v3434_v16 = vpop.eup %3433  ;;  %3435 = vrcp.f32 %v2650_v34  ;;  %v2651_v56 = vadd.f32 1.0, %v3432_v49 }
 0x2f1   : > { %3437 = vrcp.f32 %v2648_v29  ;;  %v2649_v26 = vadd.f32 1.0, %v3434_v16 }
 0x2f2   : > { %3439 = vrcp.f32 %v2651_v56 }
 0x2f3   : > { %3441 = vrcp.f32 %v2649_v26 }
 0x2fa   : > { %v3436_v54 = vpop.eup %3435 }
 0x2fb   : > { %v3438_v32 = vpop.eup %3437  ;;  %v2746_v10 = vmul.f32 %v3436_v54, %v2518_v20 }
 0x2fc   : > { %v3440_v53 = vpop.eup %3439  ;;  %v2744_v1 = vmul.f32 %v3438_v32, %v2510_v48 }
 0x2fd   : > { %v3442_v17 = vpop.eup %3441  ;;  %2778 = vst [vmem:[%s3896_s3 + $0xf0] sm:$0xff] %v2746_v10  ;;  %v2747_v57 = vmul.f32 %v3440_v53, %v2521_v45 }
 0x2fe   : > { %2776 = vst [vmem:[%s3896_s3 + $0xe0] sm:$0xff] %v2744_v1  ;;  %v2745_v11 = vmul.f32 %v3442_v17, %v2513_v47 }
 0x2ff   : > { %2779 = vst [vmem:[%s3896_s3 + $0xf8] sm:$0xff] %v2747_v57 }
 0x300   : > { %2777 = vst [vmem:[%s3896_s3 + $0xe8] sm:$0xff] %v2745_v11 }
 0x301   : > { %3575 = shalt.err (!%p3572_p4)
}
 0x302   : > { %s3576_s3 = scalar_lea.hbm %s5314_s15, 4096  ;;  %s3580_s29 = scalar_lea.hbm %s5374_s5, 8192 }
 0x303   : > { %p3577_p8 = scmp.ne.s32.totalorder %s5314_s15, %s3576_s3  ;;  %p3581_p13 = scmp.lt.u32.totalorder %s5314_s15, %s5374_s5 }
 0x304   : > { %p3582_p1 = scmp.lt.u32.totalorder %s3580_s29, %s3576_s3  ;;  %p3584_p2 = scmp.lt.u32.totalorder %s3576_s3, %s5314_s15 }
 0x305   : > { %p3578_p10 = pnand %p3577_p8, %p5399_p3 }
 0x306   : > { %p3583_p5 = por %p3582_p1, %p3581_p13 }
 0x307   : > { %p3579_p11 = pneg %p3578_p10 }
 0x308   : > { %p3585_p6 = por %p3584_p2, %p3583_p5 }
 0x30a   : > { %p3586_p7 = pnand %p3585_p6, %p3579_p11 }
 0x30c   : > { %3589 = shalt.err (!%p3586_p7)
}
 0x30d   : > { %s3658_s17 = smov 128   ;;  %s3659_s24 = smov 8  }
 0x30e   : > { %3104 = dma.vmem_to_hbm [thread:$0]  (%p5399_p3), %s5316_s26, 4096, %s5314_s15, %s5323_s8, %s3658_s17, %s3658_s17, %s3659_s24  }
 0x30f PF: > { %p3123_p9 = scmp.ge.s32.totalorder %s3650_s23, 2  ;;  %s2812_s10 = sand.u32 1, %s3630_s18  }
 0x310   : > { %p5400_p12 = scmp.ne.s32.totalorder %s5387_s30, 0  ;;  %s2813_s25 = scalar_lea.sflag [#allocation6], %s2812_s10 }
 0x312   : > { %p3114_p0 = pnand %p3123_p9, %p5400_p12 }
 0x314   : > { %3625 = dma.done.wait (!%p3114_p0), %s2813_s25, 4096  }
 0x315   : > { %3627 = vsyncadd (!%p3114_p0), %s2813_s25, 4294963200  ;;  %s20_s23 = sadd.s32 1, %s3650_s23   ;;  %s5401_s28 = sld [smem:[#allocation20_spill]] }
 0x316   : > { %p17_p4 = scmp.ge.s32.totalorder %s20_s23, 4   ;;  %s5402_s18 = smov %s3634_s19 }
 0x317   : > { %s5403_s19 = smov %s3638_s20  ;;  %s5404_s20 = smov %s3743_s6 }
 0x318   : > { %s5405_s21 = smov %s3646_s22  ;;  %19 = sbr.rel (!%p17_p4) target bundleno = 9 (0x9), region = 100 }
 0x31b   : > { %s5406_s22 = smov %s5401_s28 }
 0x31f   :  { %2818 = vsyncpa [#allocation5], 1 }
 0x320   :  { %2820 = vsyncpa [#allocation5 + $0x1], 1 }
 0x321   :  { %2821 = vsyncpa [#allocation8], 1 }
 0x322   :  { %2822 = vsyncpa [#allocation6], 1 }
 0x323   :  { %2824 = vsyncpa [#allocation6 + $0x1], 1 }
 0x324   :  { %2825 = vsyncmov [#allocation3] }
 0x327   :  { %s2826_s30 = vpop.sfrf %2825 }
 0x328   :  { %p3001_p3 = scmp.ne.s32.totalorder %s2826_s30, 0 }
 0x32a   :  { %2830 = shalt.err (%p3001_p3)  }
 0x32b   :  { %2832 = vsyncmov [#allocation3 + $0x1] }
 0x32e   :  { %s2833_s26 = vpop.sfrf %2832 }
 0x32f   :  { %p3002_p8 = scmp.ne.s32.totalorder %s2833_s26, 0 }
 0x331   :  { %2837 = shalt.err (%p3002_p8)  }

</bundles_post_ra>
